<compile_context>
chip_gen: v7x
topology: tpu7x:2x2x1
jax: 0.10.0
libtpu: 0.0.40
codegen_flags: <defaults>
</compile_context>

<pallas_src>
import math

import jax
import jax.numpy as jnp
from jax import lax
from jax.experimental import pallas as pl
from jax.experimental.pallas import tpu as pltpu


# ----------------------------- module hyper-params -----------------------------
IN_CHANNEL = 4          # graph nodes
SEQ_LEN = 1024          # forced by Linear(256, 32): seq/4 == 256 after the two blocks
NUM_CLASSES = 5
BATCH = 8
GROUP = 128             # lane-group width used for the per-patch block-diagonal weight


def compute_formula(x, a, b):
    log_x = math.log2(x)
    floor_value = math.floor((log_x - b) / a)
    return 2 ** floor_value


# ----------------------------- fused Pallas kernel ------------------------------
def _grouped_block(src_ref, wgrp_ref, bgrp_ref, wd_ref, bd_ref):
    """HDGSMBlock tail (stand-in): per-patch linear -> ReLU -> Linear(L -> L/2).

    The per-patch linear is applied per 128-lane group against a (128, 128)
    block-diagonal replica of the (patch, patch) weight, and the L -> L/2 matmul
    is accumulated group-by-group against the matching 128-row slice of wd.
    """
    rows, lb = src_ref.shape
    n_groups = lb // GROUP
    lo = wd_ref.shape[1]
    acc = jnp.zeros((rows, lo), jnp.float32)
    for j in range(n_groups):
        yg = src_ref[:, j * GROUP:(j + 1) * GROUP].astype(jnp.bfloat16)      # (rows, 128)
        g = jnp.dot(yg, wgrp_ref[...], preferred_element_type=jnp.float32) + bgrp_ref[...]
        g = jnp.maximum(g, 0.0).astype(jnp.bfloat16)                         # ReLU
        acc = acc + jnp.dot(g, wd_ref[j * GROUP:(j + 1) * GROUP, :],
                            preferred_element_type=jnp.float32)
    return acc + bd_ref[...]


def _hdgsm_fused_kernel(x_ref, wg1_ref, bg1_ref, wd1_ref, bd1_ref,
                        wg2_ref, bg2_ref, wd2_ref, bd2_ref,
                        poolm_ref, w1_ref, b1_ref, w2_ref, b2_ref,
                        at_ref, out_ref,
                        y1_scr, h1_scr, y2_scr):
    bh, c, seq = x_ref.shape
    inv_sqrt_l = 1.0 / math.sqrt(seq)

    # ---- GraphicalStructureModeling stand-in + block1 graph mix (tiny, per-batch) ----
    at_list = []
    for b in range(bh):
        xb = x_ref[b]                                                        # (C, L)
        s = lax.dot_general(xb, xb, (((1,), (1,)), ((), ())),
                            preferred_element_type=jnp.float32) * inv_sqrt_l
        s = s - jnp.max(s, axis=-1, keepdims=True)
        e = jnp.exp(s)
        a = e / jnp.sum(e, axis=-1, keepdims=True)                           # (C, C)
        at_ref[b] = a
        at_list.append(a)
        y1_scr[b * c:(b + 1) * c, :] = jnp.dot(a, xb,
                                               preferred_element_type=jnp.float32)

    # ---- block1: per-patch linear -> ReLU -> Linear(L -> L/2) on (BH*C, L) rows ----
    h1_scr[...] = _grouped_block(y1_scr, wg1_ref, bg1_ref, wd1_ref, bd1_ref)

    # ---- block2 graph mix with the same At (matches the PyTorch forward) ----
    for b in range(bh):
        y2_scr[b * c:(b + 1) * c, :] = jnp.dot(
            at_list[b], h1_scr[b * c:(b + 1) * c, :],
            preferred_element_type=jnp.float32)

    # ---- block2: L/2 -> L/4 ----
    h2 = _grouped_block(y2_scr, wg2_ref, bg2_ref, wd2_ref, bd2_ref)          # (BH*C, L/4)

    # ---- GraphPooling (softmax node weights) + Feedforward (BN folded) + lastLinear ----
    pooled = jnp.dot(poolm_ref[...], h2, preferred_element_type=jnp.float32)  # (BH, L/4)
    x1 = jnp.dot(pooled.astype(jnp.bfloat16), w1_ref[...],
                 preferred_element_type=jnp.float32) + b1_ref[...]
    x1 = jnp.maximum(x1, 0.0)                              # ReLU; Dropout(0.6) == id in eval
    out_ref[0] = jnp.dot(x1, w2_ref[...], preferred_element_type=jnp.float32) + b2_ref[...]


# ----------------------------- forward wrapper -----------------------------------
def hdgsm_forward(x, params):
    B, C, L = x.shape
    NB = 2 if B % 2 == 0 else 1              # grid over batch halves (dual-TC on v7x)
    BH = B // NB
    NC = params["w2"].shape[1]

    wg1, bg1, wd1, bd1 = params["block1"]
    wg2, bg2, wd2, bd2 = params["block2"]
    # Pooling as a tiny block-diagonal (BH, BH*C) matrix so it runs on the flat rows.
    poolm = jnp.kron(jnp.eye(BH, dtype=jnp.float32), params["pool_w"][None, :])

    def _inv_spec(arr):   # grid-invariant 2D weight
        return pl.BlockSpec(arr.shape, lambda g: (0, 0))

    weights = (wg1, bg1, wd1, bd1, wg2, bg2, wd2, bd2,
               poolm, params["w1f"], params["b1f"], params["w2"], params["b2"])

    in_specs = [pl.BlockSpec((BH, C, L), lambda g: (g, 0, 0))] + [_inv_spec(w) for w in weights]
    out_specs = [pl.BlockSpec((BH, C, C), lambda g: (g, 0, 0)),
                 pl.BlockSpec((1, BH, NC), lambda g: (g, 0, 0))]
    out_shape = (jax.ShapeDtypeStruct((B, C, C), jnp.float32),
                 jax.ShapeDtypeStruct((NB, BH, NC), jnp.float32))
    scratch = [pltpu.VMEM((BH * C, L), jnp.float32),        # graph-mixed rows, block1
               pltpu.VMEM((BH * C, L // 2), jnp.float32),   # block1 output
               pltpu.VMEM((BH * C, L // 2), jnp.float32)]   # graph-mixed rows, block2

    at, out6 = pl.pallas_call(
        _hdgsm_fused_kernel,
        out_shape=out_shape,
        grid_spec=pltpu.PrefetchScalarGridSpec(
            num_scalar_prefetch=0, grid=(NB,),
            in_specs=in_specs, out_specs=out_specs, scratch_shapes=scratch),
        compiler_params=pltpu.CompilerParams(dimension_semantics=("parallel",)),
    )(x, *weights)
    return out6.reshape(B, NC), at


# ----------------------------- parameter construction ---------------------------
def make_block_params(key, L, patch):
    """Per-patch Linear(patch->patch) packed as a (128,128) block-diagonal group
    weight (NOT the dense (L,L) kron), plus a sequence-halving Linear(L -> L//2)."""
    assert GROUP % patch == 0 and L % GROUP == 0
    kp, kb, kd, kdb = jax.random.split(key, 4)
    reps = GROUP // patch
    wp = jax.random.normal(kp, (patch, patch), jnp.float32) * (1.0 / math.sqrt(patch))
    bp = jax.random.normal(kb, (patch,), jnp.float32) * 0.01
    w_grp = jnp.kron(jnp.eye(reps, dtype=jnp.float32), wp).astype(jnp.bfloat16)   # (128,128)
    b_grp = jnp.tile(bp, reps)[None, :]                                           # (1,128) f32
    wd = (jax.random.normal(kd, (L, L // 2), jnp.float32)
          * (1.0 / math.sqrt(L))).astype(jnp.bfloat16)
    bd = (jax.random.normal(kdb, (L // 2,), jnp.float32) * 0.01)[None, :]
    return (w_grp, b_grp, wd, bd)


def build_params():
    key = jax.random.PRNGKey(42)
    k_b1, k_b2, k_pool, k_w1, k_bias1 = jax.random.split(key, 5)

    patch1 = compute_formula(SEQ_LEN, 2, 0)        # hidden_size_1 == patch_size_1 == 32
    patch2 = compute_formula(SEQ_LEN / 2, 2, 0)    # hidden_size_2 == patch_size_2 == 16

    block1 = make_block_params(k_b1, SEQ_LEN, patch1)
    block2 = make_block_params(k_b2, SEQ_LEN // 2, patch2)

    feat = SEQ_LEN // 4                            # == 256, matches Linear(256, 32)
    # GraphPooling(node_n=C): softmax-normalized node weights.
    pool_w = jax.nn.softmax(jax.random.normal(k_pool, (IN_CHANNEL,), jnp.float32))

    # Feedforward[0]: Linear(256, 32), xavier_uniform weight (stored as (in, out)).
    limit = math.sqrt(6.0 / (feat + 32))
    w1 = jax.random.uniform(k_w1, (feat, 32), jnp.float32, -limit, limit)
    b1 = jax.random.uniform(k_bias1, (1, 32), jnp.float32,
                            -1.0 / math.sqrt(feat), 1.0 / math.sqrt(feat))
    # BatchNorm1d(32) eval with fresh stats (mean=0, var=1, gamma=1, beta=0), folded in.
    bn_scale = 1.0 / math.sqrt(1.0 + 1e-5)
    w1f = (w1 * bn_scale).astype(jnp.bfloat16)
    b1f = b1 * bn_scale

    # lastLinear: zero_last_layer_weight() -> weight and bias are zero.
    w2 = jnp.zeros((32, NUM_CLASSES), jnp.float32)
    b2 = jnp.zeros((1, NUM_CLASSES), jnp.float32)

    return dict(block1=block1, block2=block2, pool_w=pool_w,
                w1f=w1f, b1f=b1f, w2=w2, b2=b2)


# ----------------------------- main ----------------------------------------------
if __name__ == "__main__":
    params = build_params()
    x = jax.random.normal(jax.random.PRNGKey(0), (BATCH, IN_CHANNEL, SEQ_LEN), jnp.float32)

    fwd = jax.jit(hdgsm_forward)
    out6, at = fwd(x, params)
    jax.block_until_ready((out6, at))

    assert out6.shape == (BATCH, NUM_CLASSES), out6.shape
    assert at.shape == (BATCH, IN_CHANNEL, IN_CHANNEL), at.shape
    assert bool(jnp.all(jnp.isfinite(at)))
    assert bool(jnp.all(jnp.isfinite(out6)))
    # lastLinear weights/bias are zeroed in the module, so logits must be exactly zero.
    assert bool(jnp.all(out6 == 0.0))
    print("KERNEL_OK")
</pallas_src>

<mosaic_0001>
module attributes {stable_mosaic.version = 11 : i64} {
  func.func @_hdgsm_fused_kernel(%arg0: i32, %arg1: memref<4x4x1024xf32, #tpu.memory_space<vmem>>, %arg2: memref<128x128xbf16, #tpu.memory_space<vmem>>, %arg3: memref<1x128xf32, #tpu.memory_space<vmem>>, %arg4: memref<1024x512xbf16, #tpu.memory_space<vmem>>, %arg5: memref<1x512xf32, #tpu.memory_space<vmem>>, %arg6: memref<128x128xbf16, #tpu.memory_space<vmem>>, %arg7: memref<1x128xf32, #tpu.memory_space<vmem>>, %arg8: memref<512x256xbf16, #tpu.memory_space<vmem>>, %arg9: memref<1x256xf32, #tpu.memory_space<vmem>>, %arg10: memref<4x16xf32, #tpu.memory_space<vmem>>, %arg11: memref<256x32xbf16, #tpu.memory_space<vmem>>, %arg12: memref<1x32xf32, #tpu.memory_space<vmem>>, %arg13: memref<32x5xf32, #tpu.memory_space<vmem>>, %arg14: memref<1x5xf32, #tpu.memory_space<vmem>>, %arg15: memref<4x4x4xf32, #tpu.memory_space<vmem>>, %arg16: memref<1x4x5xf32, #tpu.memory_space<vmem>>, %arg17: memref<16x1024xf32, #tpu.memory_space<vmem>>, %arg18: memref<16x512xf32, #tpu.memory_space<vmem>>, %arg19: memref<16x512xf32, #tpu.memory_space<vmem>>) attributes {dimension_semantics = [#tpu.dimension_semantics<parallel>], iteration_bounds = array<i64: 2>, scalar_prefetch = 0 : i64, scratch_operands = 3 : i64, tpu.core_type = #tpu.core_type<tc>, window_params = [{transform_indices = @transform_0, window_bounds = array<i64: 4, 4, 1024>}, {pipeline_mode = #tpu.pipeline_mode<synchronous>, transform_indices = @transform_1, window_bounds = array<i64: 128, 128>}, {pipeline_mode = #tpu.pipeline_mode<synchronous>, transform_indices = @transform_2, window_bounds = array<i64: 1, 128>}, {pipeline_mode = #tpu.pipeline_mode<synchronous>, transform_indices = @transform_3, window_bounds = array<i64: 1024, 512>}, {pipeline_mode = #tpu.pipeline_mode<synchronous>, transform_indices = @transform_4, window_bounds = array<i64: 1, 512>}, {pipeline_mode = #tpu.pipeline_mode<synchronous>, transform_indices = @transform_5, window_bounds = array<i64: 128, 128>}, {pipeline_mode = #tpu.pipeline_mode<synchronous>, transform_indices = @transform_6, window_bounds = array<i64: 1, 128>}, {pipeline_mode = #tpu.pipeline_mode<synchronous>, transform_indices = @transform_7, window_bounds = array<i64: 512, 256>}, {pipeline_mode = #tpu.pipeline_mode<synchronous>, transform_indices = @transform_8, window_bounds = array<i64: 1, 256>}, {pipeline_mode = #tpu.pipeline_mode<synchronous>, transform_indices = @transform_9, window_bounds = array<i64: 4, 16>}, {pipeline_mode = #tpu.pipeline_mode<synchronous>, transform_indices = @transform_10, window_bounds = array<i64: 256, 32>}, {pipeline_mode = #tpu.pipeline_mode<synchronous>, transform_indices = @transform_11, window_bounds = array<i64: 1, 32>}, {pipeline_mode = #tpu.pipeline_mode<synchronous>, transform_indices = @transform_12, window_bounds = array<i64: 32, 5>}, {pipeline_mode = #tpu.pipeline_mode<synchronous>, transform_indices = @transform_13, window_bounds = array<i64: 1, 5>}, {transform_indices = @transform_14, window_bounds = array<i64: 4, 4, 4>}, {transform_indices = @transform_15, window_bounds = array<i64: 1, 4, 5>}]} {
    %c0 = arith.constant 0 : index
    %c0_0 = arith.constant 0 : index
    %c0_1 = arith.constant 0 : index
    %0 = vector.load %arg1[%c0, %c0_0, %c0_1] : memref<4x4x1024xf32, #tpu.memory_space<vmem>>, vector<1x4x1024xf32>
    %1 = vector.shape_cast %0 : vector<1x4x1024xf32> to vector<4x1024xf32>
    %cst = arith.constant dense<0.000000e+00> : vector<4x4xf32>
    %2 = tpu.matmul %1, %1, %cst {dimension_numbers = #tpu.dot_dimension_numbers<[1], [1], [0], [0], [0, 0, 1, 0], [], []>} : vector<4x1024xf32>, vector<4x1024xf32>, vector<4x4xf32> -> vector<4x4xf32>
    %cst_2 = arith.constant 3.125000e-02 : f32
    %3 = vector.broadcast %cst_2 : f32 to vector<4x4xf32>
    %4 = arith.mulf %2, %3 : vector<4x4xf32>
    %cst_3 = arith.constant dense<0xFF800000> : vector<4xf32>
    %5 = vector.multi_reduction <maximumf>, %4, %cst_3 [1] : vector<4x4xf32> to vector<4xf32>
    %6 = vector.shape_cast %5 : vector<4xf32> to vector<4x1xf32>
    %7 = vector.broadcast %6 : vector<4x1xf32> to vector<4x4xf32>
    %8 = arith.subf %4, %7 : vector<4x4xf32>
    %9 = math.exp %8 : vector<4x4xf32>
    %cst_4 = arith.constant dense<0.000000e+00> : vector<4xf32>
    %10 = vector.multi_reduction <add>, %9, %cst_4 [1] : vector<4x4xf32> to vector<4xf32>
    %11 = vector.shape_cast %10 : vector<4xf32> to vector<4x1xf32>
    %12 = vector.broadcast %11 : vector<4x1xf32> to vector<4x4xf32>
    %13 = arith.divf %9, %12 : vector<4x4xf32>
    %c0_5 = arith.constant 0 : index
    %c0_6 = arith.constant 0 : index
    %c0_7 = arith.constant 0 : index
    %14 = vector.load %arg15[%c0_5, %c0_6, %c0_7] : memref<4x4x4xf32, #tpu.memory_space<vmem>>, vector<1x4x4xf32>
    %15 = vector.shape_cast %14 : vector<1x4x4xf32> to vector<4x4xf32>
    %16 = vector.shape_cast %13 : vector<4x4xf32> to vector<1x4x4xf32>
    tpu.vector_store %arg15[%c0_5, %c0_6, %c0_7], %16 {strides = array<i32>} : memref<4x4x4xf32, #tpu.memory_space<vmem>>, vector<1x4x4xf32>,
    %cst_8 = arith.constant dense<0.000000e+00> : vector<4x1024xf32>
    %17 = tpu.matmul %13, %1, %cst_8 {dimension_numbers = #tpu.dot_dimension_numbers<[1], [0], [0], [1], [0, 0, 1, 1], [], []>} : vector<4x4xf32>, vector<4x1024xf32>, vector<4x1024xf32> -> vector<4x1024xf32>
    %c0_9 = arith.constant 0 : index
    %c0_10 = arith.constant 0 : index
    %18 = vector.load %arg17[%c0_9, %c0_10] : memref<16x1024xf32, #tpu.memory_space<vmem>>, vector<4x1024xf32>
    tpu.vector_store %arg17[%c0_9, %c0_10], %17 {strides = array<i32>} : memref<16x1024xf32, #tpu.memory_space<vmem>>, vector<4x1024xf32>,
    %c1 = arith.constant 1 : index
    %c0_11 = arith.constant 0 : index
    %c0_12 = arith.constant 0 : index
    %19 = vector.load %arg1[%c1, %c0_11, %c0_12] : memref<4x4x1024xf32, #tpu.memory_space<vmem>>, vector<1x4x1024xf32>
    %20 = vector.shape_cast %19 : vector<1x4x1024xf32> to vector<4x1024xf32>
    %cst_13 = arith.constant dense<0.000000e+00> : vector<4x4xf32>
    %21 = tpu.matmul %20, %20, %cst_13 {dimension_numbers = #tpu.dot_dimension_numbers<[1], [1], [0], [0], [0, 0, 1, 0], [], []>} : vector<4x1024xf32>, vector<4x1024xf32>, vector<4x4xf32> -> vector<4x4xf32>
    %cst_14 = arith.constant 3.125000e-02 : f32
    %22 = vector.broadcast %cst_14 : f32 to vector<4x4xf32>
    %23 = arith.mulf %21, %22 : vector<4x4xf32>
    %cst_15 = arith.constant dense<0xFF800000> : vector<4xf32>
    %24 = vector.multi_reduction <maximumf>, %23, %cst_15 [1] : vector<4x4xf32> to vector<4xf32>
    %25 = vector.shape_cast %24 : vector<4xf32> to vector<4x1xf32>
    %26 = vector.broadcast %25 : vector<4x1xf32> to vector<4x4xf32>
    %27 = arith.subf %23, %26 : vector<4x4xf32>
    %28 = math.exp %27 : vector<4x4xf32>
    %cst_16 = arith.constant dense<0.000000e+00> : vector<4xf32>
    %29 = vector.multi_reduction <add>, %28, %cst_16 [1] : vector<4x4xf32> to vector<4xf32>
    %30 = vector.shape_cast %29 : vector<4xf32> to vector<4x1xf32>
    %31 = vector.broadcast %30 : vector<4x1xf32> to vector<4x4xf32>
    %32 = arith.divf %28, %31 : vector<4x4xf32>
    %c1_17 = arith.constant 1 : index
    %c0_18 = arith.constant 0 : index
    %c0_19 = arith.constant 0 : index
    %33 = vector.load %arg15[%c1_17, %c0_18, %c0_19] : memref<4x4x4xf32, #tpu.memory_space<vmem>>, vector<1x4x4xf32>
    %34 = vector.shape_cast %33 : vector<1x4x4xf32> to vector<4x4xf32>
    %35 = vector.shape_cast %32 : vector<4x4xf32> to vector<1x4x4xf32>
    tpu.vector_store %arg15[%c1_17, %c0_18, %c0_19], %35 {strides = array<i32>} : memref<4x4x4xf32, #tpu.memory_space<vmem>>, vector<1x4x4xf32>,
    %cst_20 = arith.constant dense<0.000000e+00> : vector<4x1024xf32>
    %36 = tpu.matmul %32, %20, %cst_20 {dimension_numbers = #tpu.dot_dimension_numbers<[1], [0], [0], [1], [0, 0, 1, 1], [], []>} : vector<4x4xf32>, vector<4x1024xf32>, vector<4x1024xf32> -> vector<4x1024xf32>
    %c4 = arith.constant 4 : index
    %c0_21 = arith.constant 0 : index
    %37 = vector.load %arg17[%c4, %c0_21] : memref<16x1024xf32, #tpu.memory_space<vmem>>, vector<4x1024xf32>
    tpu.vector_store %arg17[%c4, %c0_21], %36 {strides = array<i32>} : memref<16x1024xf32, #tpu.memory_space<vmem>>, vector<4x1024xf32>,
    %c2 = arith.constant 2 : index
    %c0_22 = arith.constant 0 : index
    %c0_23 = arith.constant 0 : index
    %38 = vector.load %arg1[%c2, %c0_22, %c0_23] : memref<4x4x1024xf32, #tpu.memory_space<vmem>>, vector<1x4x1024xf32>
    %39 = vector.shape_cast %38 : vector<1x4x1024xf32> to vector<4x1024xf32>
    %cst_24 = arith.constant dense<0.000000e+00> : vector<4x4xf32>
    %40 = tpu.matmul %39, %39, %cst_24 {dimension_numbers = #tpu.dot_dimension_numbers<[1], [1], [0], [0], [0, 0, 1, 0], [], []>} : vector<4x1024xf32>, vector<4x1024xf32>, vector<4x4xf32> -> vector<4x4xf32>
    %cst_25 = arith.constant 3.125000e-02 : f32
    %41 = vector.broadcast %cst_25 : f32 to vector<4x4xf32>
    %42 = arith.mulf %40, %41 : vector<4x4xf32>
    %cst_26 = arith.constant dense<0xFF800000> : vector<4xf32>
    %43 = vector.multi_reduction <maximumf>, %42, %cst_26 [1] : vector<4x4xf32> to vector<4xf32>
    %44 = vector.shape_cast %43 : vector<4xf32> to vector<4x1xf32>
    %45 = vector.broadcast %44 : vector<4x1xf32> to vector<4x4xf32>
    %46 = arith.subf %42, %45 : vector<4x4xf32>
    %47 = math.exp %46 : vector<4x4xf32>
    %cst_27 = arith.constant dense<0.000000e+00> : vector<4xf32>
    %48 = vector.multi_reduction <add>, %47, %cst_27 [1] : vector<4x4xf32> to vector<4xf32>
    %49 = vector.shape_cast %48 : vector<4xf32> to vector<4x1xf32>
    %50 = vector.broadcast %49 : vector<4x1xf32> to vector<4x4xf32>
    %51 = arith.divf %47, %50 : vector<4x4xf32>
    %c2_28 = arith.constant 2 : index
    %c0_29 = arith.constant 0 : index
    %c0_30 = arith.constant 0 : index
    %52 = vector.load %arg15[%c2_28, %c0_29, %c0_30] : memref<4x4x4xf32, #tpu.memory_space<vmem>>, vector<1x4x4xf32>
    %53 = vector.shape_cast %52 : vector<1x4x4xf32> to vector<4x4xf32>
    %54 = vector.shape_cast %51 : vector<4x4xf32> to vector<1x4x4xf32>
    tpu.vector_store %arg15[%c2_28, %c0_29, %c0_30], %54 {strides = array<i32>} : memref<4x4x4xf32, #tpu.memory_space<vmem>>, vector<1x4x4xf32>,
    %cst_31 = arith.constant dense<0.000000e+00> : vector<4x1024xf32>
    %55 = tpu.matmul %51, %39, %cst_31 {dimension_numbers = #tpu.dot_dimension_numbers<[1], [0], [0], [1], [0, 0, 1, 1], [], []>} : vector<4x4xf32>, vector<4x1024xf32>, vector<4x1024xf32> -> vector<4x1024xf32>
    %c8 = arith.constant 8 : index
    %c0_32 = arith.constant 0 : index
    %56 = vector.load %arg17[%c8, %c0_32] : memref<16x1024xf32, #tpu.memory_space<vmem>>, vector<4x1024xf32>
    tpu.vector_store %arg17[%c8, %c0_32], %55 {strides = array<i32>} : memref<16x1024xf32, #tpu.memory_space<vmem>>, vector<4x1024xf32>,
    %c3 = arith.constant 3 : index
    %c0_33 = arith.constant 0 : index
    %c0_34 = arith.constant 0 : index
    %57 = vector.load %arg1[%c3, %c0_33, %c0_34] : memref<4x4x1024xf32, #tpu.memory_space<vmem>>, vector<1x4x1024xf32>
    %58 = vector.shape_cast %57 : vector<1x4x1024xf32> to vector<4x1024xf32>
    %cst_35 = arith.constant dense<0.000000e+00> : vector<4x4xf32>
    %59 = tpu.matmul %58, %58, %cst_35 {dimension_numbers = #tpu.dot_dimension_numbers<[1], [1], [0], [0], [0, 0, 1, 0], [], []>} : vector<4x1024xf32>, vector<4x1024xf32>, vector<4x4xf32> -> vector<4x4xf32>
    %cst_36 = arith.constant 3.125000e-02 : f32
    %60 = vector.broadcast %cst_36 : f32 to vector<4x4xf32>
    %61 = arith.mulf %59, %60 : vector<4x4xf32>
    %cst_37 = arith.constant dense<0xFF800000> : vector<4xf32>
    %62 = vector.multi_reduction <maximumf>, %61, %cst_37 [1] : vector<4x4xf32> to vector<4xf32>
    %63 = vector.shape_cast %62 : vector<4xf32> to vector<4x1xf32>
    %64 = vector.broadcast %63 : vector<4x1xf32> to vector<4x4xf32>
    %65 = arith.subf %61, %64 : vector<4x4xf32>
    %66 = math.exp %65 : vector<4x4xf32>
    %cst_38 = arith.constant dense<0.000000e+00> : vector<4xf32>
    %67 = vector.multi_reduction <add>, %66, %cst_38 [1] : vector<4x4xf32> to vector<4xf32>
    %68 = vector.shape_cast %67 : vector<4xf32> to vector<4x1xf32>
    %69 = vector.broadcast %68 : vector<4x1xf32> to vector<4x4xf32>
    %70 = arith.divf %66, %69 : vector<4x4xf32>
    %c3_39 = arith.constant 3 : index
    %c0_40 = arith.constant 0 : index
    %c0_41 = arith.constant 0 : index
    %71 = vector.load %arg15[%c3_39, %c0_40, %c0_41] : memref<4x4x4xf32, #tpu.memory_space<vmem>>, vector<1x4x4xf32>
    %72 = vector.shape_cast %71 : vector<1x4x4xf32> to vector<4x4xf32>
    %73 = vector.shape_cast %70 : vector<4x4xf32> to vector<1x4x4xf32>
    tpu.vector_store %arg15[%c3_39, %c0_40, %c0_41], %73 {strides = array<i32>} : memref<4x4x4xf32, #tpu.memory_space<vmem>>, vector<1x4x4xf32>,
    %cst_42 = arith.constant dense<0.000000e+00> : vector<4x1024xf32>
    %74 = tpu.matmul %70, %58, %cst_42 {dimension_numbers = #tpu.dot_dimension_numbers<[1], [0], [0], [1], [0, 0, 1, 1], [], []>} : vector<4x4xf32>, vector<4x1024xf32>, vector<4x1024xf32> -> vector<4x1024xf32>
    %c12 = arith.constant 12 : index
    %c0_43 = arith.constant 0 : index
    %75 = vector.load %arg17[%c12, %c0_43] : memref<16x1024xf32, #tpu.memory_space<vmem>>, vector<4x1024xf32>
    tpu.vector_store %arg17[%c12, %c0_43], %74 {strides = array<i32>} : memref<16x1024xf32, #tpu.memory_space<vmem>>, vector<4x1024xf32>,
    %cst_44 = arith.constant 0.000000e+00 : f32
    %76 = vector.broadcast %cst_44 : f32 to vector<16x512xf32>
    %c0_45 = arith.constant 0 : index
    %c0_46 = arith.constant 0 : index
    %77 = vector.load %arg17[%c0_45, %c0_46] : memref<16x1024xf32, #tpu.memory_space<vmem>>, vector<16x128xf32>
    %78 = arith.truncf %77 : vector<16x128xf32> to vector<16x128xbf16>
    %c0_47 = arith.constant 0 : index
    %c0_48 = arith.constant 0 : index
    %79 = vector.load %arg2[%c0_47, %c0_48] : memref<128x128xbf16, #tpu.memory_space<vmem>>, vector<128x128xbf16>
    %cst_49 = arith.constant dense<0.000000e+00> : vector<16x128xf32>
    %80 = tpu.matmul %78, %79, %cst_49 {dimension_numbers = #tpu.dot_dimension_numbers<[1], [0], [0], [1], [0, 0, 1, 1], [], []>} : vector<16x128xbf16>, vector<128x128xbf16>, vector<16x128xf32> -> vector<16x128xf32>
    %c0_50 = arith.constant 0 : index
    %c0_51 = arith.constant 0 : index
    %81 = vector.load %arg3[%c0_50, %c0_51] : memref<1x128xf32, #tpu.memory_space<vmem>>, vector<1x128xf32>
    %82 = vector.broadcast %81 : vector<1x128xf32> to vector<16x128xf32>
    %83 = arith.addf %80, %82 : vector<16x128xf32>
    %cst_52 = arith.constant 0.000000e+00 : f32
    %84 = vector.broadcast %cst_52 : f32 to vector<16x128xf32>
    %85 = arith.maximumf %83, %84 : vector<16x128xf32>
    %86 = arith.truncf %85 : vector<16x128xf32> to vector<16x128xbf16>
    %c0_53 = arith.constant 0 : index
    %c0_54 = arith.constant 0 : index
    %87 = vector.load %arg4[%c0_53, %c0_54] : memref<1024x512xbf16, #tpu.memory_space<vmem>>, vector<128x512xbf16>
    %cst_55 = arith.constant dense<0.000000e+00> : vector<16x512xf32>
    %88 = tpu.matmul %86, %87, %cst_55 {dimension_numbers = #tpu.dot_dimension_numbers<[1], [0], [0], [1], [0, 0, 1, 1], [], []>} : vector<16x128xbf16>, vector<128x512xbf16>, vector<16x512xf32> -> vector<16x512xf32>
    %89 = arith.addf %76, %88 : vector<16x512xf32>
    %c0_56 = arith.constant 0 : index
    %c128 = arith.constant 128 : index
    %90 = vector.load %arg17[%c0_56, %c128] : memref<16x1024xf32, #tpu.memory_space<vmem>>, vector<16x128xf32>
    %91 = arith.truncf %90 : vector<16x128xf32> to vector<16x128xbf16>
    %c0_57 = arith.constant 0 : index
    %c0_58 = arith.constant 0 : index
    %92 = vector.load %arg2[%c0_57, %c0_58] : memref<128x128xbf16, #tpu.memory_space<vmem>>, vector<128x128xbf16>
    %cst_59 = arith.constant dense<0.000000e+00> : vector<16x128xf32>
    %93 = tpu.matmul %91, %92, %cst_59 {dimension_numbers = #tpu.dot_dimension_numbers<[1], [0], [0], [1], [0, 0, 1, 1], [], []>} : vector<16x128xbf16>, vector<128x128xbf16>, vector<16x128xf32> -> vector<16x128xf32>
    %c0_60 = arith.constant 0 : index
    %c0_61 = arith.constant 0 : index
    %94 = vector.load %arg3[%c0_60, %c0_61] : memref<1x128xf32, #tpu.memory_space<vmem>>, vector<1x128xf32>
    %95 = vector.broadcast %94 : vector<1x128xf32> to vector<16x128xf32>
    %96 = arith.addf %93, %95 : vector<16x128xf32>
    %cst_62 = arith.constant 0.000000e+00 : f32
    %97 = vector.broadcast %cst_62 : f32 to vector<16x128xf32>
    %98 = arith.maximumf %96, %97 : vector<16x128xf32>
    %99 = arith.truncf %98 : vector<16x128xf32> to vector<16x128xbf16>
    %c128_63 = arith.constant 128 : index
    %c0_64 = arith.constant 0 : index
    %100 = vector.load %arg4[%c128_63, %c0_64] : memref<1024x512xbf16, #tpu.memory_space<vmem>>, vector<128x512xbf16>
    %cst_65 = arith.constant dense<0.000000e+00> : vector<16x512xf32>
    %101 = tpu.matmul %99, %100, %cst_65 {dimension_numbers = #tpu.dot_dimension_numbers<[1], [0], [0], [1], [0, 0, 1, 1], [], []>} : vector<16x128xbf16>, vector<128x512xbf16>, vector<16x512xf32> -> vector<16x512xf32>
    %102 = arith.addf %89, %101 : vector<16x512xf32>
    %c0_66 = arith.constant 0 : index
    %c256 = arith.constant 256 : index
    %103 = vector.load %arg17[%c0_66, %c256] : memref<16x1024xf32, #tpu.memory_space<vmem>>, vector<16x128xf32>
    %104 = arith.truncf %103 : vector<16x128xf32> to vector<16x128xbf16>
    %c0_67 = arith.constant 0 : index
    %c0_68 = arith.constant 0 : index
    %105 = vector.load %arg2[%c0_67, %c0_68] : memref<128x128xbf16, #tpu.memory_space<vmem>>, vector<128x128xbf16>
    %cst_69 = arith.constant dense<0.000000e+00> : vector<16x128xf32>
    %106 = tpu.matmul %104, %105, %cst_69 {dimension_numbers = #tpu.dot_dimension_numbers<[1], [0], [0], [1], [0, 0, 1, 1], [], []>} : vector<16x128xbf16>, vector<128x128xbf16>, vector<16x128xf32> -> vector<16x128xf32>
    %c0_70 = arith.constant 0 : index
    %c0_71 = arith.constant 0 : index
    %107 = vector.load %arg3[%c0_70, %c0_71] : memref<1x128xf32, #tpu.memory_space<vmem>>, vector<1x128xf32>
    %108 = vector.broadcast %107 : vector<1x128xf32> to vector<16x128xf32>
    %109 = arith.addf %106, %108 : vector<16x128xf32>
    %cst_72 = arith.constant 0.000000e+00 : f32
    %110 = vector.broadcast %cst_72 : f32 to vector<16x128xf32>
    %111 = arith.maximumf %109, %110 : vector<16x128xf32>
    %112 = arith.truncf %111 : vector<16x128xf32> to vector<16x128xbf16>
    %c256_73 = arith.constant 256 : index
    %c0_74 = arith.constant 0 : index
    %113 = vector.load %arg4[%c256_73, %c0_74] : memref<1024x512xbf16, #tpu.memory_space<vmem>>, vector<128x512xbf16>
    %cst_75 = arith.constant dense<0.000000e+00> : vector<16x512xf32>
    %114 = tpu.matmul %112, %113, %cst_75 {dimension_numbers = #tpu.dot_dimension_numbers<[1], [0], [0], [1], [0, 0, 1, 1], [], []>} : vector<16x128xbf16>, vector<128x512xbf16>, vector<16x512xf32> -> vector<16x512xf32>
    %115 = arith.addf %102, %114 : vector<16x512xf32>
    %c0_76 = arith.constant 0 : index
    %c384 = arith.constant 384 : index
    %116 = vector.load %arg17[%c0_76, %c384] : memref<16x1024xf32, #tpu.memory_space<vmem>>, vector<16x128xf32>
    %117 = arith.truncf %116 : vector<16x128xf32> to vector<16x128xbf16>
    %c0_77 = arith.constant 0 : index
    %c0_78 = arith.constant 0 : index
    %118 = vector.load %arg2[%c0_77, %c0_78] : memref<128x128xbf16, #tpu.memory_space<vmem>>, vector<128x128xbf16>
    %cst_79 = arith.constant dense<0.000000e+00> : vector<16x128xf32>
    %119 = tpu.matmul %117, %118, %cst_79 {dimension_numbers = #tpu.dot_dimension_numbers<[1], [0], [0], [1], [0, 0, 1, 1], [], []>} : vector<16x128xbf16>, vector<128x128xbf16>, vector<16x128xf32> -> vector<16x128xf32>
    %c0_80 = arith.constant 0 : index
    %c0_81 = arith.constant 0 : index
    %120 = vector.load %arg3[%c0_80, %c0_81] : memref<1x128xf32, #tpu.memory_space<vmem>>, vector<1x128xf32>
    %121 = vector.broadcast %120 : vector<1x128xf32> to vector<16x128xf32>
    %122 = arith.addf %119, %121 : vector<16x128xf32>
    %cst_82 = arith.constant 0.000000e+00 : f32
    %123 = vector.broadcast %cst_82 : f32 to vector<16x128xf32>
    %124 = arith.maximumf %122, %123 : vector<16x128xf32>
    %125 = arith.truncf %124 : vector<16x128xf32> to vector<16x128xbf16>
    %c384_83 = arith.constant 384 : index
    %c0_84 = arith.constant 0 : index
    %126 = vector.load %arg4[%c384_83, %c0_84] : memref<1024x512xbf16, #tpu.memory_space<vmem>>, vector<128x512xbf16>
    %cst_85 = arith.constant dense<0.000000e+00> : vector<16x512xf32>
    %127 = tpu.matmul %125, %126, %cst_85 {dimension_numbers = #tpu.dot_dimension_numbers<[1], [0], [0], [1], [0, 0, 1, 1], [], []>} : vector<16x128xbf16>, vector<128x512xbf16>, vector<16x512xf32> -> vector<16x512xf32>
    %128 = arith.addf %115, %127 : vector<16x512xf32>
    %c0_86 = arith.constant 0 : index
    %c512 = arith.constant 512 : index
    %129 = vector.load %arg17[%c0_86, %c512] : memref<16x1024xf32, #tpu.memory_space<vmem>>, vector<16x128xf32>
    %130 = arith.truncf %129 : vector<16x128xf32> to vector<16x128xbf16>
    %c0_87 = arith.constant 0 : index
    %c0_88 = arith.constant 0 : index
    %131 = vector.load %arg2[%c0_87, %c0_88] : memref<128x128xbf16, #tpu.memory_space<vmem>>, vector<128x128xbf16>
    %cst_89 = arith.constant dense<0.000000e+00> : vector<16x128xf32>
    %132 = tpu.matmul %130, %131, %cst_89 {dimension_numbers = #tpu.dot_dimension_numbers<[1], [0], [0], [1], [0, 0, 1, 1], [], []>} : vector<16x128xbf16>, vector<128x128xbf16>, vector<16x128xf32> -> vector<16x128xf32>
    %c0_90 = arith.constant 0 : index
    %c0_91 = arith.constant 0 : index
    %133 = vector.load %arg3[%c0_90, %c0_91] : memref<1x128xf32, #tpu.memory_space<vmem>>, vector<1x128xf32>
    %134 = vector.broadcast %133 : vector<1x128xf32> to vector<16x128xf32>
    %135 = arith.addf %132, %134 : vector<16x128xf32>
    %cst_92 = arith.constant 0.000000e+00 : f32
    %136 = vector.broadcast %cst_92 : f32 to vector<16x128xf32>
    %137 = arith.maximumf %135, %136 : vector<16x128xf32>
    %138 = arith.truncf %137 : vector<16x128xf32> to vector<16x128xbf16>
    %c512_93 = arith.constant 512 : index
    %c0_94 = arith.constant 0 : index
    %139 = vector.load %arg4[%c512_93, %c0_94] : memref<1024x512xbf16, #tpu.memory_space<vmem>>, vector<128x512xbf16>
    %cst_95 = arith.constant dense<0.000000e+00> : vector<16x512xf32>
    %140 = tpu.matmul %138, %139, %cst_95 {dimension_numbers = #tpu.dot_dimension_numbers<[1], [0], [0], [1], [0, 0, 1, 1], [], []>} : vector<16x128xbf16>, vector<128x512xbf16>, vector<16x512xf32> -> vector<16x512xf32>
    %141 = arith.addf %128, %140 : vector<16x512xf32>
    %c0_96 = arith.constant 0 : index
    %c640 = arith.constant 640 : index
    %142 = vector.load %arg17[%c0_96, %c640] : memref<16x1024xf32, #tpu.memory_space<vmem>>, vector<16x128xf32>
    %143 = arith.truncf %142 : vector<16x128xf32> to vector<16x128xbf16>
    %c0_97 = arith.constant 0 : index
    %c0_98 = arith.constant 0 : index
    %144 = vector.load %arg2[%c0_97, %c0_98] : memref<128x128xbf16, #tpu.memory_space<vmem>>, vector<128x128xbf16>
    %cst_99 = arith.constant dense<0.000000e+00> : vector<16x128xf32>
    %145 = tpu.matmul %143, %144, %cst_99 {dimension_numbers = #tpu.dot_dimension_numbers<[1], [0], [0], [1], [0, 0, 1, 1], [], []>} : vector<16x128xbf16>, vector<128x128xbf16>, vector<16x128xf32> -> vector<16x128xf32>
    %c0_100 = arith.constant 0 : index
    %c0_101 = arith.constant 0 : index
    %146 = vector.load %arg3[%c0_100, %c0_101] : memref<1x128xf32, #tpu.memory_space<vmem>>, vector<1x128xf32>
    %147 = vector.broadcast %146 : vector<1x128xf32> to vector<16x128xf32>
    %148 = arith.addf %145, %147 : vector<16x128xf32>
    %cst_102 = arith.constant 0.000000e+00 : f32
    %149 = vector.broadcast %cst_102 : f32 to vector<16x128xf32>
    %150 = arith.maximumf %148, %149 : vector<16x128xf32>
    %151 = arith.truncf %150 : vector<16x128xf32> to vector<16x128xbf16>
    %c640_103 = arith.constant 640 : index
    %c0_104 = arith.constant 0 : index
    %152 = vector.load %arg4[%c640_103, %c0_104] : memref<1024x512xbf16, #tpu.memory_space<vmem>>, vector<128x512xbf16>
    %cst_105 = arith.constant dense<0.000000e+00> : vector<16x512xf32>
    %153 = tpu.matmul %151, %152, %cst_105 {dimension_numbers = #tpu.dot_dimension_numbers<[1], [0], [0], [1], [0, 0, 1, 1], [], []>} : vector<16x128xbf16>, vector<128x512xbf16>, vector<16x512xf32> -> vector<16x512xf32>
    %154 = arith.addf %141, %153 : vector<16x512xf32>
    %c0_106 = arith.constant 0 : index
    %c768 = arith.constant 768 : index
    %155 = vector.load %arg17[%c0_106, %c768] : memref<16x1024xf32, #tpu.memory_space<vmem>>, vector<16x128xf32>
    %156 = arith.truncf %155 : vector<16x128xf32> to vector<16x128xbf16>
    %c0_107 = arith.constant 0 : index
    %c0_108 = arith.constant 0 : index
    %157 = vector.load %arg2[%c0_107, %c0_108] : memref<128x128xbf16, #tpu.memory_space<vmem>>, vector<128x128xbf16>
    %cst_109 = arith.constant dense<0.000000e+00> : vector<16x128xf32>
    %158 = tpu.matmul %156, %157, %cst_109 {dimension_numbers = #tpu.dot_dimension_numbers<[1], [0], [0], [1], [0, 0, 1, 1], [], []>} : vector<16x128xbf16>, vector<128x128xbf16>, vector<16x128xf32> -> vector<16x128xf32>
    %c0_110 = arith.constant 0 : index
    %c0_111 = arith.constant 0 : index
    %159 = vector.load %arg3[%c0_110, %c0_111] : memref<1x128xf32, #tpu.memory_space<vmem>>, vector<1x128xf32>
    %160 = vector.broadcast %159 : vector<1x128xf32> to vector<16x128xf32>
    %161 = arith.addf %158, %160 : vector<16x128xf32>
    %cst_112 = arith.constant 0.000000e+00 : f32
    %162 = vector.broadcast %cst_112 : f32 to vector<16x128xf32>
    %163 = arith.maximumf %161, %162 : vector<16x128xf32>
    %164 = arith.truncf %163 : vector<16x128xf32> to vector<16x128xbf16>
    %c768_113 = arith.constant 768 : index
    %c0_114 = arith.constant 0 : index
    %165 = vector.load %arg4[%c768_113, %c0_114] : memref<1024x512xbf16, #tpu.memory_space<vmem>>, vector<128x512xbf16>
    %cst_115 = arith.constant dense<0.000000e+00> : vector<16x512xf32>
    %166 = tpu.matmul %164, %165, %cst_115 {dimension_numbers = #tpu.dot_dimension_numbers<[1], [0], [0], [1], [0, 0, 1, 1], [], []>} : vector<16x128xbf16>, vector<128x512xbf16>, vector<16x512xf32> -> vector<16x512xf32>
    %167 = arith.addf %154, %166 : vector<16x512xf32>
    %c0_116 = arith.constant 0 : index
    %c896 = arith.constant 896 : index
    %168 = vector.load %arg17[%c0_116, %c896] : memref<16x1024xf32, #tpu.memory_space<vmem>>, vector<16x128xf32>
    %169 = arith.truncf %168 : vector<16x128xf32> to vector<16x128xbf16>
    %c0_117 = arith.constant 0 : index
    %c0_118 = arith.constant 0 : index
    %170 = vector.load %arg2[%c0_117, %c0_118] : memref<128x128xbf16, #tpu.memory_space<vmem>>, vector<128x128xbf16>
    %cst_119 = arith.constant dense<0.000000e+00> : vector<16x128xf32>
    %171 = tpu.matmul %169, %170, %cst_119 {dimension_numbers = #tpu.dot_dimension_numbers<[1], [0], [0], [1], [0, 0, 1, 1], [], []>} : vector<16x128xbf16>, vector<128x128xbf16>, vector<16x128xf32> -> vector<16x128xf32>
    %c0_120 = arith.constant 0 : index
    %c0_121 = arith.constant 0 : index
    %172 = vector.load %arg3[%c0_120, %c0_121] : memref<1x128xf32, #tpu.memory_space<vmem>>, vector<1x128xf32>
    %173 = vector.broadcast %172 : vector<1x128xf32> to vector<16x128xf32>
    %174 = arith.addf %171, %173 : vector<16x128xf32>
    %cst_122 = arith.constant 0.000000e+00 : f32
    %175 = vector.broadcast %cst_122 : f32 to vector<16x128xf32>
    %176 = arith.maximumf %174, %175 : vector<16x128xf32>
    %177 = arith.truncf %176 : vector<16x128xf32> to vector<16x128xbf16>
    %c896_123 = arith.constant 896 : index
    %c0_124 = arith.constant 0 : index
    %178 = vector.load %arg4[%c896_123, %c0_124] : memref<1024x512xbf16, #tpu.memory_space<vmem>>, vector<128x512xbf16>
    %cst_125 = arith.constant dense<0.000000e+00> : vector<16x512xf32>
    %179 = tpu.matmul %177, %178, %cst_125 {dimension_numbers = #tpu.dot_dimension_numbers<[1], [0], [0], [1], [0, 0, 1, 1], [], []>} : vector<16x128xbf16>, vector<128x512xbf16>, vector<16x512xf32> -> vector<16x512xf32>
    %180 = arith.addf %167, %179 : vector<16x512xf32>
    %c0_126 = arith.constant 0 : index
    %c0_127 = arith.constant 0 : index
    %181 = vector.load %arg5[%c0_126, %c0_127] : memref<1x512xf32, #tpu.memory_space<vmem>>, vector<1x512xf32>
    %182 = vector.broadcast %181 : vector<1x512xf32> to vector<16x512xf32>
    %183 = arith.addf %180, %182 : vector<16x512xf32>
    %c0_128 = arith.constant 0 : index
    %c0_129 = arith.constant 0 : index
    %184 = vector.load %arg18[%c0_128, %c0_129] : memref<16x512xf32, #tpu.memory_space<vmem>>, vector<16x512xf32>
    tpu.vector_store %arg18[%c0_128, %c0_129], %183 {strides = array<i32>} : memref<16x512xf32, #tpu.memory_space<vmem>>, vector<16x512xf32>,
    %c0_130 = arith.constant 0 : index
    %c0_131 = arith.constant 0 : index
    %185 = vector.load %arg18[%c0_130, %c0_131] : memref<16x512xf32, #tpu.memory_space<vmem>>, vector<4x512xf32>
    %cst_132 = arith.constant dense<0.000000e+00> : vector<4x512xf32>
    %186 = tpu.matmul %13, %185, %cst_132 {dimension_numbers = #tpu.dot_dimension_numbers<[1], [0], [0], [1], [0, 0, 1, 1], [], []>} : vector<4x4xf32>, vector<4x512xf32>, vector<4x512xf32> -> vector<4x512xf32>
    %c0_133 = arith.constant 0 : index
    %c0_134 = arith.constant 0 : index
    %187 = vector.load %arg19[%c0_133, %c0_134] : memref<16x512xf32, #tpu.memory_space<vmem>>, vector<4x512xf32>
    tpu.vector_store %arg19[%c0_133, %c0_134], %186 {strides = array<i32>} : memref<16x512xf32, #tpu.memory_space<vmem>>, vector<4x512xf32>,
    %c4_135 = arith.constant 4 : index
    %c0_136 = arith.constant 0 : index
    %188 = vector.load %arg18[%c4_135, %c0_136] : memref<16x512xf32, #tpu.memory_space<vmem>>, vector<4x512xf32>
    %cst_137 = arith.constant dense<0.000000e+00> : vector<4x512xf32>
    %189 = tpu.matmul %32, %188, %cst_137 {dimension_numbers = #tpu.dot_dimension_numbers<[1], [0], [0], [1], [0, 0, 1, 1], [], []>} : vector<4x4xf32>, vector<4x512xf32>, vector<4x512xf32> -> vector<4x512xf32>
    %c4_138 = arith.constant 4 : index
    %c0_139 = arith.constant 0 : index
    %190 = vector.load %arg19[%c4_138, %c0_139] : memref<16x512xf32, #tpu.memory_space<vmem>>, vector<4x512xf32>
    tpu.vector_store %arg19[%c4_138, %c0_139], %189 {strides = array<i32>} : memref<16x512xf32, #tpu.memory_space<vmem>>, vector<4x512xf32>,
    %c8_140 = arith.constant 8 : index
    %c0_141 = arith.constant 0 : index
    %191 = vector.load %arg18[%c8_140, %c0_141] : memref<16x512xf32, #tpu.memory_space<vmem>>, vector<4x512xf32>
    %cst_142 = arith.constant dense<0.000000e+00> : vector<4x512xf32>
    %192 = tpu.matmul %51, %191, %cst_142 {dimension_numbers = #tpu.dot_dimension_numbers<[1], [0], [0], [1], [0, 0, 1, 1], [], []>} : vector<4x4xf32>, vector<4x512xf32>, vector<4x512xf32> -> vector<4x512xf32>
    %c8_143 = arith.constant 8 : index
    %c0_144 = arith.constant 0 : index
    %193 = vector.load %arg19[%c8_143, %c0_144] : memref<16x512xf32, #tpu.memory_space<vmem>>, vector<4x512xf32>
    tpu.vector_store %arg19[%c8_143, %c0_144], %192 {strides = array<i32>} : memref<16x512xf32, #tpu.memory_space<vmem>>, vector<4x512xf32>,
    %c12_145 = arith.constant 12 : index
    %c0_146 = arith.constant 0 : index
    %194 = vector.load %arg18[%c12_145, %c0_146] : memref<16x512xf32, #tpu.memory_space<vmem>>, vector<4x512xf32>
    %cst_147 = arith.constant dense<0.000000e+00> : vector<4x512xf32>
    %195 = tpu.matmul %70, %194, %cst_147 {dimension_numbers = #tpu.dot_dimension_numbers<[1], [0], [0], [1], [0, 0, 1, 1], [], []>} : vector<4x4xf32>, vector<4x512xf32>, vector<4x512xf32> -> vector<4x512xf32>
    %c12_148 = arith.constant 12 : index
    %c0_149 = arith.constant 0 : index
    %196 = vector.load %arg19[%c12_148, %c0_149] : memref<16x512xf32, #tpu.memory_space<vmem>>, vector<4x512xf32>
    tpu.vector_store %arg19[%c12_148, %c0_149], %195 {strides = array<i32>} : memref<16x512xf32, #tpu.memory_space<vmem>>, vector<4x512xf32>,
    %cst_150 = arith.constant 0.000000e+00 : f32
    %197 = vector.broadcast %cst_150 : f32 to vector<16x256xf32>
    %c0_151 = arith.constant 0 : index
    %c0_152 = arith.constant 0 : index
    %198 = vector.load %arg19[%c0_151, %c0_152] : memref<16x512xf32, #tpu.memory_space<vmem>>, vector<16x128xf32>
    %199 = arith.truncf %198 : vector<16x128xf32> to vector<16x128xbf16>
    %c0_153 = arith.constant 0 : index
    %c0_154 = arith.constant 0 : index
    %200 = vector.load %arg6[%c0_153, %c0_154] : memref<128x128xbf16, #tpu.memory_space<vmem>>, vector<128x128xbf16>
    %cst_155 = arith.constant dense<0.000000e+00> : vector<16x128xf32>
    %201 = tpu.matmul %199, %200, %cst_155 {dimension_numbers = #tpu.dot_dimension_numbers<[1], [0], [0], [1], [0, 0, 1, 1], [], []>} : vector<16x128xbf16>, vector<128x128xbf16>, vector<16x128xf32> -> vector<16x128xf32>
    %c0_156 = arith.constant 0 : index
    %c0_157 = arith.constant 0 : index
    %202 = vector.load %arg7[%c0_156, %c0_157] : memref<1x128xf32, #tpu.memory_space<vmem>>, vector<1x128xf32>
    %203 = vector.broadcast %202 : vector<1x128xf32> to vector<16x128xf32>
    %204 = arith.addf %201, %203 : vector<16x128xf32>
    %cst_158 = arith.constant 0.000000e+00 : f32
    %205 = vector.broadcast %cst_158 : f32 to vector<16x128xf32>
    %206 = arith.maximumf %204, %205 : vector<16x128xf32>
    %207 = arith.truncf %206 : vector<16x128xf32> to vector<16x128xbf16>
    %c0_159 = arith.constant 0 : index
    %c0_160 = arith.constant 0 : index
    %208 = vector.load %arg8[%c0_159, %c0_160] : memref<512x256xbf16, #tpu.memory_space<vmem>>, vector<128x256xbf16>
    %cst_161 = arith.constant dense<0.000000e+00> : vector<16x256xf32>
    %209 = tpu.matmul %207, %208, %cst_161 {dimension_numbers = #tpu.dot_dimension_numbers<[1], [0], [0], [1], [0, 0, 1, 1], [], []>} : vector<16x128xbf16>, vector<128x256xbf16>, vector<16x256xf32> -> vector<16x256xf32>
    %210 = arith.addf %197, %209 : vector<16x256xf32>
    %c0_162 = arith.constant 0 : index
    %c128_163 = arith.constant 128 : index
    %211 = vector.load %arg19[%c0_162, %c128_163] : memref<16x512xf32, #tpu.memory_space<vmem>>, vector<16x128xf32>
    %212 = arith.truncf %211 : vector<16x128xf32> to vector<16x128xbf16>
    %c0_164 = arith.constant 0 : index
    %c0_165 = arith.constant 0 : index
    %213 = vector.load %arg6[%c0_164, %c0_165] : memref<128x128xbf16, #tpu.memory_space<vmem>>, vector<128x128xbf16>
    %cst_166 = arith.constant dense<0.000000e+00> : vector<16x128xf32>
    %214 = tpu.matmul %212, %213, %cst_166 {dimension_numbers = #tpu.dot_dimension_numbers<[1], [0], [0], [1], [0, 0, 1, 1], [], []>} : vector<16x128xbf16>, vector<128x128xbf16>, vector<16x128xf32> -> vector<16x128xf32>
    %c0_167 = arith.constant 0 : index
    %c0_168 = arith.constant 0 : index
    %215 = vector.load %arg7[%c0_167, %c0_168] : memref<1x128xf32, #tpu.memory_space<vmem>>, vector<1x128xf32>
    %216 = vector.broadcast %215 : vector<1x128xf32> to vector<16x128xf32>
    %217 = arith.addf %214, %216 : vector<16x128xf32>
    %cst_169 = arith.constant 0.000000e+00 : f32
    %218 = vector.broadcast %cst_169 : f32 to vector<16x128xf32>
    %219 = arith.maximumf %217, %218 : vector<16x128xf32>
    %220 = arith.truncf %219 : vector<16x128xf32> to vector<16x128xbf16>
    %c128_170 = arith.constant 128 : index
    %c0_171 = arith.constant 0 : index
    %221 = vector.load %arg8[%c128_170, %c0_171] : memref<512x256xbf16, #tpu.memory_space<vmem>>, vector<128x256xbf16>
    %cst_172 = arith.constant dense<0.000000e+00> : vector<16x256xf32>
    %222 = tpu.matmul %220, %221, %cst_172 {dimension_numbers = #tpu.dot_dimension_numbers<[1], [0], [0], [1], [0, 0, 1, 1], [], []>} : vector<16x128xbf16>, vector<128x256xbf16>, vector<16x256xf32> -> vector<16x256xf32>
    %223 = arith.addf %210, %222 : vector<16x256xf32>
    %c0_173 = arith.constant 0 : index
    %c256_174 = arith.constant 256 : index
    %224 = vector.load %arg19[%c0_173, %c256_174] : memref<16x512xf32, #tpu.memory_space<vmem>>, vector<16x128xf32>
    %225 = arith.truncf %224 : vector<16x128xf32> to vector<16x128xbf16>
    %c0_175 = arith.constant 0 : index
    %c0_176 = arith.constant 0 : index
    %226 = vector.load %arg6[%c0_175, %c0_176] : memref<128x128xbf16, #tpu.memory_space<vmem>>, vector<128x128xbf16>
    %cst_177 = arith.constant dense<0.000000e+00> : vector<16x128xf32>
    %227 = tpu.matmul %225, %226, %cst_177 {dimension_numbers = #tpu.dot_dimension_numbers<[1], [0], [0], [1], [0, 0, 1, 1], [], []>} : vector<16x128xbf16>, vector<128x128xbf16>, vector<16x128xf32> -> vector<16x128xf32>
    %c0_178 = arith.constant 0 : index
    %c0_179 = arith.constant 0 : index
    %228 = vector.load %arg7[%c0_178, %c0_179] : memref<1x128xf32, #tpu.memory_space<vmem>>, vector<1x128xf32>
    %229 = vector.broadcast %228 : vector<1x128xf32> to vector<16x128xf32>
    %230 = arith.addf %227, %229 : vector<16x128xf32>
    %cst_180 = arith.constant 0.000000e+00 : f32
    %231 = vector.broadcast %cst_180 : f32 to vector<16x128xf32>
    %232 = arith.maximumf %230, %231 : vector<16x128xf32>
    %233 = arith.truncf %232 : vector<16x128xf32> to vector<16x128xbf16>
    %c256_181 = arith.constant 256 : index
    %c0_182 = arith.constant 0 : index
    %234 = vector.load %arg8[%c256_181, %c0_182] : memref<512x256xbf16, #tpu.memory_space<vmem>>, vector<128x256xbf16>
    %cst_183 = arith.constant dense<0.000000e+00> : vector<16x256xf32>
    %235 = tpu.matmul %233, %234, %cst_183 {dimension_numbers = #tpu.dot_dimension_numbers<[1], [0], [0], [1], [0, 0, 1, 1], [], []>} : vector<16x128xbf16>, vector<128x256xbf16>, vector<16x256xf32> -> vector<16x256xf32>
    %236 = arith.addf %223, %235 : vector<16x256xf32>
    %c0_184 = arith.constant 0 : index
    %c384_185 = arith.constant 384 : index
    %237 = vector.load %arg19[%c0_184, %c384_185] : memref<16x512xf32, #tpu.memory_space<vmem>>, vector<16x128xf32>
    %238 = arith.truncf %237 : vector<16x128xf32> to vector<16x128xbf16>
    %c0_186 = arith.constant 0 : index
    %c0_187 = arith.constant 0 : index
    %239 = vector.load %arg6[%c0_186, %c0_187] : memref<128x128xbf16, #tpu.memory_space<vmem>>, vector<128x128xbf16>
    %cst_188 = arith.constant dense<0.000000e+00> : vector<16x128xf32>
    %240 = tpu.matmul %238, %239, %cst_188 {dimension_numbers = #tpu.dot_dimension_numbers<[1], [0], [0], [1], [0, 0, 1, 1], [], []>} : vector<16x128xbf16>, vector<128x128xbf16>, vector<16x128xf32> -> vector<16x128xf32>
    %c0_189 = arith.constant 0 : index
    %c0_190 = arith.constant 0 : index
    %241 = vector.load %arg7[%c0_189, %c0_190] : memref<1x128xf32, #tpu.memory_space<vmem>>, vector<1x128xf32>
    %242 = vector.broadcast %241 : vector<1x128xf32> to vector<16x128xf32>
    %243 = arith.addf %240, %242 : vector<16x128xf32>
    %cst_191 = arith.constant 0.000000e+00 : f32
    %244 = vector.broadcast %cst_191 : f32 to vector<16x128xf32>
    %245 = arith.maximumf %243, %244 : vector<16x128xf32>
    %246 = arith.truncf %245 : vector<16x128xf32> to vector<16x128xbf16>
    %c384_192 = arith.constant 384 : index
    %c0_193 = arith.constant 0 : index
    %247 = vector.load %arg8[%c384_192, %c0_193] : memref<512x256xbf16, #tpu.memory_space<vmem>>, vector<128x256xbf16>
    %cst_194 = arith.constant dense<0.000000e+00> : vector<16x256xf32>
    %248 = tpu.matmul %246, %247, %cst_194 {dimension_numbers = #tpu.dot_dimension_numbers<[1], [0], [0], [1], [0, 0, 1, 1], [], []>} : vector<16x128xbf16>, vector<128x256xbf16>, vector<16x256xf32> -> vector<16x256xf32>
    %249 = arith.addf %236, %248 : vector<16x256xf32>
    %c0_195 = arith.constant 0 : index
    %c0_196 = arith.constant 0 : index
    %250 = vector.load %arg9[%c0_195, %c0_196] : memref<1x256xf32, #tpu.memory_space<vmem>>, vector<1x256xf32>
    %251 = vector.broadcast %250 : vector<1x256xf32> to vector<16x256xf32>
    %252 = arith.addf %249, %251 : vector<16x256xf32>
    %c0_197 = arith.constant 0 : index
    %c0_198 = arith.constant 0 : index
    %253 = vector.load %arg10[%c0_197, %c0_198] : memref<4x16xf32, #tpu.memory_space<vmem>>, vector<4x16xf32>
    %cst_199 = arith.constant dense<0.000000e+00> : vector<4x256xf32>
    %254 = tpu.matmul %253, %252, %cst_199 {dimension_numbers = #tpu.dot_dimension_numbers<[1], [0], [0], [1], [0, 0, 1, 1], [], []>} : vector<4x16xf32>, vector<16x256xf32>, vector<4x256xf32> -> vector<4x256xf32>
    %255 = arith.truncf %254 : vector<4x256xf32> to vector<4x256xbf16>
    %c0_200 = arith.constant 0 : index
    %c0_201 = arith.constant 0 : index
    %256 = vector.load %arg11[%c0_200, %c0_201] : memref<256x32xbf16, #tpu.memory_space<vmem>>, vector<256x32xbf16>
    %cst_202 = arith.constant dense<0.000000e+00> : vector<4x32xf32>
    %257 = tpu.matmul %255, %256, %cst_202 {dimension_numbers = #tpu.dot_dimension_numbers<[1], [0], [0], [1], [0, 0, 1, 1], [], []>} : vector<4x256xbf16>, vector<256x32xbf16>, vector<4x32xf32> -> vector<4x32xf32>
    %c0_203 = arith.constant 0 : index
    %c0_204 = arith.constant 0 : index
    %258 = vector.load %arg12[%c0_203, %c0_204] : memref<1x32xf32, #tpu.memory_space<vmem>>, vector<1x32xf32>
    %259 = vector.broadcast %258 : vector<1x32xf32> to vector<4x32xf32>
    %260 = arith.addf %257, %259 : vector<4x32xf32>
    %cst_205 = arith.constant 0.000000e+00 : f32
    %261 = vector.broadcast %cst_205 : f32 to vector<4x32xf32>
    %262 = arith.maximumf %260, %261 : vector<4x32xf32>
    %c0_206 = arith.constant 0 : index
    %c0_207 = arith.constant 0 : index
    %263 = vector.load %arg13[%c0_206, %c0_207] : memref<32x5xf32, #tpu.memory_space<vmem>>, vector<32x5xf32>
    %cst_208 = arith.constant dense<0.000000e+00> : vector<4x5xf32>
    %264 = tpu.matmul %262, %263, %cst_208 {dimension_numbers = #tpu.dot_dimension_numbers<[1], [0], [0], [1], [0, 0, 1, 1], [], []>} : vector<4x32xf32>, vector<32x5xf32>, vector<4x5xf32> -> vector<4x5xf32>
    %c0_209 = arith.constant 0 : index
    %c0_210 = arith.constant 0 : index
    %265 = vector.load %arg14[%c0_209, %c0_210] : memref<1x5xf32, #tpu.memory_space<vmem>>, vector<1x5xf32>
    %266 = vector.broadcast %265 : vector<1x5xf32> to vector<4x5xf32>
    %267 = arith.addf %264, %266 : vector<4x5xf32>
    %c0_211 = arith.constant 0 : index
    %c0_212 = arith.constant 0 : index
    %c0_213 = arith.constant 0 : index
    %268 = vector.load %arg16[%c0_211, %c0_212, %c0_213] : memref<1x4x5xf32, #tpu.memory_space<vmem>>, vector<1x4x5xf32>
    %269 = vector.shape_cast %268 : vector<1x4x5xf32> to vector<4x5xf32>
    %270 = vector.shape_cast %267 : vector<4x5xf32> to vector<1x4x5xf32>
    tpu.vector_store %arg16[%c0_211, %c0_212, %c0_213], %270 {strides = array<i32>} : memref<1x4x5xf32, #tpu.memory_space<vmem>>, vector<1x4x5xf32>,
    return
  }
  func.func @transform_0(%arg0: i32) -> (i32, i32, i32) {
    %c0_i32 = arith.constant 0 : i32
    %c0_i32_0 = arith.constant 0 : i32
    %c0_i32_1 = arith.constant 0 : i32
    return %arg0, %c0_i32, %c0_i32_0 : i32, i32, i32
  }
  func.func @transform_1(%arg0: i32) -> (i32, i32) {
    %c0_i32 = arith.constant 0 : i32
    %c0_i32_0 = arith.constant 0 : i32
    %c0_i32_1 = arith.constant 0 : i32
    return %c0_i32, %c0_i32_0 : i32, i32
  }
  func.func @transform_2(%arg0: i32) -> (i32, i32) {
    %c0_i32 = arith.constant 0 : i32
    %c0_i32_0 = arith.constant 0 : i32
    %c0_i32_1 = arith.constant 0 : i32
    return %c0_i32, %c0_i32_0 : i32, i32
  }
  func.func @transform_3(%arg0: i32) -> (i32, i32) {
    %c0_i32 = arith.constant 0 : i32
    %c0_i32_0 = arith.constant 0 : i32
    %c0_i32_1 = arith.constant 0 : i32
    return %c0_i32, %c0_i32_0 : i32, i32
  }
  func.func @transform_4(%arg0: i32) -> (i32, i32) {
    %c0_i32 = arith.constant 0 : i32
    %c0_i32_0 = arith.constant 0 : i32
    %c0_i32_1 = arith.constant 0 : i32
    return %c0_i32, %c0_i32_0 : i32, i32
  }
  func.func @transform_5(%arg0: i32) -> (i32, i32) {
    %c0_i32 = arith.constant 0 : i32
    %c0_i32_0 = arith.constant 0 : i32
    %c0_i32_1 = arith.constant 0 : i32
    return %c0_i32, %c0_i32_0 : i32, i32
  }
  func.func @transform_6(%arg0: i32) -> (i32, i32) {
    %c0_i32 = arith.constant 0 : i32
    %c0_i32_0 = arith.constant 0 : i32
    %c0_i32_1 = arith.constant 0 : i32
    return %c0_i32, %c0_i32_0 : i32, i32
  }
  func.func @transform_7(%arg0: i32) -> (i32, i32) {
    %c0_i32 = arith.constant 0 : i32
    %c0_i32_0 = arith.constant 0 : i32
    %c0_i32_1 = arith.constant 0 : i32
    return %c0_i32, %c0_i32_0 : i32, i32
  }
  func.func @transform_8(%arg0: i32) -> (i32, i32) {
    %c0_i32 = arith.constant 0 : i32
    %c0_i32_0 = arith.constant 0 : i32
    %c0_i32_1 = arith.constant 0 : i32
    return %c0_i32, %c0_i32_0 : i32, i32
  }
  func.func @transform_9(%arg0: i32) -> (i32, i32) {
    %c0_i32 = arith.constant 0 : i32
    %c0_i32_0 = arith.constant 0 : i32
    %c0_i32_1 = arith.constant 0 : i32
    return %c0_i32, %c0_i32_0 : i32, i32
  }
  func.func @transform_10(%arg0: i32) -> (i32, i32) {
    %c0_i32 = arith.constant 0 : i32
    %c0_i32_0 = arith.constant 0 : i32
    %c0_i32_1 = arith.constant 0 : i32
    return %c0_i32, %c0_i32_0 : i32, i32
  }
  func.func @transform_11(%arg0: i32) -> (i32, i32) {
    %c0_i32 = arith.constant 0 : i32
    %c0_i32_0 = arith.constant 0 : i32
    %c0_i32_1 = arith.constant 0 : i32
    return %c0_i32, %c0_i32_0 : i32, i32
  }
  func.func @transform_12(%arg0: i32) -> (i32, i32) {
    %c0_i32 = arith.constant 0 : i32
    %c0_i32_0 = arith.constant 0 : i32
    %c0_i32_1 = arith.constant 0 : i32
    return %c0_i32, %c0_i32_0 : i32, i32
  }
  func.func @transform_13(%arg0: i32) -> (i32, i32) {
    %c0_i32 = arith.constant 0 : i32
    %c0_i32_0 = arith.constant 0 : i32
    %c0_i32_1 = arith.constant 0 : i32
    return %c0_i32, %c0_i32_0 : i32, i32
  }
  func.func @transform_14(%arg0: i32) -> (i32, i32, i32) {
    %c0_i32 = arith.constant 0 : i32
    %c0_i32_0 = arith.constant 0 : i32
    %c0_i32_1 = arith.constant 0 : i32
    return %arg0, %c0_i32, %c0_i32_0 : i32, i32, i32
  }
  func.func @transform_15(%arg0: i32) -> (i32, i32, i32) {
    %c0_i32 = arith.constant 0 : i32
    %c0_i32_0 = arith.constant 0 : i32
    %c0_i32_1 = arith.constant 0 : i32
    return %arg0, %c0_i32, %c0_i32_0 : i32, i32, i32
  }
}

</mosaic_0001>

<bundles_post_ra>
// kernel: hdgsm_forward.1
= control target key start
LH: loop header
LB: loop body
LE: loop exit
PB: predicated region body
PF: predicated region fallthrough
CT: control target
= control target key end

     0   :  { %s11015_s0 = inlined_call_operand.vmem [shape: f32[8,4,1024], index: 0, kind: input, shape index: {}]   ;;  %s11016_s1 = inlined_call_operand.hbm [shape: bf16[128,128], index: 1, kind: input, shape index: {}]   ;;  %s11017_s2 = inlined_call_operand.vmem [shape: f32[1,128], index: 2, kind: input, shape index: {}]   ;;  %s11018_s3 = inlined_call_operand.hbm [shape: bf16[1024,512], index: 3, kind: input, shape index: {}]   ;;  %s11019_s4 = inlined_call_operand.hbm [shape: f32[1,512], index: 4, kind: input, shape index: {}]   ;;  %s11020_s5 = inlined_call_operand.hbm [shape: bf16[128,128], index: 5, kind: input, shape index: {}]   ;;  %s11021_s6 = inlined_call_operand.hbm [shape: f32[1,128], index: 6, kind: input, shape index: {}]   ;;  %s11022_s7 = inlined_call_operand.hbm [shape: bf16[512,256], index: 7, kind: input, shape index: {}]   ;;  %s11023_s8 = inlined_call_operand.vmem [shape: f32[1,256], index: 8, kind: input, shape index: {}]   ;;  %s11024_s9 = inlined_call_operand.vmem [shape: f32[4,16], index: 9, kind: input, shape index: {}]   ;;  %s11025_s10 = inlined_call_operand.vmem [shape: bf16[256,32], index: 10, kind: input, shape index: {}]   ;;  %s11026_s11 = inlined_call_operand.hbm [shape: f32[1,32], index: 11, kind: input, shape index: {}]   ;;  %s11027_s12 = inlined_call_operand.vmem [shape: f32[32,5], index: 12, kind: input, shape index: {}]   ;;  %s11028_s13 = inlined_call_operand.hbm [shape: f32[1,5], index: 13, kind: input, shape index: {}]   ;;  %s11029_s14 = inlined_call_operand.vmem [shape: f32[8,4,4], index: 14, kind: output, shape index: {0}]   ;;  %s11030_s15 = inlined_call_operand.hbm [shape: f32[2,4,5], index: 15, kind: output, shape index: {1}]  }
   0x1   :  { %11048 = sst [smem:[#allocation34_spill]] %s11018_s3 }
   0x2   :  { %11049 = sst [smem:[#allocation35_spill]] %s11024_s9 }
   0x3   :  { %11050 = sst [smem:[#allocation36_spill]] %s11025_s10 }
   0x4   :  { %11051 = sst [smem:[#allocation37_spill]] %s11027_s12 }
   0x5   :  { %11052 = sst [smem:[#allocation38_spill]] %s11030_s15 }
   0x6   :  { %21 = vsyncpa [#allocation6], 0 }
   0x7   :  { %22 = vsyncpa [#allocation9], 0 }
   0x8   :  { %23 = vsyncpa [#allocation12], 0 }
   0x9   :  { %24 = vsyncpa [#allocation15], 0 }
   0xa   :  { %25 = vsyncpa [#allocation18], 0 }
   0xb   :  { %26 = vsyncpa [#allocation7], 0 }
   0xc   :  { %28 = vsyncpa [#allocation7 + $0x1], 0  ;;  %s10016_s18 = smov 0   ;;  %s10018_s19 = smov 0  }
   0xd   :  { %s10020_s20 = smov 0   ;;  %s10022_s21 = smov 0  }
   0xe LB: > { %11053 = sst [smem:[#allocation26_spill]] %s9903_s18  ;;  %s10037_s22 = sadd.s32 4294967295, %s9915_s21   ;;  %s9915_s21 = sphi %s10022_s21, %s11091_s21   ;;  %s9911_s20 = sphi %s10020_s20, %s11094_s20   ;;  %s9907_s19 = sphi %s10018_s19, %s11093_s19   ;;  %s9903_s18 = sphi %s10016_s18, %s11092_s18  }
   0xf   : > { %11054 = sst [smem:[#allocation27_spill]] %s9907_s19  ;;  %s7962_s23 = sadd.s32 4294967294, %s9915_s21  }
  0x10   : > { %11055 = sst [smem:[#allocation28_spill]] %s9911_s20  ;;  %s10041_s24 = sadd.s32 1, %s9915_s21  }
  0x11   : > { %11056 = sst [smem:[#allocation29_spill]] %s9915_s21  ;;  %s366_s25 = sadd.s32 1, %s9911_s20 }
  0x12   : > { %11057 = sst [smem:[#allocation30_spill]] %s10041_s24  ;;  %s363_s26 = ssub.s32 %s9915_s21, %s10041_s24 }
  0x13   : > { %p376_p0 = scmp.ne.s32.totalorder %s9911_s20, %s9907_s19  ;;  %p364_p1 = scmp.eq.s32.totalorder %s363_s26, 0 }
  0x14   : > { %p377_p2 = scmp.eq.s32.totalorder %s10037_s22, 1  ;;  %p382_p3 = scmp.ne.s32.totalorder %s9907_s19, %s9903_s18 }
  0x15   : > { %p383_p4 = scmp.eq.s32.totalorder %s7962_s23, 1  ;;  %p7963_p7 = scmp.ge.s32.totalorder %s9915_s21, 1 }
  0x16   : > { %s10052_s27 = scalar_select %p364_p1, %s9911_s20, %s366_s25  }
  0x17   : > { %p10054_p5 = por %p377_p2, %p376_p0  ;;  %p10058_p6 = por %p383_p4, %p382_p3 }
  0x18   : > { %11058 = sst [smem:[#allocation31_spill]] %s10052_s27  ;;  %p390_p8 = scmp.lt.s32.totalorder %s9915_s21, 3 }
  0x19   : > { %s11059_s28 = scalar_select %p10054_p5, 1, 0 }
  0x1a   : > { %s11061_s29 = scalar_select %p10058_p6, 1, 0 }
  0x1b   : > { %11060 = sst [smem:[#allocation32_spill]] %s11059_s28  ;;  %p11038_p9 = scmp.eq.s32.totalorder %s10037_s22, 0 }
  0x1c   : > { %11062 = sst [smem:[#allocation33_spill]] %s11061_s29  ;;  %p10065_p10 = pnand %p7963_p7, %p390_p8 }
  0x1d   : > { %s9917_s16 = smov [#allocation8]   ;;  %s9918_s25 = smov [#allocation11]  }
  0x1e   : > { %s11063_s30 = scalar_select %p10065_p10, 1, 0 }
  0x1f   : > { %s418_s17 = sshll.u32 %s9917_s16, 4  ;;  %p8960_p11 = pneg %p10065_p10  ;;  %s419_s17 = int_to_ptr.vmem [resolvable:$true] %s418_s17 }
  0x20   : > { %s442_s26 = sshll.u32 %s9918_s25, 4  ;;  %s11065_s3 = sld [smem:[#allocation34_spill]]  ;;  %s443_s26 = int_to_ptr.vmem [resolvable:$true] %s442_s26 }
  0x21   : > { %p10073_p12 = pnand %p11038_p9, %p8960_p11 }
  0x23   : > { %p10085_p0 = pneg %p10073_p12 }
  0x26   : > { %s9609_s24 = scalar_lea.hbm %s11065_s3, 32768 }
  0x27   : > { %p9610_p13 = scmp.ne.s32.totalorder %s11065_s3, %s9609_s24  ;;  %p9616_p3 = scmp.lt.u32.totalorder %s9609_s24, %s11065_s3 }
  0x29   : > { %p9612_p1 = pnand %p10085_p0, %p9610_p13 }
  0x2b   : > { %p9613_p2 = pneg %p9612_p1 }
  0x2d   : > { %p9618_p4 = pnand %p9616_p3, %p9613_p2 }
  0x2f   : > { %9621 = shalt.err (!%p9618_p4)
}
  0x30   : > { %s9622_s20 = scalar_lea.vmem %s419_s17, 32768  ;;  %p9630_p9 = scmp.lt.s32.totalorder %s419_s17, %s419_s17 }
  0x31   : > { %p9623_p7 = scmp.ne.s32.totalorder %s419_s17, %s9622_s20  ;;  %p9631_p6 = scmp.lt.s32.totalorder %s9622_s20, %s9622_s20 }
  0x33   : > { %p9625_p8 = pnand %p9623_p7, %p10085_p0  ;;  %p9632_p5 = por %p9631_p6, %p9630_p9 }
  0x35   : > { %p9626_p11 = pneg %p9625_p8 }
  0x37   : > { %p9633_p10 = pnand %p9632_p5, %p9626_p11 }
  0x39   : > { %9636 = shalt.err (!%p9633_p10)
}
  0x3a   : > { %s9919_s18 = smov 256   ;;  %s9920_s27 = smov 16  }
  0x3b   : > { %8966 = dma.hbm_to_vmem [thread:$0]  (!%p10073_p12), %s11065_s3, 32768, %s419_s17, [#allocation9], %s9919_s18, %s9919_s18, %s9920_s27  }
  0x3c   : > { %s9921_s24 = smov [#allocation14]   ;;  %s9637_s19 = scalar_lea.hbm %s11020_s5, 1024 }
  0x3d   : > { %s466_s29 = sshll.u32 %s9921_s24, 4  ;;  %p9638_p5 = scmp.ne.s32.totalorder %s11020_s5, %s9637_s19  ;;  %s467_s29 = int_to_ptr.vmem [resolvable:$true] %s466_s29 }
  0x3e   : > { %p9644_p10 = scmp.lt.u32.totalorder %s9637_s19, %s11020_s5 }
  0x3f   : > { %p9640_p6 = pnand %p9638_p5, %p10085_p0 }
  0x41   : > { %p9641_p9 = pneg %p9640_p6 }
  0x43   : > { %p9646_p13 = pnand %p9644_p10, %p9641_p9 }
  0x45   : > { %9649 = shalt.err (!%p9646_p13)
}
  0x46   : > { %s9650_s17 = scalar_lea.vmem %s443_s26, 1024  ;;  %p9658_p4 = scmp.lt.s32.totalorder %s443_s26, %s443_s26 }
  0x47   : > { %p9651_p1 = scmp.ne.s32.totalorder %s443_s26, %s9650_s17  ;;  %p9659_p7 = scmp.lt.s32.totalorder %s9650_s17, %s9650_s17 }
  0x49   : > { %p9653_p2 = pnand %p9651_p1, %p10085_p0  ;;  %p9660_p8 = por %p9659_p7, %p9658_p4 }
  0x4b   : > { %p9654_p3 = pneg %p9653_p2 }
  0x4d   : > { %p9661_p11 = pnand %p9660_p8, %p9654_p3 }
  0x4f   : > { %9664 = shalt.err (!%p9661_p11)
}
  0x50   : > { %s11046_s12 = smov 64   ;;  %s11047_s28 = smov 4  }
  0x51   : > { %8972 = dma.hbm_to_vmem [thread:$0]  (!%p10073_p12), %s11020_s5, 1024, %s443_s26, [#allocation12], %s11046_s12, %s11046_s12, %s11047_s28  }
  0x52   : > { %s9665_s27 = scalar_lea.hbm %s11022_s7, 8192 }
  0x53   : > { %p9666_p5 = scmp.ne.s32.totalorder %s11022_s7, %s9665_s27  ;;  %p9672_p10 = scmp.lt.u32.totalorder %s9665_s27, %s11022_s7 }
  0x55   : > { %p9668_p6 = pnand %p9666_p5, %p10085_p0 }
  0x57   : > { %p9669_p9 = pneg %p9668_p6 }
  0x59   : > { %p9674_p13 = pnand %p9672_p10, %p9669_p9 }
  0x5b   : > { %9677 = shalt.err (!%p9674_p13)
}
  0x5c   : > { %s9678_s20 = scalar_lea.vmem %s467_s29, 8192  ;;  %p9686_p4 = scmp.lt.s32.totalorder %s467_s29, %s467_s29 }
  0x5d   : > { %p9679_p1 = scmp.ne.s32.totalorder %s467_s29, %s9678_s20  ;;  %p9687_p7 = scmp.lt.s32.totalorder %s9678_s20, %s9678_s20 }
  0x5f   : > { %p9681_p2 = pnand %p9679_p1, %p10085_p0  ;;  %p9688_p8 = por %p9687_p7, %p9686_p4 }
  0x61   : > { %p9682_p3 = pneg %p9681_p2 }
  0x63   : > { %p9689_p11 = pnand %p9688_p8, %p9682_p3 }
  0x65   : > { %9692 = shalt.err (!%p9689_p11)
}
  0x66   : > { %s9924_s26 = smov 128   ;;  %s9925_s17 = smov 8  }
  0x67   : > { %8978 = dma.hbm_to_vmem [thread:$0]  (!%p10073_p12), %s11022_s7, 8192, %s467_s29, [#allocation15], %s9924_s26, %s9924_s26, %s9925_s17  }
  0x68   : > { %s9926_s19 = smov [#allocation5]   ;;  %s9927_s27 = smov [#allocation10]  }
  0x69   : > { %s402_s18 = sshll.u32 %s9926_s19, 4  ;;  %s432_s15 = sshll.u32 %s9927_s27, 4  ;;  %s403_s18 = int_to_ptr.vmem [resolvable:$true] %s402_s18  ;;  %s433_s15 = int_to_ptr.vmem [resolvable:$true] %s432_s15 }
  0x6a   : > { %s9693_s25 = scalar_lea.hbm %s11016_s1, 1024 }
  0x6b   : > { %p9694_p5 = scmp.ne.s32.totalorder %s11016_s1, %s9693_s25  ;;  %p9700_p10 = scmp.lt.u32.totalorder %s9693_s25, %s11016_s1 }
  0x6d   : > { %p9696_p6 = pnand %p9694_p5, %p10085_p0 }
  0x6f   : > { %p9697_p9 = pneg %p9696_p6 }
  0x71   : > { %p9702_p13 = pnand %p9700_p10, %p9697_p9 }
  0x73   : > { %9705 = shalt.err (!%p9702_p13)
}
  0x74   : > { %s9706_s29 = scalar_lea.vmem %s403_s18, 1024  ;;  %p9714_p4 = scmp.lt.s32.totalorder %s403_s18, %s403_s18 }
  0x75   : > { %p9707_p1 = scmp.ne.s32.totalorder %s403_s18, %s9706_s29  ;;  %p9715_p7 = scmp.lt.s32.totalorder %s9706_s29, %s9706_s29 }
  0x77   : > { %p9709_p2 = pnand %p9707_p1, %p10085_p0  ;;  %p9716_p8 = por %p9715_p7, %p9714_p4 }
  0x79   : > { %p9710_p3 = pneg %p9709_p2 }
  0x7b   : > { %p9717_p11 = pnand %p9716_p8, %p9710_p3 }
  0x7d   : > { %9720 = shalt.err (!%p9717_p11)
}
  0x7e   : > { %s11067_s12 = smov 4   ;;  %s11068_s26 = smov 64  }
  0x7f   : > { %8963 = dma.hbm_to_vmem [thread:$0]  (!%p10073_p12), %s11016_s1, 1024, %s403_s18, [#allocation6], %s11068_s26, %s11068_s26, %s11067_s12  }
  0x80   : > { %s9721_s10 = scalar_lea.hbm %s11019_s4, 64 }
  0x81   : > { %p9722_p5 = scmp.ne.s32.totalorder %s11019_s4, %s9721_s10  ;;  %p9728_p10 = scmp.lt.u32.totalorder %s9721_s10, %s11019_s4 }
  0x83   : > { %p9724_p6 = pnand %p9722_p5, %p10085_p0 }
  0x85   : > { %p9725_p9 = pneg %p9724_p6 }
  0x87   : > { %p9730_p13 = pnand %p9728_p10, %p9725_p9 }
  0x89   : > { %9733 = shalt.err (!%p9730_p13)
}
  0x8a   : > { %s9734_s25 = scalar_lea.vmem %s433_s15, 64  ;;  %p9742_p4 = scmp.lt.s32.totalorder %s433_s15, %s433_s15 }
  0x8b   : > { %p9735_p1 = scmp.ne.s32.totalorder %s433_s15, %s9734_s25  ;;  %p9743_p7 = scmp.lt.s32.totalorder %s9734_s25, %s9734_s25 }
  0x8d   : > { %p9737_p2 = pnand %p9735_p1, %p10085_p0  ;;  %p9744_p8 = por %p9743_p7, %p9742_p4 }
  0x8f   : > { %p9738_p3 = pneg %p9737_p2 }
  0x91   : > { %p9745_p11 = pnand %p9744_p8, %p9738_p3 }
  0x93   : > { %9748 = shalt.err (!%p9745_p11)
}
  0x94   : > { %8969 = dma.hbm_to_vmem [thread:$0]  (!%p10073_p12), %s11019_s4, 64, %s433_s15, [#allocation9]  }
  0x95   : > { %s9928_s29 = smov [#allocation13]   ;;  %s9929_s26 = smov [#allocation16]  }
  0x96   : > { %s456_s12 = sshll.u32 %s9928_s29, 4  ;;  %s489_s3 = sshll.u32 %s9929_s26, 4  ;;  %s457_s12 = int_to_ptr.vmem [resolvable:$true] %s456_s12  ;;  %s490_s3 = int_to_ptr.vmem [resolvable:$true] %s489_s3 }
  0x97   : > { %s9749_s9 = scalar_lea.hbm %s11021_s6, 16 }
  0x98   : > { %p9750_p5 = scmp.ne.s32.totalorder %s11021_s6, %s9749_s9  ;;  %p9756_p10 = scmp.lt.u32.totalorder %s9749_s9, %s11021_s6 }
  0x9a   : > { %p9752_p6 = pnand %p9750_p5, %p10085_p0 }
  0x9c   : > { %p9753_p9 = pneg %p9752_p6 }
  0x9e   : > { %p9758_p13 = pnand %p9756_p10, %p9753_p9 }
  0xa0   : > { %9761 = shalt.err (!%p9758_p13)
}
  0xa1   : > { %s9762_s15 = scalar_lea.vmem %s457_s12, 16  ;;  %s9769_s24 = scalar_lea.vmem %s457_s12, 32 }
  0xa2   : > { %p9763_p1 = scmp.ne.s32.totalorder %s457_s12, %s9762_s15  ;;  %p9770_p4 = scmp.lt.s32.totalorder %s457_s12, %s457_s12 }
  0xa3   : > { %p9771_p7 = scmp.lt.s32.totalorder %s9769_s24, %s9762_s15 }
  0xa4   : > { %p9765_p2 = pnand %p9763_p1, %p10085_p0 }
  0xa5   : > { %p9772_p8 = por %p9771_p7, %p9770_p4 }
  0xa6   : > { %p9766_p3 = pneg %p9765_p2 }
  0xa8   : > { %p9773_p11 = pnand %p9772_p8, %p9766_p3 }
  0xaa   : > { %9776 = shalt.err (!%p9773_p11)
}
  0xab   : > { %8975 = dma.hbm_to_vmem [thread:$0]  (!%p10073_p12), %s11021_s6, 16, %s457_s12, [#allocation12]  }
  0xac   : > { %s9777_s26 = scalar_lea.hbm %s11026_s11, 16 }
  0xad   : > { %p9778_p5 = scmp.ne.s32.totalorder %s11026_s11, %s9777_s26  ;;  %p9784_p10 = scmp.lt.u32.totalorder %s9777_s26, %s11026_s11 }
  0xaf   : > { %p9780_p6 = pnand %p9778_p5, %p10085_p0 }
  0xb1   : > { %p9781_p9 = pneg %p9780_p6 }
  0xb3   : > { %p9786_p13 = pnand %p9784_p10, %p9781_p9 }
  0xb5   : > { %9789 = shalt.err (!%p9786_p13)
}
  0xb6   : > { %s9790_s19 = scalar_lea.vmem %s490_s3, 16  ;;  %s9797_s12 = scalar_lea.vmem %s490_s3, 32 }
  0xb7   : > { %p9791_p1 = scmp.ne.s32.totalorder %s490_s3, %s9790_s19  ;;  %p9798_p4 = scmp.lt.s32.totalorder %s490_s3, %s490_s3 }
  0xb8   : > { %p9799_p7 = scmp.lt.s32.totalorder %s9797_s12, %s9790_s19 }
  0xb9   : > { %p9793_p2 = pnand %p9791_p1, %p10085_p0 }
  0xba   : > { %p9800_p8 = por %p9799_p7, %p9798_p4 }
  0xbb   : > { %p9794_p3 = pneg %p9793_p2 }
  0xbd   : > { %p9801_p11 = pnand %p9800_p8, %p9794_p3 }
  0xbf   : > { %9804 = shalt.err (!%p9801_p11)
}
  0xc0   : > { %8981 = dma.hbm_to_vmem [thread:$0]  (!%p10073_p12), %s11026_s11, 16, %s490_s3, [#allocation15]  }
  0xc1   : > { %s9930_s15 = smov [#allocation17]   ;;  %s9805_s20 = scalar_lea.hbm %s11028_s13, 16 }
  0xc2   : > { %s503_s24 = sshll.u32 %s9930_s15, 4  ;;  %p9806_p5 = scmp.ne.s32.totalorder %s11028_s13, %s9805_s20  ;;  %s504_s24 = int_to_ptr.vmem [resolvable:$true] %s503_s24 }
  0xc3   : > { %p9812_p10 = scmp.lt.u32.totalorder %s9805_s20, %s11028_s13 }
  0xc4   : > { %p9808_p6 = pnand %p9806_p5, %p10085_p0 }
  0xc6   : > { %p9809_p9 = pneg %p9808_p6 }
  0xc8   : > { %p9814_p13 = pnand %p9812_p10, %p9809_p9 }
  0xca   : > { %9817 = shalt.err (!%p9814_p13)
}
  0xcb   : > { %s9818_s3 = scalar_lea.vmem %s504_s24, 16  ;;  %s9825_s9 = scalar_lea.vmem %s504_s24, 32 }
  0xcc   : > { %p9819_p1 = scmp.ne.s32.totalorder %s504_s24, %s9818_s3  ;;  %p9826_p4 = scmp.lt.s32.totalorder %s504_s24, %s504_s24 }
  0xcd   : > { %p9827_p7 = scmp.lt.s32.totalorder %s9825_s9, %s9818_s3 }
  0xce   : > { %p9821_p2 = pnand %p9819_p1, %p10085_p0 }
  0xcf   : > { %p9828_p8 = por %p9827_p7, %p9826_p4 }
  0xd0   : > { %p9822_p3 = pneg %p9821_p2 }
  0xd2   : > { %p9829_p11 = pnand %p9828_p8, %p9822_p3 }
  0xd4   : > { %9832 = shalt.err (!%p9829_p11)
}
  0xd5   : > { %8984 = dma.hbm_to_vmem [thread:$0]  (!%p10073_p12), %s11028_s13, 16, %s504_s24, [#allocation18]  }
  0xd6   : > { %p11069_p5 = scmp.ne.s32.totalorder %s11063_s30, 0 }
  0xd7   : > { %p11070_p6 = scmp.eq.s32.totalorder (!%p11069_p5), %s10037_s22, 0 }
  0xd8   : > { %526 = sbr.rel (%p11069_p5) target bundleno = 5075 (0x13d3), region = 76 }
  0xdf   : > { %9878 = dma.done.wait (%p11070_p6), [#allocation6], 1024   ;;  %p11071_p0 = pmov %p11070_p6 }
  0xe1   : > { %9880 = vsyncadd (%p11071_p0), [#allocation6], 4294966272  ;;  %p11072_p9 = pmov %p11071_p0 }
  0xe2   : > { %p11073_p10 = pmov %p11071_p0 }
  0xe3   : > { %9882 = dma.done.wait (%p11072_p9), [#allocation9], 32832  }
  0xe4   : > { %9884 = vsyncadd (%p11073_p10), [#allocation9], 4294934464  ;;  %p11074_p13 = pmov %p11071_p0 }
  0xe5   : > { %p11075_p12 = pmov %p11071_p0 }
  0xe6   : > { %9886 = dma.done.wait (%p11074_p13), [#allocation12], 1040  }
  0xe7   : > { %9888 = vsyncadd (%p11075_p12), [#allocation12], 4294966256  ;;  %p11076_p1 = pmov %p11071_p0 }
  0xe8   : > { %p11077_p2 = pmov %p11071_p0 }
  0xe9   : > { %9890 = dma.done.wait (%p11076_p1), [#allocation15], 8208  }
  0xea   : > { %9892 = vsyncadd (%p11077_p2), [#allocation15], 4294959088  ;;  %p11078_p3 = pmov %p11071_p0 }
  0xeb   : > { %p11079_p4 = pmov %p11071_p0 }
  0xec   : > { %9894 = dma.done.wait (%p11078_p3), [#allocation18], 16  }
  0xed   : > { %9896 = vsyncadd (%p11079_p4), [#allocation18], 4294967280  ;;  %s7983_s30 = sshll.u32 %s10037_s22, 2  ;;  %vm919_vm0 = vcmask 27648   ;;  %vm936_vm1 = vcmask 1043456   ;;  %v9931_v17 = vmov 0.0  }
  0xee   : > { %p609_p7 = scmp.lt.s32.totalorder %s7983_s30, 7  ;;  %1159 = vmatprep.mubr.f32.mxu1 %v9931_v17  ;;  %vm932_vm2 = vcmask 31744   ;;  %vm9932_vm3 = vmmov 0   ;;  %s11080_s10 = sld [smem:[#allocation36_spill]]  ;;  %vm7436_vm4 = vcmask 130048   ;;  %vm7700_vm5 = vcmask 261120  }
  0xef   : > { %s11082_s9 = sld [smem:[#allocation37_spill]]  ;;  %s8434_s18 = sshll.u32 %s10037_s22, 6  ;;  %vm7774_vm6 = vcmask 35840  }
  0xf0   : > { %s11096_s30 = smov (!%p609_p7, %s7983_s30), 7  ;;  %s11084_s24 = sld [smem:[#allocation32_spill]] }
  0xf1   : > { %s8437_s23 = sshll.u32 %s11096_s30, 5  ;;  %s7987_s21 = sshll.u32 %s11096_s30, 2 }
  0xf2   : > { %s10262_s27 = scalar_lea.vmem %s11015_s0, %s8437_s23  ;;  %s10283_s25 = scalar_lea.vmem %s11029_s14, %s7987_s21 }
  0xf3   : > { %v622_v0 = vld [vmem:[%s10262_s27] sm:$0xff]  ;;  %v623_v1 = vld [vmem:[%s10262_s27 + $0x8] sm:$0xff]  ;;  %v624_v4 = vld [vmem:[%s10262_s27 + $0x10] sm:$0xff]  ;;  %s11081_s23 = sld [smem:[#allocation35_spill]]  ;;  %s11085_s17 = sld [smem:[#allocation38_spill]] }
  0xf4   : > { %v630_v2 = vcombine.high %v622_v0, %v622_v0  ;;  %v631_v3 = vcombine.high %v623_v1, %v623_v1  ;;  %v632_v5 = vcombine.high %v624_v4, %v624_v4  ;;  %v625_v6 = vld [vmem:[%s10262_s27 + $0x18] sm:$0xff]  ;;  %v8000_v19 = vld [vmem:[%s10262_s27 + $0x20] sm:$0xff]  ;;  %v10297_v23 = vld [vmem:[%s10262_s27 + $0x28] sm:$0xff]  ;;  %s9935_s22 = smov [#allocation19]  }
  0xf5   : > { %v633_v7 = vcombine.high %v625_v6, %v625_v6  ;;  %v1254_v22 = vcombine.high %v8000_v19, %v8000_v19  ;;  %v1255_v24 = vcombine.high %v10297_v23, %v10297_v23  ;;  %v10310_v25 = vld [vmem:[%s10262_s27 + $0x30] sm:$0xff]  ;;  %v10321_v27 = vld [vmem:[%s10262_s27 + $0x38] sm:$0xff]  ;;  %v10332_v29 = vld [vmem:[%s10262_s27 + $0x40] sm:$0xff] }
  0xf6   : > { %638 = vmatprep.subr.mxu0 %v630_v2  ;;  %702 = vmatprep.mubr.f32.mxu0 %v630_v2  ;;  %v10316_v26 = vcombine.high %v10310_v25, %v10310_v25  ;;  %v10325_v28 = vcombine.high %v10321_v27, %v10321_v27  ;;  %v10336_v30 = vcombine.high %v10332_v29, %v10332_v29  ;;  %v10343_v31 = vld [vmem:[%s10262_s27 + $0x48] sm:$0xff]  ;;  %v10350_v33 = vld [vmem:[%s10262_s27 + $0x50] sm:$0xff]  ;;  %v10365_v35 = vld [vmem:[%s10262_s27 + $0x58] sm:$0xff]  ;;  %p11086_p11 = scmp.ne.s32.totalorder %s11084_s24, 0 }
  0xf7   : > { %639 = vmatpush1.xpose.msra.mxu0 %v622_v0  ;;  %7994 = vmatprep.subr.msk.mxu1 %vm936_vm1, %v632_v5  ;;  %v10347_v32 = vcombine.high %v10343_v31, %v10343_v31  ;;  %v10358_v34 = vcombine.high %v10350_v33, %v10350_v33  ;;  %v10369_v36 = vcombine.high %v10365_v35, %v10365_v35  ;;  %v10376_v37 = vld [vmem:[%s10262_s27 + $0x60] sm:$0xff]  ;;  %v10387_v39 = vld [vmem:[%s10262_s27 + $0x68] sm:$0xff]  ;;  %v10394_v41 = vld [vmem:[%s10262_s27 + $0x70] sm:$0xff] }
  0xf8   : > { %708 = vmatprep.subr.mxu0 %v631_v3  ;;  %7995 = vmatpush1.msk.msra.mxu1 %vm936_vm1, %v624_v4  ;;  %v10380_v38 = vcombine.high %v10376_v37, %v10376_v37  ;;  %v10391_v40 = vcombine.high %v10387_v39, %v10387_v39  ;;  %v10402_v42 = vcombine.high %v10394_v41, %v10394_v41  ;;  %v10409_v43 = vld [vmem:[%s10262_s27 + $0x78] sm:$0xff] }
  0xf9   : > { %7997 = vmatprep.subr.msk.mxu1 %vm936_vm1, %v633_v7  ;;  %v10413_v44 = vcombine.high %v10409_v43, %v10409_v43  ;;  %s10973_s3 = scalar_lea.hbm %s11085_s17, %s8434_s18 }
  0xfa   : > { %703 = vmatmul.mubr.f32.vlgmr.msra.gmra.mrb[0].mxu0 %v622_v0 }
  0xfb   : > { %709 = vmatpush1.xpose.msra.mxu0 %v623_v1  ;;  %772 = vmatprep.mubr.f32.mxu0 %v631_v3 }
  0xfc   : > { %778 = vmatprep.subr.mxu0 %v632_v5 }
 0x102   : > { %773 = vmatmul.mubr.f32.vlgmr.msra.gmra.mrb[0].mxu0 %v623_v1 }
 0x103   : > { %779 = vmatpush1.xpose.msra.mxu0 %v624_v4  ;;  %842 = vmatprep.mubr.f32.mxu0 %v632_v5 }
 0x104   : > { %848 = vmatprep.subr.mxu0 %v633_v7 }
 0x10a   : > { %843 = vmatmul.mubr.f32.vlgmr.msra.gmra.mrb[0].mxu0 %v624_v4 }
 0x10b   : > { %849 = vmatpush1.xpose.msra.mxu0 %v625_v6  ;;  %912 = vmatprep.mubr.f32.mxu0 %v633_v7 }
 0x10c   : > { %7988 = vmatprep.subr.msk.mxu0 %vm936_vm1, %v630_v2 }
 0x112   : > { %913 = vmatmul.mubr.f32.vlgmr.msra.gmra.mrb[0].mxu0 %v625_v6 }
 0x113   : > { %7989 = vmatpush1.msk.msra.mxu0 %vm936_vm1, %v622_v0  ;;  %1017 = vmatprep.mubr.f32.mxu0 %v9931_v17 }
 0x114   : > { %7991 = vmatprep.subr.msk.mxu0 %vm936_vm1, %v631_v3 }
 0x1e5   : > { %v914_v8 = vpop.f32.mrb[0].mxu0 }
 0x1e6   : > { %v918_v9 = vmul.f32 0.03125, %v914_v8  ;;  %v916_v10 = vpop.f32.mrb[1].mxu0 }
 0x1e8   : > { %v920_v11 = vsel %vm919_vm0, %v918_v9, -inf }
 0x1e9   : > { %921 = vmax.xlane.f32.xlu0 %v920_v11 }
 0x276   : > { %v922_v12 = vpop.xlane.xlu0 %921 }
 0x277   : > { %v923_v13 = vsub.f32 %v918_v9, %v922_v12 }
 0x279   : > { %v924_v14 = vmul.f32 1.442695, %v923_v13 }
 0x27b   : > { %9584 = vpow2.f32 %v924_v14 }
 0x285   : > { %v9585_v15 = vpop.eup %9584 }
 0x286   : > { %v926_v16 = vsel %vm919_vm0, %v9585_v15, 0.0 }
 0x287   : > { %927 = vadd.xlane.f32.xlu0 %v926_v16 }
 0x314   : > { %v928_v18 = vpop.xlane.xlu0 %927 }
 0x315   : > { %9586 = vrcp.f32 %v928_v18 }
 0x31f   : > { %v9587_v20 = vpop.eup %9586 }
 0x320   : > { %v10285_v21 = vmul.f32 %v9587_v20, %v9585_v15 }
 0x322   : > { %931 = vst.msk [vmem:[%s10283_s25] sm:$0xf] %vm919_vm0, %v10285_v21  ;;  %7990 = vmatmul.mubr.msk.f32.vlgmr.msra.gmra.mrb[2].mxu0 %vm932_vm2, %v10285_v21  ;;  %7996 = vmatmul.mubr.msk.f32.vlgmr.msra.gmra.mrb[0].mxu1 %vm932_vm2, %v10285_v21 }
 0x323   : > { %7998 = vmatpush1.msk.msra.mxu1 %vm936_vm1, %v625_v6  ;;  %7992 = vmatpush1.msk.msra.mxu0 %vm936_vm1, %v623_v1 }
 0x324   : > { %1088 = vmatprep.mubr.f32.mxu0 %v9931_v17  ;;  %1230 = vmatprep.mubr.f32.mxu1 %v9931_v17 }
 0x325   : > { %1262 = vmatprep.subr.mxu1 %v1254_v22  ;;  %8005 = vmatprep.subr.msk.mxu0 %vm936_vm1, %v1254_v22 }
 0x326   : > { %7993 = vmatmul.mubr.msk.f32.vlgmr.msra.gmra.mrb[4].mxu0 %vm932_vm2, %v10285_v21  ;;  %7999 = vmatmul.mubr.msk.f32.vlgmr.msra.gmra.mrb[2].mxu1 %vm932_vm2, %v10285_v21 }
 0x327   : > { %1326 = vmatprep.mubr.f32.mxu1 %v1254_v22  ;;  %8006 = vmatpush1.msk.msra.mxu0 %vm936_vm1, %v8000_v19 }
 0x328   : > { %1639 = vmatprep.mubr.f32.mxu0 %v9931_v17  ;;  %8008 = vmatprep.subr.msk.mxu0 %vm936_vm1, %v1255_v24 }
 0x32a   : > { %1263 = vmatpush1.xpose.msra.mxu1 %v8000_v19 }
 0x32b   : > { %1332 = vmatprep.subr.mxu1 %v1255_v24 }
 0x32d   : > { %1327 = vmatmul.mubr.f32.vlgmr.msra.gmra.mrb[4].mxu1 %v8000_v19 }
 0x32e   : > { %1333 = vmatpush1.xpose.msra.mxu1 %v10297_v23  ;;  %1396 = vmatprep.mubr.f32.mxu1 %v1255_v24 }
 0x32f   : > { %1402 = vmatprep.subr.mxu1 %v10316_v26 }
 0x335   : > { %1397 = vmatmul.mubr.f32.vlgmr.msra.gmra.mrb[4].mxu1 %v10297_v23 }
 0x336   : > { %1403 = vmatpush1.xpose.msra.mxu1 %v10310_v25  ;;  %1466 = vmatprep.mubr.f32.mxu1 %v10316_v26 }
 0x337   : > { %1472 = vmatprep.subr.mxu1 %v10325_v28 }
 0x33d   : > { %1467 = vmatmul.mubr.f32.vlgmr.msra.gmra.mrb[4].mxu1 %v10310_v25 }
 0x33e   : > { %1473 = vmatpush1.xpose.msra.mxu1 %v10321_v27  ;;  %1536 = vmatprep.mubr.f32.mxu1 %v10325_v28 }
 0x33f   : > { %1908 = vmatprep.subr.mxu1 %v10336_v30 }
 0x345   : > { %1537 = vmatmul.mubr.f32.vlgmr.msra.gmra.mrb[4].mxu1 %v10321_v27 }
 0x346   : > { %1909 = vmatpush1.xpose.msra.mxu1 %v10332_v29  ;;  %1972 = vmatprep.mubr.f32.mxu1 %v10336_v30 }
 0x347   : > { %1978 = vmatprep.subr.mxu1 %v10347_v32 }
 0x349   : > { %1973 = vmatmul.mubr.f32.vlgmr.msra.gmra.mrb[6].mxu1 %v10332_v29 }
 0x34a   : > { %1979 = vmatpush1.xpose.msra.mxu1 %v10343_v31  ;;  %2042 = vmatprep.mubr.f32.mxu1 %v10347_v32 }
 0x34b   : > { %2048 = vmatprep.subr.mxu1 %v10358_v34 }
 0x351   : > { %2043 = vmatmul.mubr.f32.vlgmr.msra.gmra.mrb[6].mxu1 %v10343_v31 }
 0x352   : > { %2049 = vmatpush1.xpose.msra.mxu1 %v10350_v33  ;;  %2112 = vmatprep.mubr.f32.mxu1 %v10358_v34 }
 0x353   : > { %2118 = vmatprep.subr.mxu1 %v10369_v36 }
 0x359   : > { %2113 = vmatmul.mubr.f32.vlgmr.msra.gmra.mrb[6].mxu1 %v10350_v33 }
 0x35a   : > { %2119 = vmatpush1.xpose.msra.mxu1 %v10365_v35  ;;  %2182 = vmatprep.mubr.f32.mxu1 %v10369_v36 }
 0x35b   : > { %2530 = vmatprep.subr.mxu1 %v10380_v38 }
 0x361   : > { %2183 = vmatmul.mubr.f32.vlgmr.msra.gmra.mrb[6].mxu1 %v10365_v35 }
 0x362   : > { %2531 = vmatpush1.xpose.msra.mxu1 %v10376_v37  ;;  %2594 = vmatprep.mubr.f32.mxu1 %v10380_v38 }
 0x363   : > { %2600 = vmatprep.subr.mxu1 %v10391_v40 }
 0x365   : > { %2595 = vmatmul.mubr.f32.vlgmr.msra.gmra.mrb[8].mxu1 %v10376_v37 }
 0x366   : > { %2601 = vmatpush1.xpose.msra.mxu1 %v10387_v39  ;;  %2664 = vmatprep.mubr.f32.mxu1 %v10391_v40 }
 0x367   : > { %2670 = vmatprep.subr.mxu1 %v10402_v42 }
 0x36d   : > { %2665 = vmatmul.mubr.f32.vlgmr.msra.gmra.mrb[8].mxu1 %v10387_v39 }
 0x36e   : > { %2671 = vmatpush1.xpose.msra.mxu1 %v10394_v41  ;;  %2734 = vmatprep.mubr.f32.mxu1 %v10402_v42 }
 0x36f   : > { %2740 = vmatprep.subr.mxu1 %v10413_v44 }
 0x375   : > { %2735 = vmatmul.mubr.f32.vlgmr.msra.gmra.mrb[8].mxu1 %v10394_v41 }
 0x376   : > { %2741 = vmatpush1.xpose.msra.mxu1 %v10409_v43  ;;  %2804 = vmatprep.mubr.f32.mxu1 %v10413_v44 }
 0x377   : > { %8573 = vmatprep.subr.bf16.mxu1 %v9931_v17 }
 0x37d   : > { %2805 = vmatmul.mubr.f32.vlgmr.msra.gmra.mrb[8].mxu1 %v10409_v43 }
 0x37e   : > { %8589 = vmatprep.mubr.msk.bf16.mxu1 %vm9932_vm3, %v9931_v17 }
 0x3f5   : > { %v1019_v45 = vpop.f32.mrb[2].mxu0  ;;  %v1161_v46 = vpop.f32.mrb[0].mxu1 }
 0x3f6   : > { %1237 = vst [vmem:[#allocation2] sm:$0xf] %v1019_v45  ;;  %1241 = vst [vmem:[#allocation2 + $0x20] sm:$0xf] %v1161_v46  ;;  %v1021_v47 = vpop.f32.mrb[3].mxu0  ;;  %v1163_v48 = vpop.f32.mrb[1].mxu1 }
 0x3f7   : > { %1238 = vst [vmem:[#allocation2 + $0x8] sm:$0xf] %v1021_v47  ;;  %1242 = vst [vmem:[#allocation2 + $0x28] sm:$0xf] %v1163_v48 }
 0x3f9   : > { %v1090_v49 = vpop.f32.mrb[4].mxu0  ;;  %v1232_v50 = vpop.f32.mrb[2].mxu1 }
 0x3fa   : > { %1239 = vst [vmem:[#allocation2 + $0x10] sm:$0xf] %v1090_v49  ;;  %1243 = vst [vmem:[#allocation2 + $0x30] sm:$0xf] %v1232_v50  ;;  %v1092_v51 = vpop.f32.mrb[5].mxu0  ;;  %v1234_v52 = vpop.f32.mrb[3].mxu1 }
 0x3fb   : > { %1240 = vst [vmem:[#allocation2 + $0x18] sm:$0xf] %v1092_v51  ;;  %1244 = vst [vmem:[#allocation2 + $0x38] sm:$0xf] %v1234_v52 }
 0x418   : > { %v1538_v53 = vpop.f32.mrb[4].mxu1 }
 0x419   : > { %v1542_v54 = vmul.f32 0.03125, %v1538_v53  ;;  %v1540_v55 = vpop.f32.mrb[5].mxu1 }
 0x41b   : > { %v1543_v56 = vsel %vm919_vm0, %v1542_v54, -inf }
 0x41c   : > { %1544 = vmax.xlane.f32.xlu1 %v1543_v56 }
 0x434   : > { %v2184_v57 = vpop.f32.mrb[6].mxu1 }
 0x435   : > { %v2188_v58 = vmul.f32 0.03125, %v2184_v57  ;;  %v2186_v59 = vpop.f32.mrb[7].mxu1 }
 0x437   : > { %v2189_v60 = vsel %vm919_vm0, %v2188_v58, -inf }
 0x438   : > { %2190 = vmax.xlane.f32.xlu1 %v2189_v60 }
 0x450   : > { %v2806_v61 = vpop.f32.mrb[8].mxu1 }
 0x451   : > { %v2810_v62 = vmul.f32 0.03125, %v2806_v61  ;;  %v2808_v63 = vpop.f32.mrb[9].mxu1 }
 0x453   : > { %v2811_v0 = vsel %vm919_vm0, %v2810_v62, -inf }
 0x454   : > { %2812 = vmax.xlane.f32.xlu0 %v2811_v0 }
 0x4a9   : > { %v1545_v1 = vpop.xlane.xlu1 %1544 }
 0x4aa   : > { %v1546_v2 = vsub.f32 %v1542_v54, %v1545_v1 }
 0x4ac   : > { %v1547_v3 = vmul.f32 1.442695, %v1546_v2 }
 0x4ae   : > { %9588 = vpow2.f32 %v1547_v3 }
 0x4b8   : > { %v9589_v4 = vpop.eup %9588 }
 0x4b9   : > { %v1549_v5 = vsel %vm919_vm0, %v9589_v4, 0.0 }
 0x4ba   : > { %1550 = vadd.xlane.f32.xlu1 %v1549_v5 }
 0x4c5   : > { %v2191_v6 = vpop.xlane.xlu1 %2190 }
 0x4c6   : > { %v2192_v7 = vsub.f32 %v2188_v58, %v2191_v6 }
 0x4c8   : > { %v2193_v8 = vmul.f32 1.442695, %v2192_v7 }
 0x4ca   : > { %9590 = vpow2.f32 %v2193_v8  ;;  %v9080_v8 = vld [vmem:[#allocation8 + $0x100] ss:$16 sps:$4 sm:$0xff]  }
 0x4d4   : > { %v9591_v9 = vpop.eup %9590 }
 0x4d5   : > { %v2195_v10 = vsel %vm919_vm0, %v9591_v9, 0.0 }
 0x4d6   : > { %2196 = vadd.xlane.f32.xlu0 %v2195_v10 }
 0x4e1   : > { %v2813_v11 = vpop.xlane.xlu0 %2812 }
 0x4e2   : > { %v2814_v12 = vsub.f32 %v2810_v62, %v2813_v11 }
 0x4e4   : > { %v2815_v13 = vmul.f32 1.442695, %v2814_v12  ;;  %v9083_v12 = vld [vmem:[#allocation8 + $0x108] ss:$16 sps:$4 sm:$0xff]  }
 0x4e6   : > { %9592 = vpow2.f32 %v2815_v13 }
 0x4f0   : > { %v9593_v14 = vpop.eup %9592 }
 0x4f1   : > { %v2817_v15 = vsel %vm919_vm0, %v9593_v14, 0.0 }
 0x4f2   : > { %2818 = vadd.xlane.f32.xlu1 %v2817_v15 }
 0x547   : > { %v1551_v16 = vpop.xlane.xlu1 %1550 }
 0x548   : > { %9594 = vrcp.f32 %v1551_v16  ;;  %v9088_v16 = vld [vmem:[#allocation8 + $0x124] ss:$16 sps:$4 sm:$0xff]  }
 0x552   : > { %v9595_v18 = vpop.eup %9594 }
 0x553   : > { %v10430_v19 = vmul.f32 %v9595_v18, %v9589_v4 }
 0x555   : > { %8004 = vst.msk [vmem:[%s10283_s25 + $0x4] sm:$0xf] %vm919_vm0, %v10430_v19  ;;  %8007 = vmatmul.mubr.msk.f32.vlgmr.msra.gmra.mrb[6].mxu0 %vm932_vm2, %v10430_v19 }
 0x556   : > { %8009 = vmatpush1.msk.msra.mxu0 %vm936_vm1, %v10297_v23  ;;  %1710 = vmatprep.mubr.f32.mxu0 %v9931_v17 }
 0x557   : > { %8011 = vmatprep.subr.msk.mxu0 %vm936_vm1, %v10316_v26 }
 0x559   : > { %8010 = vmatmul.mubr.msk.f32.vlgmr.msra.gmra.mrb[8].mxu0 %vm932_vm2, %v10430_v19 }
 0x55a   : > { %8012 = vmatpush1.msk.msra.mxu0 %vm936_vm1, %v10310_v25  ;;  %1781 = vmatprep.mubr.f32.mxu0 %v9931_v17 }
 0x55b   : > { %8014 = vmatprep.subr.msk.mxu0 %vm936_vm1, %v10325_v28  ;;  %v10529_v28 = vld [vmem:[#allocation5 + $0x8] sm:$0xff]  }
 0x55d   : > { %8013 = vmatmul.mubr.msk.f32.vlgmr.msra.gmra.mrb[10].mxu0 %vm932_vm2, %v10430_v19 }
 0x55e   : > { %8015 = vmatpush1.msk.msra.mxu0 %vm936_vm1, %v10321_v27  ;;  %1852 = vmatprep.mubr.f32.mxu0 %v9931_v17  ;;  %v10523_v27 = vld [vmem:[#allocation5] sm:$0xff]  }
 0x55f   : > { %8022 = vmatprep.subr.msk.mxu0 %vm936_vm1, %v10336_v30  ;;  %8574 = vmatpush3.bf16.msra.mxu1 %v10523_v27  ;;  %v10539_v30 = vld [vmem:[#allocation5 + $0x18] sm:$0xff]  }
 0x560   : > { %8575 = vmatprep.subr.bf16.mxu1 %v9931_v17 }
 0x561   : > { %8016 = vmatmul.mubr.msk.f32.vlgmr.msra.gmra.mrb[12].mxu0 %vm932_vm2, %v10430_v19 }
 0x562   : > { %8023 = vmatpush1.msk.msra.mxu0 %vm936_vm1, %v10332_v29  ;;  %2285 = vmatprep.mubr.f32.mxu0 %v9931_v17  ;;  %v10533_v29 = vld [vmem:[#allocation5 + $0x10] sm:$0xff]  }
 0x563   : > { %v2197_v20 = vpop.xlane.xlu0 %2196  ;;  %8025 = vmatprep.subr.msk.mxu0 %vm936_vm1, %v10347_v32  ;;  %8576 = vmatpush3.bf16.msra.mxu1 %v10529_v28  ;;  %v10553_v32 = vld [vmem:[#allocation5 + $0x28] sm:$0xff]  }
 0x564   : > { %9596 = vrcp.f32 %v2197_v20  ;;  %8577 = vmatprep.subr.bf16.mxu1 %v9931_v17 }
 0x567   : > { %8578 = vmatpush3.bf16.msra.mxu1 %v10533_v29 }
 0x568   : > { %8579 = vmatprep.subr.bf16.mxu1 %v9931_v17 }
 0x56b   : > { %8580 = vmatpush3.bf16.msra.mxu1 %v10539_v30 }
 0x56c   : > { %8581 = vmatprep.subr.bf16.mxu1 %v9931_v17 }
 0x56e   : > { %v9597_v22 = vpop.eup %9596 }
 0x56f   : > { %v10463_v23 = vmul.f32 %v9597_v22, %v9591_v9  ;;  %v9091_v22 = vld [vmem:[#allocation8 + $0x12c] ss:$16 sps:$4 sm:$0xff]  }
 0x571   : > { %8021 = vst.msk [vmem:[%s10283_s25 + $0x8] sm:$0xf] %vm919_vm0, %v10463_v23  ;;  %8024 = vmatmul.mubr.msk.f32.vlgmr.msra.gmra.mrb[14].mxu0 %vm932_vm2, %v10463_v23 }
 0x572   : > { %8026 = vmatpush1.msk.msra.mxu0 %vm936_vm1, %v10343_v31  ;;  %2356 = vmatprep.mubr.f32.mxu0 %v9931_v17  ;;  %v10545_v31 = vld [vmem:[#allocation5 + $0x20] sm:$0xff]  }
 0x573   : > { %8028 = vmatprep.subr.msk.mxu0 %vm936_vm1, %v10358_v34  ;;  %8582 = vmatpush3.bf16.msra.mxu1 %v10545_v31  ;;  %v10565_v34 = vld [vmem:[#allocation5 + $0x38] sm:$0xff]  }
 0x574   : > { %8583 = vmatprep.subr.bf16.mxu1 %v9931_v17 }
 0x575   : > { %8027 = vmatmul.mubr.msk.f32.vlgmr.msra.gmra.mrb[16].mxu0 %vm932_vm2, %v10463_v23 }
 0x576   : > { %8029 = vmatpush1.msk.msra.mxu0 %vm936_vm1, %v10350_v33  ;;  %2427 = vmatprep.mubr.f32.mxu0 %v9931_v17  ;;  %v10559_v33 = vld [vmem:[#allocation5 + $0x30] sm:$0xff]  }
 0x577   : > { %8031 = vmatprep.subr.msk.mxu0 %vm936_vm1, %v10369_v36  ;;  %8584 = vmatpush3.bf16.msra.mxu1 %v10553_v32  ;;  %v9085_v36 = vld [vmem:[#allocation8 + $0x10c] ss:$16 sps:$4 sm:$0xff]  }
 0x578   : > { %8585 = vmatprep.subr.bf16.mxu1 %v9931_v17 }
 0x579   : > { %8030 = vmatmul.mubr.msk.f32.vlgmr.msra.gmra.mrb[18].mxu0 %vm932_vm2, %v10463_v23 }
 0x57a   : > { %8032 = vmatpush1.msk.msra.mxu0 %vm936_vm1, %v10365_v35  ;;  %2498 = vmatprep.mubr.f32.mxu0 %v9931_v17  ;;  %v9082_v35 = vld [vmem:[#allocation8 + $0x104] ss:$16 sps:$4 sm:$0xff]  }
 0x57b   : > { %8039 = vmatprep.subr.msk.mxu0 %vm936_vm1, %v10380_v38  ;;  %8586 = vmatpush3.bf16.msra.mxu1 %v10559_v33 }
 0x57c   : > { %8587 = vmatprep.subr.bf16.mxu1 %v9931_v17 }
 0x57d   : > { %8033 = vmatmul.mubr.msk.f32.vlgmr.msra.gmra.mrb[20].mxu0 %vm932_vm2, %v10463_v23 }
 0x57e   : > { %8040 = vmatpush1.msk.msra.mxu0 %vm936_vm1, %v10376_v37  ;;  %2907 = vmatprep.mubr.f32.mxu0 %v9931_v17 }
 0x57f   : > { %v2819_v24 = vpop.xlane.xlu1 %2818  ;;  %8042 = vmatprep.subr.msk.mxu0 %vm936_vm1, %v10391_v40  ;;  %8588 = vmatpush3.bf16.msra.mxu1 %v10565_v34 }
 0x580   : > { %9598 = vrcp.f32 %v2819_v24  ;;  %3548 = vmatprep.subr.bf16.mxu1 %v9082_v35 }
 0x58a   : > { %v9599_v25 = vpop.eup %9598 }
 0x58b   : > { %v10496_v26 = vmul.f32 %v9599_v25, %v9593_v14 }
 0x58d   : > { %8038 = vst.msk [vmem:[%s10283_s25 + $0xc] sm:$0xf] %vm919_vm0, %v10496_v26  ;;  %8041 = vmatmul.mubr.msk.f32.vlgmr.msra.gmra.mrb[22].mxu0 %vm932_vm2, %v10496_v26 }
 0x58e   : > { %8043 = vmatpush1.msk.msra.mxu0 %vm936_vm1, %v10387_v39  ;;  %2978 = vmatprep.mubr.f32.mxu0 %v9931_v17 }
 0x58f   : > { %8045 = vmatprep.subr.msk.mxu0 %vm936_vm1, %v10402_v42 }
 0x591   : > { %8044 = vmatmul.mubr.msk.f32.vlgmr.msra.gmra.mrb[24].mxu0 %vm932_vm2, %v10496_v26 }
 0x592   : > { %8046 = vmatpush1.msk.msra.mxu0 %vm936_vm1, %v10394_v41  ;;  %3049 = vmatprep.mubr.f32.mxu0 %v9931_v17 }
 0x593   : > { %8048 = vmatprep.subr.msk.mxu0 %vm936_vm1, %v10413_v44 }
 0x595   : > { %8047 = vmatmul.mubr.msk.f32.vlgmr.msra.gmra.mrb[26].mxu0 %vm932_vm2, %v10496_v26 }
 0x596   : > { %8049 = vmatpush1.msk.msra.mxu0 %vm936_vm1, %v10409_v43  ;;  %3120 = vmatprep.mubr.f32.mxu0 %v9931_v17 }
 0x597   : > { %8593 = vmatprep.subr.bf16.mxu0 %v9931_v17 }
 0x599   : > { %8050 = vmatmul.mubr.msk.f32.vlgmr.msra.gmra.mrb[28].mxu0 %vm932_vm2, %v10496_v26 }
 0x59a   : > { %8594 = vmatpush3.bf16.msra.mxu0 %v10523_v27  ;;  %8609 = vmatprep.mubr.msk.bf16.mxu0 %vm9932_vm3, %v9931_v17 }
 0x59b   : > { %8595 = vmatprep.subr.bf16.mxu0 %v9931_v17 }
 0x59e   : > { %8596 = vmatpush3.bf16.msra.mxu0 %v10529_v28 }
 0x59f   : > { %8597 = vmatprep.subr.bf16.mxu0 %v9931_v17 }
 0x5a2   : > { %8598 = vmatpush3.bf16.msra.mxu0 %v10533_v29 }
 0x5a3   : > { %8599 = vmatprep.subr.bf16.mxu0 %v9931_v17 }
 0x5a6   : > { %8600 = vmatpush3.bf16.msra.mxu0 %v10539_v30 }
 0x5a7   : > { %8601 = vmatprep.subr.bf16.mxu0 %v9931_v17 }
 0x5aa   : > { %8602 = vmatpush3.bf16.msra.mxu0 %v10545_v31 }
 0x5ab   : > { %8603 = vmatprep.subr.bf16.mxu0 %v9931_v17 }
 0x5ae   : > { %8604 = vmatpush3.bf16.msra.mxu0 %v10553_v32 }
 0x5af   : > { %8605 = vmatprep.subr.bf16.mxu0 %v9931_v17 }
 0x5b2   : > { %8606 = vmatpush3.bf16.msra.mxu0 %v10559_v33 }
 0x5b3   : > { %8607 = vmatprep.subr.bf16.mxu0 %v9931_v17 }
 0x5b6   : > { %8608 = vmatpush3.bf16.msra.mxu0 %v10565_v34 }
 0x5b7   : > { %3591 = vmatprep.subr.bf16.mxu0 %v9085_v36  ;;  %v9086_v36 = vld [vmem:[#allocation8 + $0x120] ss:$16 sps:$4 sm:$0xff]  }
 0x628   : > { %v1641_v37 = vpop.f32.mrb[6].mxu0 }
 0x629   : > { %v1867_v38 = vrot.slane %v1641_v37, 4  ;;  %v1643_v39 = vpop.f32.mrb[7].mxu0  ;;  %v9089_v37 = vld [vmem:[#allocation8 + $0x128] ss:$16 sps:$4 sm:$0xff]  }
 0x62a   : > { %v1868_v40 = vrot.slane %v1643_v39, 4  ;;  %v9097_v39 = vld [vmem:[#allocation8 + $0x14c] ss:$16 sps:$4 sm:$0xff]  }
 0x62b   : > { %1883 = vst [vmem:[#allocation2] sm:$0xf0] %v1867_v38  ;;  %v9094_v38 = vld [vmem:[#allocation8 + $0x144] ss:$16 sps:$4 sm:$0xff]  }
 0x62c   : > { %1884 = vst [vmem:[#allocation2 + $0x8] sm:$0xf0] %v1868_v40  ;;  %v1712_v41 = vpop.f32.mrb[8].mxu0  ;;  %v9092_v40 = vld [vmem:[#allocation8 + $0x140] ss:$16 sps:$4 sm:$0xff]  }
 0x62d   : > { %v1869_v42 = vrot.slane %v1712_v41, 4  ;;  %v1714_v43 = vpop.f32.mrb[9].mxu0  ;;  %v9095_v41 = vld [vmem:[#allocation8 + $0x148] ss:$16 sps:$4 sm:$0xff]  }
 0x62e   : > { %v1870_v44 = vrot.slane %v1714_v43, 4  ;;  %v9103_v43 = vld [vmem:[#allocation8 + $0x16c] ss:$16 sps:$4 sm:$0xff]  }
 0x62f   : > { %1885 = vst [vmem:[#allocation2 + $0x10] sm:$0xf0] %v1869_v42  ;;  %v9100_v42 = vld [vmem:[#allocation8 + $0x164] ss:$16 sps:$4 sm:$0xff]  }
 0x630   : > { %1886 = vst [vmem:[#allocation2 + $0x18] sm:$0xf0] %v1870_v44  ;;  %v1783_v45 = vpop.f32.mrb[10].mxu0  ;;  %v9098_v44 = vld [vmem:[#allocation8 + $0x160] ss:$16 sps:$4 sm:$0xff]  }
 0x631   : > { %v1871_v46 = vrot.slane %v1783_v45, 4  ;;  %v1785_v47 = vpop.f32.mrb[11].mxu0  ;;  %v9101_v45 = vld [vmem:[#allocation8 + $0x168] ss:$16 sps:$4 sm:$0xff]  }
 0x632   : > { %v1872_v48 = vrot.slane %v1785_v47, 4  ;;  %v3159_v10 = vld [vmem:[#allocation2] sm:$0xff]  ;;  %v9109_v47 = vld [vmem:[#allocation8 + $0x18c] ss:$16 sps:$4 sm:$0xff]  }
 0x633   : > { %1887 = vst [vmem:[#allocation2 + $0x20] sm:$0xf0] %v1871_v46  ;;  %v3309_v14 = vld [vmem:[#allocation2 + $0x8] sm:$0xff]  ;;  %v9106_v46 = vld [vmem:[#allocation8 + $0x184] ss:$16 sps:$4 sm:$0xff]  }
 0x634   : > { %1888 = vst [vmem:[#allocation2 + $0x28] sm:$0xf0] %v1872_v48  ;;  %v1854_v49 = vpop.f32.mrb[12].mxu0  ;;  %v9104_v48 = vld [vmem:[#allocation8 + $0x180] ss:$16 sps:$4 sm:$0xff]  }
 0x635   : > { %v1873_v50 = vrot.slane %v1854_v49, 4  ;;  %v1856_v51 = vpop.f32.mrb[13].mxu0  ;;  %v9107_v49 = vld [vmem:[#allocation8 + $0x188] ss:$16 sps:$4 sm:$0xff]  }
 0x636   : > { %v1874_v52 = vrot.slane %v1856_v51, 4  ;;  %v9115_v51 = vld [vmem:[#allocation8 + $0x1ac] ss:$16 sps:$4 sm:$0xff]  }
 0x637   : > { %1889 = vst [vmem:[#allocation2 + $0x30] sm:$0xf0] %v1873_v50  ;;  %v9112_v50 = vld [vmem:[#allocation8 + $0x1a4] ss:$16 sps:$4 sm:$0xff]  }
 0x638   : > { %1890 = vst [vmem:[#allocation2 + $0x38] sm:$0xf0] %v1874_v52  ;;  %v9110_v52 = vld [vmem:[#allocation8 + $0x1a0] ss:$16 sps:$4 sm:$0xff]  }
 0x644   : > { %v2287_v53 = vpop.f32.mrb[14].mxu0 }
 0x645   : > { %2505 = vst [vmem:[#allocation2 + $0x40] sm:$0xf] %v2287_v53  ;;  %v2289_v54 = vpop.f32.mrb[15].mxu0  ;;  %v9113_v53 = vld [vmem:[#allocation8 + $0x1a8] ss:$16 sps:$4 sm:$0xff]  }
 0x646   : > { %2506 = vst [vmem:[#allocation2 + $0x48] sm:$0xf] %v2289_v54  ;;  %v9118_v54 = vld [vmem:[#allocation8 + $0x1c4] ss:$16 sps:$4 sm:$0xff]  }
 0x648   : > { %v2358_v55 = vpop.f32.mrb[16].mxu0 }
 0x649   : > { %2507 = vst [vmem:[#allocation2 + $0x50] sm:$0xf] %v2358_v55  ;;  %v2360_v56 = vpop.f32.mrb[17].mxu0  ;;  %v9121_v55 = vld [vmem:[#allocation8 + $0x1cc] ss:$16 sps:$4 sm:$0xff]  }
 0x64a   : > { %2508 = vst [vmem:[#allocation2 + $0x58] sm:$0xf] %v2360_v56  ;;  %v9116_v56 = vld [vmem:[#allocation8 + $0x1c0] ss:$16 sps:$4 sm:$0xff]  }
 0x64c   : > { %v2429_v57 = vpop.f32.mrb[18].mxu0 }
 0x64d   : > { %2509 = vst [vmem:[#allocation2 + $0x60] sm:$0xf] %v2429_v57  ;;  %v2431_v58 = vpop.f32.mrb[19].mxu0  ;;  %v9119_v57 = vld [vmem:[#allocation8 + $0x1c8] ss:$16 sps:$4 sm:$0xff]  }
 0x64e   : > { %2510 = vst [vmem:[#allocation2 + $0x68] sm:$0xf] %v2431_v58  ;;  %v9124_v58 = vld [vmem:[#allocation8 + $0x1e4] ss:$16 sps:$4 sm:$0xff]  }
 0x650   : > { %v2500_v59 = vpop.f32.mrb[20].mxu0 }
 0x651   : > { %2511 = vst [vmem:[#allocation2 + $0x70] sm:$0xf] %v2500_v59  ;;  %v2502_v60 = vpop.f32.mrb[21].mxu0  ;;  %v9127_v59 = vld [vmem:[#allocation8 + $0x1ec] ss:$16 sps:$4 sm:$0xff]  }
 0x652   : > { %2512 = vst [vmem:[#allocation2 + $0x78] sm:$0xf] %v2502_v60  ;;  %v9122_v60 = vld [vmem:[#allocation8 + $0x1e0] ss:$16 sps:$4 sm:$0xff]  }
 0x660   : > { %v2909_v61 = vpop.f32.mrb[22].mxu0 }
 0x661   : > { %v3135_v62 = vrot.slane %v2909_v61, 4  ;;  %v2911_v63 = vpop.f32.mrb[23].mxu0  ;;  %v9125_v61 = vld [vmem:[#allocation8 + $0x1e8] ss:$16 sps:$4 sm:$0xff]  }
 0x662   : > { %v3136_v0 = vrot.slane %v2911_v63, 4  ;;  %v9133_v63 = vld [vmem:[#allocation8 + $0xc] ss:$16 sps:$4 sm:$0xff]  }
 0x663   : > { %3151 = vst [vmem:[#allocation2 + $0x40] sm:$0xf0] %v3135_v62  ;;  %v9130_v62 = vld [vmem:[#allocation8 + $0x4] ss:$16 sps:$4 sm:$0xff]  }
 0x664   : > { %3152 = vst [vmem:[#allocation2 + $0x48] sm:$0xf0] %v3136_v0  ;;  %v2980_v1 = vpop.f32.mrb[24].mxu0  ;;  %v9933_v0 = vmov 0  }
 0x665   : > { %v3137_v2 = vrot.slane %v2980_v1, 4  ;;  %v2982_v3 = vpop.f32.mrb[25].mxu0  ;;  %v10578_v1 = vld [vmem:[%s11017_s2] ss:$0 sm:$0xff] }
 0x666   : > { %v3138_v4 = vrot.slane %v2982_v3, 4 }
 0x667   : > { %3153 = vst [vmem:[#allocation2 + $0x50] sm:$0xf0] %v3137_v2 }
 0x668   : > { %3154 = vst [vmem:[#allocation2 + $0x58] sm:$0xf0] %v3138_v4  ;;  %v3051_v5 = vpop.f32.mrb[26].mxu0 }
 0x669   : > { %v3139_v6 = vrot.slane %v3051_v5, 4  ;;  %v3053_v7 = vpop.f32.mrb[27].mxu0 }
 0x66a   : > { %v3140_v9 = vrot.slane %v3053_v7, 4  ;;  %v3160_v11 = vld [vmem:[#allocation2 + $0x40] sm:$0xff] }
 0x66b   : > { %3155 = vst [vmem:[#allocation2 + $0x60] sm:$0xf0] %v3139_v6  ;;  %v3161_v13 = vpack.c.bf16 %v3160_v11, %v3159_v10  ;;  %v3310_v15 = vld [vmem:[#allocation2 + $0x48] sm:$0xff] }
 0x66c   : > { %3156 = vst [vmem:[#allocation2 + $0x68] sm:$0xf0] %v3140_v9  ;;  %v3122_v18 = vpop.f32.mrb[28].mxu0  ;;  %v3311_v20 = vpack.c.bf16 %v3310_v15, %v3309_v14 }
 0x66d   : > { %v3141_v24 = vrot.slane %v3122_v18, 4  ;;  %v3124_v25 = vpop.f32.mrb[29].mxu0  ;;  %8590 = vmatmul.mubr.bf16.vlgmr.msra.gmra.mrb[12].mxu1 %v3161_v13 }
 0x66e   : > { %v3142_v35 = vrot.slane %v3124_v25, 4  ;;  %8610 = vmatmul.mubr.bf16.vlgmr.msra.gmra.mrb[32].mxu0 %v3311_v20  ;;  %3549 = vmatpush1.bf16.msra.mxu1 %v9080_v8 }
 0x66f   : > { %3157 = vst [vmem:[#allocation2 + $0x70] sm:$0xf0] %v3141_v24  ;;  %3592 = vmatpush1.bf16.msra.mxu0 %v9083_v12  ;;  %3550 = vmatprep.subr.bf16.mxu1 %v9088_v16  ;;  %v9131_v24 = vld [vmem:[#allocation8 + $0x8] ss:$16 sps:$4 sm:$0xff]  }
 0x670   : > { %3158 = vst [vmem:[#allocation2 + $0x78] sm:$0xf0] %v3142_v35  ;;  %3593 = vmatprep.subr.bf16.mxu0 %v9091_v22  ;;  %3580 = vmatprep.mubr.bf16.mxu1 %v9933_v0  ;;  %v9128_v22 = vld [vmem:[#allocation8] ss:$16 sps:$4 sm:$0xff]   ;;  %v9136_v35 = vld [vmem:[#allocation8 + $0x24] ss:$16 sps:$4 sm:$0xff]  }
 0x671   : > { %3623 = vmatprep.mubr.bf16.mxu0 %v9933_v0 }
 0x672   : > { %3551 = vmatpush1.bf16.msra.mxu1 %v9086_v36  ;;  %v9139_v36 = vld [vmem:[#allocation8 + $0x2c] ss:$16 sps:$4 sm:$0xff]  }
 0x673   : > { %3594 = vmatpush1.bf16.msra.mxu0 %v9089_v37  ;;  %3552 = vmatprep.subr.bf16.mxu1 %v9094_v38  ;;  %v9134_v37 = vld [vmem:[#allocation8 + $0x20] ss:$16 sps:$4 sm:$0xff]   ;;  %v9137_v38 = vld [vmem:[#allocation8 + $0x28] ss:$16 sps:$4 sm:$0xff]  }
 0x674   : > { %3595 = vmatprep.subr.bf16.mxu0 %v9097_v39  ;;  %v9142_v39 = vld [vmem:[#allocation8 + $0x44] ss:$16 sps:$4 sm:$0xff]  }
 0x676   : > { %3553 = vmatpush1.bf16.msra.mxu1 %v9092_v40  ;;  %v9145_v40 = vld [vmem:[#allocation8 + $0x4c] ss:$16 sps:$4 sm:$0xff]  }
 0x677   : > { %3596 = vmatpush1.bf16.msra.mxu0 %v9095_v41  ;;  %3554 = vmatprep.subr.bf16.mxu1 %v9100_v42  ;;  %v9140_v41 = vld [vmem:[#allocation8 + $0x40] ss:$16 sps:$4 sm:$0xff]   ;;  %v9143_v42 = vld [vmem:[#allocation8 + $0x48] ss:$16 sps:$4 sm:$0xff]  }
 0x678   : > { %3597 = vmatprep.subr.bf16.mxu0 %v9103_v43  ;;  %v9148_v43 = vld [vmem:[#allocation8 + $0x64] ss:$16 sps:$4 sm:$0xff]  }
 0x67a   : > { %3555 = vmatpush1.bf16.msra.mxu1 %v9098_v44  ;;  %v9151_v44 = vld [vmem:[#allocation8 + $0x6c] ss:$16 sps:$4 sm:$0xff]  }
 0x67b   : > { %3598 = vmatpush1.bf16.msra.mxu0 %v9101_v45  ;;  %3556 = vmatprep.subr.bf16.mxu1 %v9106_v46  ;;  %v9146_v45 = vld [vmem:[#allocation8 + $0x60] ss:$16 sps:$4 sm:$0xff]   ;;  %v9149_v46 = vld [vmem:[#allocation8 + $0x68] ss:$16 sps:$4 sm:$0xff]  }
 0x67c   : > { %3599 = vmatprep.subr.bf16.mxu0 %v9109_v47  ;;  %v9154_v47 = vld [vmem:[#allocation8 + $0x84] ss:$16 sps:$4 sm:$0xff]  }
 0x67e   : > { %3557 = vmatpush1.bf16.msra.mxu1 %v9104_v48  ;;  %v9157_v48 = vld [vmem:[#allocation8 + $0x8c] ss:$16 sps:$4 sm:$0xff]  }
 0x67f   : > { %3600 = vmatpush1.bf16.msra.mxu0 %v9107_v49  ;;  %3558 = vmatprep.subr.bf16.mxu1 %v9112_v50  ;;  %v9152_v49 = vld [vmem:[#allocation8 + $0x80] ss:$16 sps:$4 sm:$0xff]   ;;  %v9155_v50 = vld [vmem:[#allocation8 + $0x88] ss:$16 sps:$4 sm:$0xff]  }
 0x680   : > { %3601 = vmatprep.subr.bf16.mxu0 %v9115_v51  ;;  %v9160_v51 = vld [vmem:[#allocation8 + $0xa4] ss:$16 sps:$4 sm:$0xff]  }
 0x682   : > { %3559 = vmatpush1.bf16.msra.mxu1 %v9110_v52  ;;  %v9163_v52 = vld [vmem:[#allocation8 + $0xac] ss:$16 sps:$4 sm:$0xff]  }
 0x683   : > { %3602 = vmatpush1.bf16.msra.mxu0 %v9113_v53  ;;  %3560 = vmatprep.subr.bf16.mxu1 %v9118_v54  ;;  %v9158_v53 = vld [vmem:[#allocation8 + $0xa0] ss:$16 sps:$4 sm:$0xff]   ;;  %v9161_v54 = vld [vmem:[#allocation8 + $0xa8] ss:$16 sps:$4 sm:$0xff]  }
 0x684   : > { %3603 = vmatprep.subr.bf16.mxu0 %v9121_v55  ;;  %v9166_v55 = vld [vmem:[#allocation8 + $0xc4] ss:$16 sps:$4 sm:$0xff]  }
 0x686   : > { %3561 = vmatpush1.bf16.msra.mxu1 %v9116_v56  ;;  %v9169_v56 = vld [vmem:[#allocation8 + $0xcc] ss:$16 sps:$4 sm:$0xff]  }
 0x687   : > { %3604 = vmatpush1.bf16.msra.mxu0 %v9119_v57  ;;  %3562 = vmatprep.subr.bf16.mxu1 %v9124_v58  ;;  %v9164_v57 = vld [vmem:[#allocation8 + $0xc0] ss:$16 sps:$4 sm:$0xff]   ;;  %v9167_v58 = vld [vmem:[#allocation8 + $0xc8] ss:$16 sps:$4 sm:$0xff]  }
 0x688   : > { %3605 = vmatprep.subr.bf16.mxu0 %v9127_v59  ;;  %v9172_v59 = vld [vmem:[#allocation8 + $0xe4] ss:$16 sps:$4 sm:$0xff]  }
 0x68a   : > { %3563 = vmatpush1.bf16.msra.mxu1 %v9122_v60  ;;  %v9175_v60 = vld [vmem:[#allocation8 + $0xec] ss:$16 sps:$4 sm:$0xff]  }
 0x68b   : > { %3606 = vmatpush1.bf16.msra.mxu0 %v9125_v61  ;;  %3794 = vmatprep.subr.bf16.mxu1 %v9130_v62  ;;  %v9170_v61 = vld [vmem:[#allocation8 + $0xe0] ss:$16 sps:$4 sm:$0xff]   ;;  %v9173_v62 = vld [vmem:[#allocation8 + $0xe8] ss:$16 sps:$4 sm:$0xff]  }
 0x68c   : > { %3837 = vmatprep.subr.bf16.mxu0 %v9133_v63  ;;  %v9178_v63 = vld [vmem:[#allocation8 + $0x20c] ss:$16 sps:$4 sm:$0xff]  }
 0x740   : > { %v3267_v2 = vpop.f32.mrb[12].mxu1 }
 0x741   : > { %v3268_v3 = vadd.f32 %v10578_v1, %v3267_v2  ;;  %v8591_v4 = vpop.f32.mrb[13].mxu1  ;;  %v3346_v5 = vpop.f32.mrb[32].mxu0  ;;  %v9176_v2 = vld [vmem:[#allocation8 + $0x208] ss:$16 sps:$4 sm:$0xff]  }
 0x742   : > { %v3347_v6 = vadd.f32 %v10578_v1, %v3346_v5  ;;  %v3270_v7 = vpop.f32.mrb[14].mxu1  ;;  %v8611_v8 = vpop.f32.mrb[33].mxu0  ;;  %v9182_v4 = vld [vmem:[#allocation8 + $0x228] ss:$16 sps:$4 sm:$0xff]   ;;  %v9190_v5 = vld [vmem:[#allocation8 + $0x24c] ss:$16 sps:$4 sm:$0xff]  }
 0x743   : > { %v3271_v9 = vadd.f32 %v10578_v1, %v3270_v7  ;;  %v8592_v10 = vpop.f32.mrb[15].mxu1  ;;  %v3349_v11 = vpop.f32.mrb[34].mxu0  ;;  %v3274_v14 = vmax.f32 %v3268_v3, 0.0  ;;  %v9184_v3 = vld [vmem:[#allocation8 + $0x22c] ss:$16 sps:$4 sm:$0xff]  }
 0x744   : > { %v3350_v12 = vadd.f32 %v10578_v1, %v3349_v11  ;;  %v8612_v13 = vpop.f32.mrb[35].mxu0  ;;  %v3353_v16 = vmax.f32 %v3347_v6, 0.0  ;;  %v9188_v6 = vld [vmem:[#allocation8 + $0x248] ss:$16 sps:$4 sm:$0xff]   ;;  %v9196_v7 = vld [vmem:[#allocation8 + $0x26c] ss:$16 sps:$4 sm:$0xff]  }
 0x745   : > { %v3275_v15 = vmax.f32 %v3271_v9, 0.0  ;;  %v9194_v8 = vld [vmem:[#allocation8 + $0x268] ss:$16 sps:$4 sm:$0xff]   ;;  %v9202_v9 = vld [vmem:[#allocation8 + $0x28c] ss:$16 sps:$4 sm:$0xff]  }
 0x746   : > { %v3354_v18 = vmax.f32 %v3350_v12, 0.0  ;;  %v9200_v10 = vld [vmem:[#allocation8 + $0x288] ss:$16 sps:$4 sm:$0xff]   ;;  %v9208_v11 = vld [vmem:[#allocation8 + $0x2ac] ss:$16 sps:$4 sm:$0xff]  }
 0x747   : > { %v10584_v20 = vpack.c.bf16 %v3275_v15, %v3274_v14  ;;  %v9206_v12 = vld [vmem:[#allocation8 + $0x2a8] ss:$16 sps:$4 sm:$0xff]   ;;  %v9181_v13 = vld [vmem:[#allocation8 + $0x204] ss:$16 sps:$4 sm:$0xff]  }
 0x748   : > { %v3355_v25 = vpack.c.bf16 %v3354_v18, %v3353_v16  ;;  %v3881_v14 = vld [vmem:[#allocation2 + $0x50] sm:$0xff] }
 0x749   : > { %v3880_v15 = vld [vmem:[#allocation2 + $0x10] sm:$0xff] }
 0x74a   : > { %3581 = vmatmul.mubr.bf16.vlgmr.msra.gmra.mrb[16].mxu1 %v3355_v25  ;;  %3624 = vmatmul.mubr.bf16.vlgmr.msra.gmra.mrb[36].mxu0 %v3355_v25  ;;  %v9179_v16 = vld [vmem:[#allocation8 + $0x200] ss:$16 sps:$4 sm:$0xff]   ;;  %v3882_v18 = vpack.c.bf16 %v3881_v14, %v3880_v15  ;;  %v9233_v14 = vld [vmem:[#allocation8 + $0x328] ss:$16 sps:$4 sm:$0xff]   ;;  %v9241_v15 = vld [vmem:[#allocation8 + $0x34c] ss:$16 sps:$4 sm:$0xff]  }
 0x74b   : > { %3795 = vmatpush1.bf16.msra.mxu1 %v9128_v22  ;;  %3838 = vmatpush1.bf16.msra.mxu0 %v9131_v24  ;;  %v9185_v22 = vld [vmem:[#allocation8 + $0x220] ss:$16 sps:$4 sm:$0xff]   ;;  %v9193_v24 = vld [vmem:[#allocation8 + $0x244] ss:$16 sps:$4 sm:$0xff]  }
 0x74c   : > { %3796 = vmatprep.subr.bf16.mxu1 %v9136_v35  ;;  %3839 = vmatprep.subr.bf16.mxu0 %v9139_v36  ;;  %v9191_v25 = vld [vmem:[#allocation8 + $0x240] ss:$16 sps:$4 sm:$0xff]   ;;  %v9199_v35 = vld [vmem:[#allocation8 + $0x264] ss:$16 sps:$4 sm:$0xff]  }
 0x74d   : > { %3826 = vmatprep.mubr.bf16.mxu1 %v9933_v0  ;;  %3869 = vmatprep.mubr.bf16.mxu0 %v9933_v0  ;;  %v9197_v36 = vld [vmem:[#allocation8 + $0x260] ss:$16 sps:$4 sm:$0xff]  }
 0x74f   : > { %3797 = vmatpush1.bf16.msra.mxu1 %v9134_v37  ;;  %3840 = vmatpush1.bf16.msra.mxu0 %v9137_v38  ;;  %v9205_v37 = vld [vmem:[#allocation8 + $0x284] ss:$16 sps:$4 sm:$0xff]   ;;  %v9203_v38 = vld [vmem:[#allocation8 + $0x280] ss:$16 sps:$4 sm:$0xff]  }
 0x750   : > { %3798 = vmatprep.subr.bf16.mxu1 %v9142_v39  ;;  %3841 = vmatprep.subr.bf16.mxu0 %v9145_v40  ;;  %v9211_v39 = vld [vmem:[#allocation8 + $0x2a4] ss:$16 sps:$4 sm:$0xff]   ;;  %v9209_v40 = vld [vmem:[#allocation8 + $0x2a0] ss:$16 sps:$4 sm:$0xff]  }
 0x753   : > { %3799 = vmatpush1.bf16.msra.mxu1 %v9140_v41  ;;  %3842 = vmatpush1.bf16.msra.mxu0 %v9143_v42  ;;  %v9214_v41 = vld [vmem:[#allocation8 + $0x2cc] ss:$16 sps:$4 sm:$0xff]   ;;  %v9212_v42 = vld [vmem:[#allocation8 + $0x2c8] ss:$16 sps:$4 sm:$0xff]  }
 0x754   : > { %3800 = vmatprep.subr.bf16.mxu1 %v9148_v43  ;;  %3843 = vmatprep.subr.bf16.mxu0 %v9151_v44  ;;  %v9217_v43 = vld [vmem:[#allocation8 + $0x2c4] ss:$16 sps:$4 sm:$0xff]   ;;  %v9215_v44 = vld [vmem:[#allocation8 + $0x2c0] ss:$16 sps:$4 sm:$0xff]  }
 0x757   : > { %3801 = vmatpush1.bf16.msra.mxu1 %v9146_v45  ;;  %3844 = vmatpush1.bf16.msra.mxu0 %v9149_v46  ;;  %v9220_v45 = vld [vmem:[#allocation8 + $0x2ec] ss:$16 sps:$4 sm:$0xff]   ;;  %v9218_v46 = vld [vmem:[#allocation8 + $0x2e8] ss:$16 sps:$4 sm:$0xff]  }
 0x758   : > { %3802 = vmatprep.subr.bf16.mxu1 %v9154_v47  ;;  %3845 = vmatprep.subr.bf16.mxu0 %v9157_v48  ;;  %v9223_v47 = vld [vmem:[#allocation8 + $0x2e4] ss:$16 sps:$4 sm:$0xff]   ;;  %v9221_v48 = vld [vmem:[#allocation8 + $0x2e0] ss:$16 sps:$4 sm:$0xff]  }
 0x75b   : > { %3803 = vmatpush1.bf16.msra.mxu1 %v9152_v49  ;;  %3846 = vmatpush1.bf16.msra.mxu0 %v9155_v50  ;;  %v9226_v49 = vld [vmem:[#allocation8 + $0x304] ss:$16 sps:$4 sm:$0xff]  }
 0x75c   : > { %3804 = vmatprep.subr.bf16.mxu1 %v9160_v51  ;;  %3847 = vmatprep.subr.bf16.mxu0 %v9163_v52 }
 0x75f   : > { %3805 = vmatpush1.bf16.msra.mxu1 %v9158_v53  ;;  %3848 = vmatpush1.bf16.msra.mxu0 %v9161_v54 }
 0x760   : > { %3806 = vmatprep.subr.bf16.mxu1 %v9166_v55  ;;  %3849 = vmatprep.subr.bf16.mxu0 %v9169_v56 }
 0x763   : > { %3807 = vmatpush1.bf16.msra.mxu1 %v9164_v57  ;;  %3850 = vmatpush1.bf16.msra.mxu0 %v9167_v58 }
 0x764   : > { %3808 = vmatprep.subr.bf16.mxu1 %v9172_v59  ;;  %3851 = vmatprep.subr.bf16.mxu0 %v9175_v60  ;;  %v9224_v59 = vld [vmem:[#allocation8 + $0x300] ss:$16 sps:$4 sm:$0xff]   ;;  %v9232_v60 = vld [vmem:[#allocation8 + $0x324] ss:$16 sps:$4 sm:$0xff]  }
 0x767   : > { %3809 = vmatpush1.bf16.msra.mxu1 %v9170_v61  ;;  %3852 = vmatpush1.bf16.msra.mxu0 %v9173_v62  ;;  %v9230_v61 = vld [vmem:[#allocation8 + $0x320] ss:$16 sps:$4 sm:$0xff]   ;;  %v9238_v62 = vld [vmem:[#allocation8 + $0x344] ss:$16 sps:$4 sm:$0xff]  }
 0x768   : > { %8613 = vmatprep.subr.bf16.mxu1 %v9931_v17  ;;  %4162 = vmatprep.subr.bf16.mxu0 %v9178_v63  ;;  %v9236_v63 = vld [vmem:[#allocation8 + $0x340] ss:$16 sps:$4 sm:$0xff]  }
 0x76a   : > { %3827 = vmatmul.mubr.bf16.vlgmr.msra.gmra.mrb[16].mxu1 %v10584_v20  ;;  %3870 = vmatmul.mubr.bf16.vlgmr.msra.gmra.mrb[36].mxu0 %v10584_v20  ;;  %v9187_v20 = vld [vmem:[#allocation8 + $0x224] ss:$16 sps:$4 sm:$0xff]  }
 0x76b   : > { %8614 = vmatpush3.bf16.msra.mxu1 %v10523_v27  ;;  %8629 = vmatprep.mubr.msk.bf16.mxu1 %vm9932_vm3, %v9931_v17 }
 0x76c   : > { %8615 = vmatprep.subr.bf16.mxu1 %v9931_v17  ;;  %4163 = vmatpush1.bf16.msra.mxu0 %v9176_v2  ;;  %v9244_v2 = vld [vmem:[#allocation8 + $0x364] ss:$16 sps:$4 sm:$0xff]  }
 0x76d   : > { %4164 = vmatprep.subr.bf16.mxu0 %v9184_v3  ;;  %4194 = vmatprep.mubr.bf16.mxu0 %v9933_v0  ;;  %v9242_v3 = vld [vmem:[#allocation8 + $0x360] ss:$16 sps:$4 sm:$0xff]  }
 0x76f   : > { %8616 = vmatpush3.bf16.msra.mxu1 %v10529_v28 }
 0x770   : > { %8617 = vmatprep.subr.bf16.mxu1 %v9931_v17  ;;  %4165 = vmatpush1.bf16.msra.mxu0 %v9182_v4  ;;  %v9250_v4 = vld [vmem:[#allocation8 + $0x384] ss:$16 sps:$4 sm:$0xff]  }
 0x771   : > { %4166 = vmatprep.subr.bf16.mxu0 %v9190_v5  ;;  %v9248_v5 = vld [vmem:[#allocation8 + $0x380] ss:$16 sps:$4 sm:$0xff]  }
 0x773   : > { %8618 = vmatpush3.bf16.msra.mxu1 %v10533_v29 }
 0x774   : > { %8619 = vmatprep.subr.bf16.mxu1 %v9931_v17  ;;  %4167 = vmatpush1.bf16.msra.mxu0 %v9188_v6  ;;  %v9256_v6 = vld [vmem:[#allocation8 + $0x3a4] ss:$16 sps:$4 sm:$0xff]  }
 0x775   : > { %4168 = vmatprep.subr.bf16.mxu0 %v9196_v7  ;;  %v9254_v7 = vld [vmem:[#allocation8 + $0x3a0] ss:$16 sps:$4 sm:$0xff]  }
 0x777   : > { %8620 = vmatpush3.bf16.msra.mxu1 %v10539_v30 }
 0x778   : > { %8621 = vmatprep.subr.bf16.mxu1 %v9931_v17  ;;  %4169 = vmatpush1.bf16.msra.mxu0 %v9194_v8  ;;  %v9229_v8 = vld [vmem:[#allocation8 + $0x30c] ss:$16 sps:$4 sm:$0xff]  }
 0x779   : > { %4170 = vmatprep.subr.bf16.mxu0 %v9202_v9  ;;  %v4214_v9 = vld [vmem:[#allocation2 + $0x58] sm:$0xff] }
 0x77b   : > { %8622 = vmatpush3.bf16.msra.mxu1 %v10545_v31 }
 0x77c   : > { %8623 = vmatprep.subr.bf16.mxu1 %v9931_v17  ;;  %4171 = vmatpush1.bf16.msra.mxu0 %v9200_v10  ;;  %v4213_v10 = vld [vmem:[#allocation2 + $0x18] sm:$0xff] }
 0x77d   : > { %4172 = vmatprep.subr.bf16.mxu0 %v9208_v11  ;;  %v9227_v11 = vld [vmem:[#allocation8 + $0x308] ss:$16 sps:$4 sm:$0xff]  }
 0x77f   : > { %8624 = vmatpush3.bf16.msra.mxu1 %v10553_v32 }
 0x780   : > { %8625 = vmatprep.subr.bf16.mxu1 %v9931_v17  ;;  %4173 = vmatpush1.bf16.msra.mxu0 %v9206_v12  ;;  %v4215_v12 = vpack.c.bf16 %v4214_v9, %v4213_v10  ;;  %v9305_v9 = vld [vmem:[#allocation8 + $0x4a0] ss:$16 sps:$4 sm:$0xff]   ;;  %v9310_v10 = vld [vmem:[#allocation8 + $0x4cc] ss:$16 sps:$4 sm:$0xff]  }
 0x781   : > { %4174 = vmatprep.subr.bf16.mxu0 %v9214_v41  ;;  %v9266_v41 = vld [vmem:[#allocation8 + $0x3e0] ss:$16 sps:$4 sm:$0xff]  }
 0x783   : > { %8626 = vmatpush3.bf16.msra.mxu1 %v10559_v33 }
 0x784   : > { %8627 = vmatprep.subr.bf16.mxu1 %v9931_v17  ;;  %4175 = vmatpush1.bf16.msra.mxu0 %v9212_v42  ;;  %v9271_v42 = vld [vmem:[#allocation8 + $0x3ec] ss:$16 sps:$4 sm:$0xff]  }
 0x785   : > { %4176 = vmatprep.subr.bf16.mxu0 %v9220_v45 }
 0x787   : > { %8628 = vmatpush3.bf16.msra.mxu1 %v10565_v34 }
 0x788   : > { %4119 = vmatprep.subr.bf16.mxu1 %v9181_v13  ;;  %4177 = vmatpush1.bf16.msra.mxu0 %v9218_v46  ;;  %v9235_v13 = vld [vmem:[#allocation8 + $0x32c] ss:$16 sps:$4 sm:$0xff]  }
 0x789   : > { %8633 = vmatprep.subr.bf16.mxu0 %v9931_v17 }
 0x78a   : > { %8630 = vmatmul.mubr.bf16.vlgmr.msra.gmra.mrb[20].mxu1 %v3882_v18  ;;  %v9247_v18 = vld [vmem:[#allocation8 + $0x36c] ss:$16 sps:$4 sm:$0xff]  }
 0x78b   : > { %4120 = vmatpush1.bf16.msra.mxu1 %v9179_v16  ;;  %4151 = vmatprep.mubr.bf16.mxu1 %v9933_v0  ;;  %v9239_v16 = vld [vmem:[#allocation8 + $0x348] ss:$16 sps:$4 sm:$0xff]  }
 0x78c   : > { %4121 = vmatprep.subr.bf16.mxu1 %v9187_v20  ;;  %v9245_v20 = vld [vmem:[#allocation8 + $0x368] ss:$16 sps:$4 sm:$0xff]  }
 0x78f   : > { %4122 = vmatpush1.bf16.msra.mxu1 %v9185_v22  ;;  %v9253_v22 = vld [vmem:[#allocation8 + $0x38c] ss:$16 sps:$4 sm:$0xff]  }
 0x790   : > { %4123 = vmatprep.subr.bf16.mxu1 %v9193_v24  ;;  %v9251_v24 = vld [vmem:[#allocation8 + $0x388] ss:$16 sps:$4 sm:$0xff]  }
 0x793   : > { %4124 = vmatpush1.bf16.msra.mxu1 %v9191_v25  ;;  %v9259_v25 = vld [vmem:[#allocation8 + $0x3ac] ss:$16 sps:$4 sm:$0xff]  }
 0x794   : > { %4125 = vmatprep.subr.bf16.mxu1 %v9199_v35  ;;  %v9257_v35 = vld [vmem:[#allocation8 + $0x3a8] ss:$16 sps:$4 sm:$0xff]  }
 0x797   : > { %4126 = vmatpush1.bf16.msra.mxu1 %v9197_v36  ;;  %v9262_v36 = vld [vmem:[#allocation8 + $0x3c4] ss:$16 sps:$4 sm:$0xff]  }
 0x798   : > { %4127 = vmatprep.subr.bf16.mxu1 %v9205_v37  ;;  %v9260_v37 = vld [vmem:[#allocation8 + $0x3c0] ss:$16 sps:$4 sm:$0xff]  }
 0x79b   : > { %4128 = vmatpush1.bf16.msra.mxu1 %v9203_v38  ;;  %v9265_v38 = vld [vmem:[#allocation8 + $0x3cc] ss:$16 sps:$4 sm:$0xff]  }
 0x79c   : > { %4129 = vmatprep.subr.bf16.mxu1 %v9211_v39  ;;  %v9263_v39 = vld [vmem:[#allocation8 + $0x3c8] ss:$16 sps:$4 sm:$0xff]  }
 0x79f   : > { %4130 = vmatpush1.bf16.msra.mxu1 %v9209_v40  ;;  %v9268_v40 = vld [vmem:[#allocation8 + $0x3e4] ss:$16 sps:$4 sm:$0xff]  }
 0x7a0   : > { %4131 = vmatprep.subr.bf16.mxu1 %v9217_v43  ;;  %v9269_v43 = vld [vmem:[#allocation8 + $0x3e8] ss:$16 sps:$4 sm:$0xff]  }
 0x7a3   : > { %4132 = vmatpush1.bf16.msra.mxu1 %v9215_v44  ;;  %v9274_v44 = vld [vmem:[#allocation8 + $0x40c] ss:$16 sps:$4 sm:$0xff]  }
 0x7a4   : > { %4133 = vmatprep.subr.bf16.mxu1 %v9223_v47 }
 0x7a7   : > { %4134 = vmatpush1.bf16.msra.mxu1 %v9221_v48 }
 0x7a8   : > { %4452 = vmatprep.subr.bf16.mxu1 %v9226_v49 }
 0x85d   : > { %v3917_v50 = vpop.f32.mrb[20].mxu1 }
 0x85e   : > { %v3918_v51 = vadd.f32 %v10578_v1, %v3917_v50  ;;  %v8631_v52 = vpop.f32.mrb[21].mxu1 }
 0x85f   : > { %v3920_v53 = vpop.f32.mrb[22].mxu1 }
 0x860   : > { %v3921_v54 = vadd.f32 %v10578_v1, %v3920_v53  ;;  %v8632_v55 = vpop.f32.mrb[23].mxu1  ;;  %v3924_v56 = vmax.f32 %v3918_v51, 0.0 }
 0x861   : > { %v9280_v55 = vld [vmem:[#allocation8 + $0x42c] ss:$16 sps:$4 sm:$0xff]  }
 0x862   : > { %v3925_v57 = vmax.f32 %v3921_v54, 0.0  ;;  %v9272_v54 = vld [vmem:[#allocation8 + $0x408] ss:$16 sps:$4 sm:$0xff]  }
 0x864   : > { %v3926_v58 = vpack.c.bf16 %v3925_v57, %v3924_v56  ;;  %v9278_v56 = vld [vmem:[#allocation8 + $0x428] ss:$16 sps:$4 sm:$0xff]   ;;  %v9286_v57 = vld [vmem:[#allocation8 + $0x44c] ss:$16 sps:$4 sm:$0xff]  }
 0x866   : > { %4152 = vmatmul.mubr.bf16.vlgmr.msra.gmra.mrb[16].mxu1 %v3926_v58  ;;  %4195 = vmatmul.mubr.bf16.vlgmr.msra.gmra.mrb[36].mxu0 %v3926_v58  ;;  %v9284_v58 = vld [vmem:[#allocation8 + $0x448] ss:$16 sps:$4 sm:$0xff]  }
 0x867   : > { %8634 = vmatpush3.bf16.msra.mxu0 %v10523_v27  ;;  %8649 = vmatprep.mubr.msk.bf16.mxu0 %vm9932_vm3, %v9931_v17 }
 0x868   : > { %8635 = vmatprep.subr.bf16.mxu0 %v9931_v17  ;;  %4453 = vmatpush1.bf16.msra.mxu1 %v9224_v59  ;;  %v9292_v59 = vld [vmem:[#allocation8 + $0x46c] ss:$16 sps:$4 sm:$0xff]  }
 0x869   : > { %4454 = vmatprep.subr.bf16.mxu1 %v9232_v60  ;;  %4484 = vmatprep.mubr.bf16.mxu1 %v9933_v0  ;;  %v9298_v60 = vld [vmem:[#allocation8 + $0x48c] ss:$16 sps:$4 sm:$0xff]  }
 0x86b   : > { %8636 = vmatpush3.bf16.msra.mxu0 %v10529_v28 }
 0x86c   : > { %8637 = vmatprep.subr.bf16.mxu0 %v9931_v17  ;;  %4455 = vmatpush1.bf16.msra.mxu1 %v9230_v61  ;;  %v9304_v61 = vld [vmem:[#allocation8 + $0x4ac] ss:$16 sps:$4 sm:$0xff]  }
 0x86d   : > { %4456 = vmatprep.subr.bf16.mxu1 %v9238_v62  ;;  %v4547_v62 = vld [vmem:[#allocation2 + $0x60] sm:$0xff] }
 0x86f   : > { %8638 = vmatpush3.bf16.msra.mxu0 %v10533_v29 }
 0x870   : > { %8639 = vmatprep.subr.bf16.mxu0 %v9931_v17  ;;  %4457 = vmatpush1.bf16.msra.mxu1 %v9236_v63  ;;  %v4546_v63 = vld [vmem:[#allocation2 + $0x20] sm:$0xff] }
 0x871   : > { %4458 = vmatprep.subr.bf16.mxu1 %v9244_v2  ;;  %v4548_v2 = vpack.c.bf16 %v4547_v62, %v4546_v63  ;;  %v9329_v62 = vld [vmem:[#allocation8 + $0x528] ss:$16 sps:$4 sm:$0xff]   ;;  %v9337_v63 = vld [vmem:[#allocation8 + $0x54c] ss:$16 sps:$4 sm:$0xff]  }
 0x873   : > { %8640 = vmatpush3.bf16.msra.mxu0 %v10539_v30 }
 0x874   : > { %8641 = vmatprep.subr.bf16.mxu0 %v9931_v17  ;;  %4459 = vmatpush1.bf16.msra.mxu1 %v9242_v3  ;;  %v9283_v3 = vld [vmem:[#allocation8 + $0x424] ss:$16 sps:$4 sm:$0xff]  }
 0x875   : > { %4460 = vmatprep.subr.bf16.mxu1 %v9250_v4  ;;  %v9281_v4 = vld [vmem:[#allocation8 + $0x420] ss:$16 sps:$4 sm:$0xff]  }
 0x877   : > { %8642 = vmatpush3.bf16.msra.mxu0 %v10545_v31 }
 0x878   : > { %8643 = vmatprep.subr.bf16.mxu0 %v9931_v17  ;;  %4461 = vmatpush1.bf16.msra.mxu1 %v9248_v5  ;;  %v9295_v5 = vld [vmem:[#allocation8 + $0x464] ss:$16 sps:$4 sm:$0xff]  }
 0x879   : > { %4462 = vmatprep.subr.bf16.mxu1 %v9256_v6  ;;  %v9293_v6 = vld [vmem:[#allocation8 + $0x460] ss:$16 sps:$4 sm:$0xff]  }
 0x87b   : > { %8644 = vmatpush3.bf16.msra.mxu0 %v10553_v32 }
 0x87c   : > { %8645 = vmatprep.subr.bf16.mxu0 %v9931_v17  ;;  %4463 = vmatpush1.bf16.msra.mxu1 %v9254_v7  ;;  %v9299_v7 = vld [vmem:[#allocation8 + $0x480] ss:$16 sps:$4 sm:$0xff]  }
 0x87d   : > { %4464 = vmatprep.subr.bf16.mxu1 %v9262_v36 }
 0x87f   : > { %8646 = vmatpush3.bf16.msra.mxu0 %v10559_v33 }
 0x880   : > { %8647 = vmatprep.subr.bf16.mxu0 %v9931_v17  ;;  %4465 = vmatpush1.bf16.msra.mxu1 %v9260_v37 }
 0x881   : > { %4466 = vmatprep.subr.bf16.mxu1 %v9268_v40 }
 0x883   : > { %8648 = vmatpush3.bf16.msra.mxu0 %v10565_v34 }
 0x884   : > { %4495 = vmatprep.subr.bf16.mxu0 %v9229_v8  ;;  %4467 = vmatpush1.bf16.msra.mxu1 %v9266_v41  ;;  %v9307_v8 = vld [vmem:[#allocation8 + $0x4a4] ss:$16 sps:$4 sm:$0xff]   ;;  %v9320_v41 = vld [vmem:[#allocation8 + $0x500] ss:$16 sps:$4 sm:$0xff]  }
 0x885   : > { %8653 = vmatprep.subr.bf16.mxu1 %v9931_v17 }
 0x886   : > { %8650 = vmatmul.mubr.bf16.vlgmr.msra.gmra.mrb[40].mxu0 %v4215_v12  ;;  %v9313_v12 = vld [vmem:[#allocation8 + $0x4c4] ss:$16 sps:$4 sm:$0xff]  }
 0x887   : > { %4496 = vmatpush1.bf16.msra.mxu0 %v9227_v11  ;;  %4527 = vmatprep.mubr.bf16.mxu0 %v9933_v0  ;;  %v9308_v11 = vld [vmem:[#allocation8 + $0x4c8] ss:$16 sps:$4 sm:$0xff]  }
 0x888   : > { %4497 = vmatprep.subr.bf16.mxu0 %v9235_v13  ;;  %v9311_v13 = vld [vmem:[#allocation8 + $0x4c0] ss:$16 sps:$4 sm:$0xff]  }
 0x88b   : > { %4498 = vmatpush1.bf16.msra.mxu0 %v9233_v14  ;;  %v9316_v14 = vld [vmem:[#allocation8 + $0x4ec] ss:$16 sps:$4 sm:$0xff]  }
 0x88c   : > { %4499 = vmatprep.subr.bf16.mxu0 %v9241_v15  ;;  %v9314_v15 = vld [vmem:[#allocation8 + $0x4e8] ss:$16 sps:$4 sm:$0xff]  }
 0x88f   : > { %4500 = vmatpush1.bf16.msra.mxu0 %v9239_v16  ;;  %v9319_v16 = vld [vmem:[#allocation8 + $0x4e4] ss:$16 sps:$4 sm:$0xff]  }
 0x890   : > { %4501 = vmatprep.subr.bf16.mxu0 %v9247_v18  ;;  %v9317_v18 = vld [vmem:[#allocation8 + $0x4e0] ss:$16 sps:$4 sm:$0xff]  }
 0x893   : > { %4502 = vmatpush1.bf16.msra.mxu0 %v9245_v20  ;;  %v9322_v20 = vld [vmem:[#allocation8 + $0x504] ss:$16 sps:$4 sm:$0xff]  }
 0x894   : > { %4503 = vmatprep.subr.bf16.mxu0 %v9253_v22 }
 0x897   : > { %4504 = vmatpush1.bf16.msra.mxu0 %v9251_v24 }
 0x898   : > { %4505 = vmatprep.subr.bf16.mxu0 %v9259_v25 }
 0x89b   : > { %4506 = vmatpush1.bf16.msra.mxu0 %v9257_v35 }
 0x89c   : > { %4507 = vmatprep.subr.bf16.mxu0 %v9265_v38 }
 0x89f   : > { %4508 = vmatpush1.bf16.msra.mxu0 %v9263_v39 }
 0x8a0   : > { %4509 = vmatprep.subr.bf16.mxu0 %v9271_v42  ;;  %v9328_v42 = vld [vmem:[#allocation8 + $0x524] ss:$16 sps:$4 sm:$0xff]  }
 0x8a3   : > { %4510 = vmatpush1.bf16.msra.mxu0 %v9269_v43  ;;  %v10657_v43 = vld [vmem:[#allocation5] sm:$0xff]  }
 0x8a4   : > { %4828 = vmatprep.subr.bf16.mxu0 %v9274_v44  ;;  %v9326_v44 = vld [vmem:[#allocation8 + $0x520] ss:$16 sps:$4 sm:$0xff]  }
 0x959   : > { %v4250_v45 = vpop.f32.mrb[40].mxu0 }
 0x95a   : > { %v4251_v46 = vadd.f32 %v10578_v1, %v4250_v45  ;;  %v8651_v47 = vpop.f32.mrb[41].mxu0  ;;  %v9334_v45 = vld [vmem:[#allocation8 + $0x544] ss:$16 sps:$4 sm:$0xff]  }
 0x95b   : > { %v4253_v48 = vpop.f32.mrb[42].mxu0  ;;  %v9332_v47 = vld [vmem:[#allocation8 + $0x540] ss:$16 sps:$4 sm:$0xff]  }
 0x95c   : > { %v4254_v49 = vadd.f32 %v10578_v1, %v4253_v48  ;;  %v8652_v50 = vpop.f32.mrb[43].mxu0  ;;  %v4257_v51 = vmax.f32 %v4251_v46, 0.0  ;;  %v10664_v46 = vld [vmem:[#allocation5 + $0x8] sm:$0xff]   ;;  %v9340_v48 = vld [vmem:[#allocation8 + $0x564] ss:$16 sps:$4 sm:$0xff]  }
 0x95d   : > { %v9338_v50 = vld [vmem:[#allocation8 + $0x560] ss:$16 sps:$4 sm:$0xff]  }
 0x95e   : > { %v4258_v52 = vmax.f32 %v4254_v49, 0.0  ;;  %v10668_v49 = vld [vmem:[#allocation5 + $0x10] sm:$0xff]  }
 0x960   : > { %v4259_v53 = vpack.c.bf16 %v4258_v52, %v4257_v51  ;;  %v9346_v51 = vld [vmem:[#allocation8 + $0x584] ss:$16 sps:$4 sm:$0xff]   ;;  %v10672_v52 = vld [vmem:[#allocation5 + $0x18] sm:$0xff]  }
 0x962   : > { %4485 = vmatmul.mubr.bf16.vlgmr.msra.gmra.mrb[16].mxu1 %v4259_v53  ;;  %4528 = vmatmul.mubr.bf16.vlgmr.msra.gmra.mrb[36].mxu0 %v4259_v53  ;;  %v9344_v53 = vld [vmem:[#allocation8 + $0x580] ss:$16 sps:$4 sm:$0xff]  }
 0x963   : > { %8654 = vmatpush3.bf16.msra.mxu1 %v10523_v27  ;;  %8669 = vmatprep.mubr.msk.bf16.mxu1 %vm9932_vm3, %v9931_v17  ;;  %v9290_v27 = vld [vmem:[#allocation8 + $0x468] ss:$16 sps:$4 sm:$0xff]  }
 0x964   : > { %8655 = vmatprep.subr.bf16.mxu1 %v9931_v17  ;;  %4829 = vmatpush1.bf16.msra.mxu0 %v9272_v54  ;;  %v9352_v54 = vld [vmem:[#allocation8 + $0x5a4] ss:$16 sps:$4 sm:$0xff]  }
 0x965   : > { %4830 = vmatprep.subr.bf16.mxu0 %v9280_v55  ;;  %4860 = vmatprep.mubr.bf16.mxu0 %v9933_v0  ;;  %v10676_v55 = vld [vmem:[#allocation5 + $0x20] sm:$0xff]  }
 0x967   : > { %8656 = vmatpush3.bf16.msra.mxu1 %v10529_v28  ;;  %v9296_v28 = vld [vmem:[#allocation8 + $0x488] ss:$16 sps:$4 sm:$0xff]  }
 0x968   : > { %8657 = vmatprep.subr.bf16.mxu1 %v9931_v17  ;;  %4831 = vmatpush1.bf16.msra.mxu0 %v9278_v56  ;;  %v9350_v56 = vld [vmem:[#allocation8 + $0x5a0] ss:$16 sps:$4 sm:$0xff]  }
 0x969   : > { %4832 = vmatprep.subr.bf16.mxu0 %v9286_v57  ;;  %v10680_v57 = vld [vmem:[#allocation5 + $0x28] sm:$0xff]  }
 0x96b   : > { %8658 = vmatpush3.bf16.msra.mxu1 %v10533_v29  ;;  %v9302_v29 = vld [vmem:[#allocation8 + $0x4a8] ss:$16 sps:$4 sm:$0xff]  }
 0x96c   : > { %8659 = vmatprep.subr.bf16.mxu1 %v9931_v17  ;;  %4833 = vmatpush1.bf16.msra.mxu0 %v9284_v58  ;;  %v10684_v58 = vld [vmem:[#allocation5 + $0x30] sm:$0xff]  }
 0x96d   : > { %4834 = vmatprep.subr.bf16.mxu0 %v9292_v59  ;;  %v9325_v59 = vld [vmem:[#allocation8 + $0x50c] ss:$16 sps:$4 sm:$0xff]  }
 0x96f   : > { %8660 = vmatpush3.bf16.msra.mxu1 %v10539_v30  ;;  %v9277_v30 = vld [vmem:[#allocation8 + $0x404] ss:$16 sps:$4 sm:$0xff]  }
 0x970   : > { %8661 = vmatprep.subr.bf16.mxu1 %v9931_v17  ;;  %4835 = vmatpush1.bf16.msra.mxu0 %v9290_v27  ;;  %v4880_v27 = vld [vmem:[#allocation2 + $0x68] sm:$0xff] }
 0x971   : > { %4836 = vmatprep.subr.bf16.mxu0 %v9298_v60  ;;  %v10688_v60 = vld [vmem:[#allocation5 + $0x38] sm:$0xff]  }
 0x973   : > { %8662 = vmatpush3.bf16.msra.mxu1 %v10545_v31  ;;  %v9275_v31 = vld [vmem:[#allocation8 + $0x400] ss:$16 sps:$4 sm:$0xff]  }
 0x974   : > { %8663 = vmatprep.subr.bf16.mxu1 %v9931_v17  ;;  %4837 = vmatpush1.bf16.msra.mxu0 %v9296_v28  ;;  %v4879_v28 = vld [vmem:[#allocation2 + $0x28] sm:$0xff] }
 0x975   : > { %4838 = vmatprep.subr.bf16.mxu0 %v9304_v61  ;;  %v9323_v61 = vld [vmem:[#allocation8 + $0x508] ss:$16 sps:$4 sm:$0xff]  }
 0x977   : > { %8664 = vmatpush3.bf16.msra.mxu1 %v10553_v32  ;;  %v9289_v32 = vld [vmem:[#allocation8 + $0x444] ss:$16 sps:$4 sm:$0xff]  }
 0x978   : > { %8665 = vmatprep.subr.bf16.mxu1 %v9931_v17  ;;  %4839 = vmatpush1.bf16.msra.mxu0 %v9302_v29  ;;  %v4881_v29 = vpack.c.bf16 %v4880_v27, %v4879_v28  ;;  %v9385_v27 = vld [vmem:[#allocation8 + $0x644] ss:$16 sps:$4 sm:$0xff]   ;;  %v9383_v28 = vld [vmem:[#allocation8 + $0x640] ss:$16 sps:$4 sm:$0xff]  }
 0x979   : > { %4840 = vmatprep.subr.bf16.mxu0 %v9310_v10  ;;  %v9362_v10 = vld [vmem:[#allocation8 + $0x5e0] ss:$16 sps:$4 sm:$0xff]  }
 0x97b   : > { %8666 = vmatpush3.bf16.msra.mxu1 %v10559_v33  ;;  %v9287_v33 = vld [vmem:[#allocation8 + $0x440] ss:$16 sps:$4 sm:$0xff]  }
 0x97c   : > { %8667 = vmatprep.subr.bf16.mxu1 %v9931_v17  ;;  %4841 = vmatpush1.bf16.msra.mxu0 %v9308_v11  ;;  %v9367_v11 = vld [vmem:[#allocation8 + $0x5ec] ss:$16 sps:$4 sm:$0xff]  }
 0x97d   : > { %4842 = vmatprep.subr.bf16.mxu0 %v9316_v14 }
 0x97f   : > { %8668 = vmatpush3.bf16.msra.mxu1 %v10565_v34  ;;  %v9301_v34 = vld [vmem:[#allocation8 + $0x484] ss:$16 sps:$4 sm:$0xff]  }
 0x980   : > { %4785 = vmatprep.subr.bf16.mxu1 %v9277_v30  ;;  %4843 = vmatpush1.bf16.msra.mxu0 %v9314_v15  ;;  %v9331_v30 = vld [vmem:[#allocation8 + $0x52c] ss:$16 sps:$4 sm:$0xff]  }
 0x981   : > { %8673 = vmatprep.subr.bf16.mxu0 %v9931_v17 }
 0x982   : > { %8670 = vmatmul.mubr.bf16.vlgmr.msra.gmra.mrb[24].mxu1 %v4548_v2  ;;  %v9343_v2 = vld [vmem:[#allocation8 + $0x56c] ss:$16 sps:$4 sm:$0xff]  }
 0x983   : > { %4786 = vmatpush1.bf16.msra.mxu1 %v9275_v31  ;;  %4817 = vmatprep.mubr.bf16.mxu1 %v9933_v0  ;;  %v9335_v31 = vld [vmem:[#allocation8 + $0x548] ss:$16 sps:$4 sm:$0xff]  }
 0x984   : > { %4787 = vmatprep.subr.bf16.mxu1 %v9283_v3  ;;  %v9341_v3 = vld [vmem:[#allocation8 + $0x568] ss:$16 sps:$4 sm:$0xff]  }
 0x987   : > { %4788 = vmatpush1.bf16.msra.mxu1 %v9281_v4  ;;  %v9349_v4 = vld [vmem:[#allocation8 + $0x58c] ss:$16 sps:$4 sm:$0xff]  }
 0x988   : > { %4789 = vmatprep.subr.bf16.mxu1 %v9289_v32  ;;  %v9347_v32 = vld [vmem:[#allocation8 + $0x588] ss:$16 sps:$4 sm:$0xff]  }
 0x98b   : > { %4790 = vmatpush1.bf16.msra.mxu1 %v9287_v33  ;;  %v9355_v33 = vld [vmem:[#allocation8 + $0x5ac] ss:$16 sps:$4 sm:$0xff]  }
 0x98c   : > { %4791 = vmatprep.subr.bf16.mxu1 %v9295_v5  ;;  %v9353_v5 = vld [vmem:[#allocation8 + $0x5a8] ss:$16 sps:$4 sm:$0xff]  }
 0x98f   : > { %4792 = vmatpush1.bf16.msra.mxu1 %v9293_v6  ;;  %v9358_v6 = vld [vmem:[#allocation8 + $0x5c4] ss:$16 sps:$4 sm:$0xff]  }
 0x990   : > { %4793 = vmatprep.subr.bf16.mxu1 %v9301_v34  ;;  %v9356_v34 = vld [vmem:[#allocation8 + $0x5c0] ss:$16 sps:$4 sm:$0xff]  }
 0x993   : > { %4794 = vmatpush1.bf16.msra.mxu1 %v9299_v7  ;;  %v9361_v7 = vld [vmem:[#allocation8 + $0x5cc] ss:$16 sps:$4 sm:$0xff]  }
 0x994   : > { %4795 = vmatprep.subr.bf16.mxu1 %v9307_v8  ;;  %v9359_v8 = vld [vmem:[#allocation8 + $0x5c8] ss:$16 sps:$4 sm:$0xff]  }
 0x997   : > { %4796 = vmatpush1.bf16.msra.mxu1 %v9305_v9  ;;  %v9364_v9 = vld [vmem:[#allocation8 + $0x5e4] ss:$16 sps:$4 sm:$0xff]  }
 0x998   : > { %4797 = vmatprep.subr.bf16.mxu1 %v9313_v12  ;;  %v9365_v12 = vld [vmem:[#allocation8 + $0x5e8] ss:$16 sps:$4 sm:$0xff]  }
 0x99b   : > { %4798 = vmatpush1.bf16.msra.mxu1 %v9311_v13  ;;  %v9370_v13 = vld [vmem:[#allocation8 + $0x60c] ss:$16 sps:$4 sm:$0xff]  }
 0x99c   : > { %4799 = vmatprep.subr.bf16.mxu1 %v9319_v16 }
 0x99f   : > { %4800 = vmatpush1.bf16.msra.mxu1 %v9317_v18 }
 0x9a0   : > { %5118 = vmatprep.subr.bf16.mxu1 %v9322_v20 }
 0xa55   : > { %v4583_v22 = vpop.f32.mrb[24].mxu1 }
 0xa56   : > { %v4584_v24 = vadd.f32 %v10578_v1, %v4583_v22  ;;  %v8671_v25 = vpop.f32.mrb[25].mxu1 }
 0xa57   : > { %v4586_v35 = vpop.f32.mrb[26].mxu1 }
 0xa58   : > { %v4587_v36 = vadd.f32 %v10578_v1, %v4586_v35  ;;  %v8672_v37 = vpop.f32.mrb[27].mxu1  ;;  %v4590_v38 = vmax.f32 %v4584_v24, 0.0 }
 0xa59   : > { %v9376_v37 = vld [vmem:[#allocation8 + $0x62c] ss:$16 sps:$4 sm:$0xff]  }
 0xa5a   : > { %v4591_v39 = vmax.f32 %v4587_v36, 0.0  ;;  %v9368_v36 = vld [vmem:[#allocation8 + $0x608] ss:$16 sps:$4 sm:$0xff]  }
 0xa5c   : > { %v4592_v40 = vpack.c.bf16 %v4591_v39, %v4590_v38  ;;  %v9374_v38 = vld [vmem:[#allocation8 + $0x628] ss:$16 sps:$4 sm:$0xff]   ;;  %v9382_v39 = vld [vmem:[#allocation8 + $0x64c] ss:$16 sps:$4 sm:$0xff]  }
 0xa5e   : > { %4818 = vmatmul.mubr.bf16.vlgmr.msra.gmra.mrb[16].mxu1 %v4592_v40  ;;  %4861 = vmatmul.mubr.bf16.vlgmr.msra.gmra.mrb[36].mxu0 %v4592_v40  ;;  %v9388_v40 = vld [vmem:[#allocation8 + $0x66c] ss:$16 sps:$4 sm:$0xff]  }
 0xa5f   : > { %8674 = vmatpush3.bf16.msra.mxu0 %v10657_v43  ;;  %8689 = vmatprep.mubr.msk.bf16.mxu0 %vm9932_vm3, %v9931_v17 }
 0xa60   : > { %8675 = vmatprep.subr.bf16.mxu0 %v9931_v17  ;;  %5119 = vmatpush1.bf16.msra.mxu1 %v9320_v41  ;;  %v9386_v41 = vld [vmem:[#allocation8 + $0x668] ss:$16 sps:$4 sm:$0xff]  }
 0xa61   : > { %5120 = vmatprep.subr.bf16.mxu1 %v9328_v42  ;;  %5150 = vmatprep.mubr.bf16.mxu1 %v9933_v0  ;;  %v9394_v42 = vld [vmem:[#allocation8 + $0x68c] ss:$16 sps:$4 sm:$0xff]  }
 0xa63   : > { %8676 = vmatpush3.bf16.msra.mxu0 %v10664_v46 }
 0xa64   : > { %8677 = vmatprep.subr.bf16.mxu0 %v9931_v17  ;;  %5121 = vmatpush1.bf16.msra.mxu1 %v9326_v44  ;;  %v9392_v44 = vld [vmem:[#allocation8 + $0x688] ss:$16 sps:$4 sm:$0xff]  }
 0xa65   : > { %5122 = vmatprep.subr.bf16.mxu1 %v9334_v45  ;;  %v9400_v45 = vld [vmem:[#allocation8 + $0x6ac] ss:$16 sps:$4 sm:$0xff]  }
 0xa67   : > { %8678 = vmatpush3.bf16.msra.mxu0 %v10668_v49 }
 0xa68   : > { %8679 = vmatprep.subr.bf16.mxu0 %v9931_v17  ;;  %5123 = vmatpush1.bf16.msra.mxu1 %v9332_v47  ;;  %v9398_v47 = vld [vmem:[#allocation8 + $0x6a8] ss:$16 sps:$4 sm:$0xff]  }
 0xa69   : > { %5124 = vmatprep.subr.bf16.mxu1 %v9340_v48  ;;  %v9373_v48 = vld [vmem:[#allocation8 + $0x604] ss:$16 sps:$4 sm:$0xff]  }
 0xa6b   : > { %8680 = vmatpush3.bf16.msra.mxu0 %v10672_v52 }
 0xa6c   : > { %8681 = vmatprep.subr.bf16.mxu0 %v9931_v17  ;;  %5125 = vmatpush1.bf16.msra.mxu1 %v9338_v50  ;;  %v5213_v50 = vld [vmem:[#allocation2 + $0x70] sm:$0xff] }
 0xa6d   : > { %5126 = vmatprep.subr.bf16.mxu1 %v9346_v51  ;;  %v5212_v51 = vld [vmem:[#allocation2 + $0x30] sm:$0xff] }
 0xa6f   : > { %8682 = vmatpush3.bf16.msra.mxu0 %v10676_v55 }
 0xa70   : > { %8683 = vmatprep.subr.bf16.mxu0 %v9931_v17  ;;  %5127 = vmatpush1.bf16.msra.mxu1 %v9344_v53  ;;  %v9371_v53 = vld [vmem:[#allocation8 + $0x600] ss:$16 sps:$4 sm:$0xff]  }
 0xa71   : > { %5128 = vmatprep.subr.bf16.mxu1 %v9352_v54  ;;  %v5214_v54 = vpack.c.bf16 %v5213_v50, %v5212_v51  ;;  %v9449_v50 = vld [vmem:[#allocation8 + $0x7a8] ss:$16 sps:$4 sm:$0xff]   ;;  %v9454_v51 = vld [vmem:[#allocation8 + $0x7c4] ss:$16 sps:$4 sm:$0xff]  }
 0xa73   : > { %8684 = vmatpush3.bf16.msra.mxu0 %v10680_v57 }
 0xa74   : > { %8685 = vmatprep.subr.bf16.mxu0 %v9931_v17  ;;  %5129 = vmatpush1.bf16.msra.mxu1 %v9350_v56  ;;  %v9379_v56 = vld [vmem:[#allocation8 + $0x624] ss:$16 sps:$4 sm:$0xff]  }
 0xa75   : > { %5130 = vmatprep.subr.bf16.mxu1 %v9358_v6  ;;  %v9415_v6 = vld [vmem:[#allocation8 + $0x6e4] ss:$16 sps:$4 sm:$0xff]  }
 0xa77   : > { %8686 = vmatpush3.bf16.msra.mxu0 %v10684_v58 }
 0xa78   : > { %8687 = vmatprep.subr.bf16.mxu0 %v9931_v17  ;;  %5131 = vmatpush1.bf16.msra.mxu1 %v9356_v34  ;;  %v9413_v34 = vld [vmem:[#allocation8 + $0x6e0] ss:$16 sps:$4 sm:$0xff]  }
 0xa79   : > { %5132 = vmatprep.subr.bf16.mxu1 %v9364_v9  ;;  %v10718_v9 = vld [vmem:[%s11017_s2] ss:$0 sm:$0xff] }
 0xa7b   : > { %8688 = vmatpush3.bf16.msra.mxu0 %v10688_v60 }
 0xa7c   : > { %5161 = vmatprep.subr.bf16.mxu0 %v9325_v59  ;;  %5133 = vmatpush1.bf16.msra.mxu1 %v9362_v10  ;;  %v9377_v59 = vld [vmem:[#allocation8 + $0x620] ss:$16 sps:$4 sm:$0xff]  }
 0xa7d   : > { %8693 = vmatprep.subr.bf16.mxu1 %v9931_v17 }
 0xa7e   : > { %8690 = vmatmul.mubr.bf16.vlgmr.msra.gmra.mrb[44].mxu0 %v4881_v29  ;;  %v9389_v29 = vld [vmem:[#allocation8 + $0x660] ss:$16 sps:$4 sm:$0xff]  }
 0xa7f   : > { %5162 = vmatpush1.bf16.msra.mxu0 %v9323_v61  ;;  %5193 = vmatprep.mubr.bf16.mxu0 %v9933_v0  ;;  %v9391_v61 = vld [vmem:[#allocation8 + $0x664] ss:$16 sps:$4 sm:$0xff]  }
 0xa80   : > { %5163 = vmatprep.subr.bf16.mxu0 %v9331_v30  ;;  %v9397_v30 = vld [vmem:[#allocation8 + $0x684] ss:$16 sps:$4 sm:$0xff]  }
 0xa83   : > { %5164 = vmatpush1.bf16.msra.mxu0 %v9329_v62  ;;  %v9395_v62 = vld [vmem:[#allocation8 + $0x680] ss:$16 sps:$4 sm:$0xff]  }
 0xa84   : > { %5165 = vmatprep.subr.bf16.mxu0 %v9337_v63  ;;  %v9403_v63 = vld [vmem:[#allocation8 + $0x6a4] ss:$16 sps:$4 sm:$0xff]  }
 0xa87   : > { %5166 = vmatpush1.bf16.msra.mxu0 %v9335_v31  ;;  %v9401_v31 = vld [vmem:[#allocation8 + $0x6a0] ss:$16 sps:$4 sm:$0xff]  }
 0xa88   : > { %5167 = vmatprep.subr.bf16.mxu0 %v9343_v2  ;;  %v9406_v2 = vld [vmem:[#allocation8 + $0x6cc] ss:$16 sps:$4 sm:$0xff]  }
 0xa8b   : > { %5168 = vmatpush1.bf16.msra.mxu0 %v9341_v3  ;;  %v9404_v3 = vld [vmem:[#allocation8 + $0x6c8] ss:$16 sps:$4 sm:$0xff]  }
 0xa8c   : > { %5169 = vmatprep.subr.bf16.mxu0 %v9349_v4  ;;  %v9409_v4 = vld [vmem:[#allocation8 + $0x6c4] ss:$16 sps:$4 sm:$0xff]  }
 0xa8f   : > { %5170 = vmatpush1.bf16.msra.mxu0 %v9347_v32  ;;  %v9407_v32 = vld [vmem:[#allocation8 + $0x6c0] ss:$16 sps:$4 sm:$0xff]  }
 0xa90   : > { %5171 = vmatprep.subr.bf16.mxu0 %v9355_v33  ;;  %v9412_v33 = vld [vmem:[#allocation8 + $0x6ec] ss:$16 sps:$4 sm:$0xff]  }
 0xa93   : > { %5172 = vmatpush1.bf16.msra.mxu0 %v9353_v5  ;;  %v9410_v5 = vld [vmem:[#allocation8 + $0x6e8] ss:$16 sps:$4 sm:$0xff]  }
 0xa94   : > { %5173 = vmatprep.subr.bf16.mxu0 %v9361_v7  ;;  %v9418_v7 = vld [vmem:[#allocation8 + $0x704] ss:$16 sps:$4 sm:$0xff]  }
 0xa97   : > { %5174 = vmatpush1.bf16.msra.mxu0 %v9359_v8 }
 0xa98   : > { %5175 = vmatprep.subr.bf16.mxu0 %v9367_v11 }
 0xa9b   : > { %5176 = vmatpush1.bf16.msra.mxu0 %v9365_v12 }
 0xa9c   : > { %5494 = vmatprep.subr.bf16.mxu0 %v9370_v13 }
 0xb51   : > { %v4916_v14 = vpop.f32.mrb[44].mxu0 }
 0xb52   : > { %v4917_v15 = vadd.f32 %v10578_v1, %v4916_v14  ;;  %v8691_v16 = vpop.f32.mrb[45].mxu0 }
 0xb53   : > { %v4919_v18 = vpop.f32.mrb[46].mxu0 }
 0xb54   : > { %v4920_v20 = vadd.f32 %v10578_v1, %v4919_v18  ;;  %v8692_v22 = vpop.f32.mrb[47].mxu0  ;;  %v4923_v24 = vmax.f32 %v4917_v15, 0.0  ;;  %v9380_v1 = vld [vmem:[#allocation8 + $0x648] ss:$16 sps:$4 sm:$0xff]  }
 0xb55   : > { %v9424_v22 = vld [vmem:[#allocation8 + $0x724] ss:$16 sps:$4 sm:$0xff]  }
 0xb56   : > { %v4924_v25 = vmax.f32 %v4920_v20, 0.0  ;;  %v9416_v20 = vld [vmem:[#allocation8 + $0x700] ss:$16 sps:$4 sm:$0xff]  }
 0xb58   : > { %v4925_v35 = vpack.c.bf16 %v4924_v25, %v4923_v24  ;;  %v9422_v24 = vld [vmem:[#allocation8 + $0x720] ss:$16 sps:$4 sm:$0xff]   ;;  %v9430_v25 = vld [vmem:[#allocation8 + $0x744] ss:$16 sps:$4 sm:$0xff]  }
 0xb5a   : > { %5151 = vmatmul.mubr.bf16.vlgmr.msra.gmra.mrb[16].mxu1 %v4925_v35  ;;  %5194 = vmatmul.mubr.bf16.vlgmr.msra.gmra.mrb[36].mxu0 %v4925_v35  ;;  %v9428_v35 = vld [vmem:[#allocation8 + $0x740] ss:$16 sps:$4 sm:$0xff]  }
 0xb5b   : > { %8694 = vmatpush3.bf16.msra.mxu1 %v10657_v43  ;;  %8709 = vmatprep.mubr.msk.bf16.mxu1 %vm9932_vm3, %v9931_v17 }
 0xb5c   : > { %8695 = vmatprep.subr.bf16.mxu1 %v9931_v17  ;;  %5495 = vmatpush1.bf16.msra.mxu0 %v9368_v36  ;;  %v9436_v36 = vld [vmem:[#allocation8 + $0x764] ss:$16 sps:$4 sm:$0xff]  }
 0xb5d   : > { %5496 = vmatprep.subr.bf16.mxu0 %v9376_v37  ;;  %5526 = vmatprep.mubr.bf16.mxu0 %v9933_v0  ;;  %v9442_v37 = vld [vmem:[#allocation8 + $0x784] ss:$16 sps:$4 sm:$0xff]  }
 0xb5f   : > { %8696 = vmatpush3.bf16.msra.mxu1 %v10664_v46 }
 0xb60   : > { %8697 = vmatprep.subr.bf16.mxu1 %v9931_v17  ;;  %5497 = vmatpush1.bf16.msra.mxu0 %v9374_v38  ;;  %v9448_v38 = vld [vmem:[#allocation8 + $0x7a4] ss:$16 sps:$4 sm:$0xff]  }
 0xb61   : > { %5498 = vmatprep.subr.bf16.mxu0 %v9382_v39  ;;  %v5546_v39 = vld [vmem:[#allocation2 + $0x78] sm:$0xff] }
 0xb63   : > { %8698 = vmatpush3.bf16.msra.mxu1 %v10668_v49 }
 0xb64   : > { %8699 = vmatprep.subr.bf16.mxu1 %v9931_v17  ;;  %5499 = vmatpush1.bf16.msra.mxu0 %v9380_v1  ;;  %v5545_v1 = vld [vmem:[#allocation2 + $0x38] sm:$0xff] }
 0xb65   : > { %5500 = vmatprep.subr.bf16.mxu0 %v9388_v40  ;;  %v5547_v40 = vpack.c.bf16 %v5546_v39, %v5545_v1 }
 0xb67   : > { %8700 = vmatpush3.bf16.msra.mxu1 %v10672_v52 }
 0xb68   : > { %8701 = vmatprep.subr.bf16.mxu1 %v9931_v17  ;;  %5501 = vmatpush1.bf16.msra.mxu0 %v9386_v41  ;;  %v9427_v41 = vld [vmem:[#allocation8 + $0x72c] ss:$16 sps:$4 sm:$0xff]  }
 0xb69   : > { %5502 = vmatprep.subr.bf16.mxu0 %v9394_v42  ;;  %v9425_v42 = vld [vmem:[#allocation8 + $0x728] ss:$16 sps:$4 sm:$0xff]  }
 0xb6b   : > { %8702 = vmatpush3.bf16.msra.mxu1 %v10676_v55 }
 0xb6c   : > { %8703 = vmatprep.subr.bf16.mxu1 %v9931_v17  ;;  %5503 = vmatpush1.bf16.msra.mxu0 %v9392_v44  ;;  %v9439_v44 = vld [vmem:[#allocation8 + $0x76c] ss:$16 sps:$4 sm:$0xff]  }
 0xb6d   : > { %5504 = vmatprep.subr.bf16.mxu0 %v9400_v45  ;;  %v9437_v45 = vld [vmem:[#allocation8 + $0x768] ss:$16 sps:$4 sm:$0xff]  }
 0xb6f   : > { %8704 = vmatpush3.bf16.msra.mxu1 %v10680_v57 }
 0xb70   : > { %8705 = vmatprep.subr.bf16.mxu1 %v9931_v17  ;;  %5505 = vmatpush1.bf16.msra.mxu0 %v9398_v47  ;;  %v9443_v47 = vld [vmem:[#allocation8 + $0x788] ss:$16 sps:$4 sm:$0xff]  }
 0xb71   : > { %5506 = vmatprep.subr.bf16.mxu0 %v9406_v2 }
 0xb73   : > { %8706 = vmatpush3.bf16.msra.mxu1 %v10684_v58 }
 0xb74   : > { %8707 = vmatprep.subr.bf16.mxu1 %v9931_v17  ;;  %5507 = vmatpush1.bf16.msra.mxu0 %v9404_v3 }
 0xb75   : > { %5508 = vmatprep.subr.bf16.mxu0 %v9412_v33  ;;  %v5880_v33 = vlaneseq }
 0xb77   : > { %8708 = vmatpush3.bf16.msra.mxu1 %v10688_v60 }
 0xb78   : > { %5451 = vmatprep.subr.bf16.mxu1 %v9373_v48  ;;  %5509 = vmatpush1.bf16.msra.mxu0 %v9410_v5  ;;  %v9451_v48 = vld [vmem:[#allocation8 + $0x7ac] ss:$16 sps:$4 sm:$0xff]   ;;  %v10745_v5 = vshrl.u32 %v5880_v33, 7 }
 0xb79   : > { %8713 = vmatprep.subr.bf16.mxu0 %v9931_v17 }
 0xb7a   : > { %8710 = vmatmul.mubr.bf16.vlgmr.msra.gmra.mrb[28].mxu1 %v5214_v54  ;;  %v9452_v54 = vld [vmem:[#allocation8 + $0x7c0] ss:$16 sps:$4 sm:$0xff]  }
 0xb7b   : > { %5452 = vmatpush1.bf16.msra.mxu1 %v9371_v53  ;;  %5483 = vmatprep.mubr.bf16.mxu1 %v9933_v0  ;;  %v9457_v53 = vld [vmem:[#allocation8 + $0x7cc] ss:$16 sps:$4 sm:$0xff]  }
 0xb7c   : > { %5453 = vmatprep.subr.bf16.mxu1 %v9379_v56  ;;  %v9455_v56 = vld [vmem:[#allocation8 + $0x7c8] ss:$16 sps:$4 sm:$0xff]  }
 0xb7f   : > { %5454 = vmatpush1.bf16.msra.mxu1 %v9377_v59  ;;  %v9460_v59 = vld [vmem:[#allocation8 + $0x7e4] ss:$16 sps:$4 sm:$0xff]  }
 0xb80   : > { %5455 = vmatprep.subr.bf16.mxu1 %v9385_v27  ;;  %v9463_v27 = vld [vmem:[#allocation8 + $0x7ec] ss:$16 sps:$4 sm:$0xff]  }
 0xb83   : > { %5456 = vmatpush1.bf16.msra.mxu1 %v9383_v28  ;;  %v9458_v28 = vld [vmem:[#allocation8 + $0x7e0] ss:$16 sps:$4 sm:$0xff]  }
 0xb84   : > { %5457 = vmatprep.subr.bf16.mxu1 %v9391_v61  ;;  %v9461_v61 = vld [vmem:[#allocation8 + $0x7e8] ss:$16 sps:$4 sm:$0xff]  }
 0xb87   : > { %5458 = vmatpush1.bf16.msra.mxu1 %v9389_v29 }
 0xb88   : > { %5459 = vmatprep.subr.bf16.mxu1 %v9397_v30 }
 0xb8b   : > { %5460 = vmatpush1.bf16.msra.mxu1 %v9395_v62 }
 0xb8c   : > { %5461 = vmatprep.subr.bf16.mxu1 %v9403_v63 }
 0xb8f   : > { %5462 = vmatpush1.bf16.msra.mxu1 %v9401_v31 }
 0xb90   : > { %5463 = vmatprep.subr.bf16.mxu1 %v9409_v4 }
 0xb93   : > { %5464 = vmatpush1.bf16.msra.mxu1 %v9407_v32 }
 0xb94   : > { %5465 = vmatprep.subr.bf16.mxu1 %v9415_v6  ;;  %v5882_v6 = vsub.s32 0, %v10745_v5 }
 0xb97   : > { %5466 = vmatpush1.bf16.msra.mxu1 %v9413_v34  ;;  %v5890_v34 = vsub.s32 2, %v10745_v5 }
 0xb98   : > { %5784 = vmatprep.subr.bf16.mxu1 %v9418_v7  ;;  %v5878_v7 = vld [vmem:[#allocation10] sm:$0xf] }
 0xc4d   : > { %v5249_v8 = vpop.f32.mrb[28].mxu1 }
 0xc4e   : > { %v5250_v10 = vadd.f32 %v10718_v9, %v5249_v8  ;;  %v8711_v11 = vpop.f32.mrb[29].mxu1  ;;  %v5886_v8 = vsub.s32 1, %v10745_v5 }
 0xc4f   : > { %v5252_v12 = vpop.f32.mrb[30].mxu1  ;;  %v5891_v11 = vrot.slane %v5878_v7, %v5890_v34 }
 0xc50   : > { %v5253_v13 = vadd.f32 %v10718_v9, %v5252_v12  ;;  %v8712_v14 = vpop.f32.mrb[31].mxu1  ;;  %v5256_v15 = vmax.f32 %v5250_v10, 0.0  ;;  %v5883_v10 = vrot.slane %v5878_v7, %v5882_v6  ;;  %v5887_v12 = vrot.slane %v5878_v7, %v5886_v8 }
 0xc52   : > { %v5257_v16 = vmax.f32 %v5253_v13, 0.0 }
 0xc54   : > { %v5258_v18 = vpack.c.bf16 %v5257_v16, %v5256_v15 }
 0xc56   : > { %5484 = vmatmul.mubr.bf16.vlgmr.msra.gmra.mrb[16].mxu1 %v5258_v18  ;;  %5527 = vmatmul.mubr.bf16.vlgmr.msra.gmra.mrb[36].mxu0 %v5258_v18 }
 0xc57   : > { %8714 = vmatpush3.bf16.msra.mxu0 %v10657_v43  ;;  %8729 = vmatprep.mubr.msk.bf16.mxu0 %vm9932_vm3, %v9931_v17  ;;  %v9434_v43 = vld [vmem:[#allocation8 + $0x760] ss:$16 sps:$4 sm:$0xff]  }
 0xc58   : > { %8715 = vmatprep.subr.bf16.mxu0 %v9931_v17  ;;  %5785 = vmatpush1.bf16.msra.mxu1 %v9416_v20 }
 0xc59   : > { %5786 = vmatprep.subr.bf16.mxu1 %v9424_v22  ;;  %5816 = vmatprep.mubr.bf16.mxu1 %v9933_v0 }
 0xc5b   : > { %8716 = vmatpush3.bf16.msra.mxu0 %v10664_v46  ;;  %v9440_v46 = vld [vmem:[#allocation8 + $0x780] ss:$16 sps:$4 sm:$0xff]  }
 0xc5c   : > { %8717 = vmatprep.subr.bf16.mxu0 %v9931_v17  ;;  %5787 = vmatpush1.bf16.msra.mxu1 %v9422_v24 }
 0xc5d   : > { %5788 = vmatprep.subr.bf16.mxu1 %v9430_v25 }
 0xc5f   : > { %8718 = vmatpush3.bf16.msra.mxu0 %v10668_v49  ;;  %v9446_v49 = vld [vmem:[#allocation8 + $0x7a0] ss:$16 sps:$4 sm:$0xff]  }
 0xc60   : > { %8719 = vmatprep.subr.bf16.mxu0 %v9931_v17  ;;  %5789 = vmatpush1.bf16.msra.mxu1 %v9428_v35 }
 0xc61   : > { %5790 = vmatprep.subr.bf16.mxu1 %v9436_v36 }
 0xc63   : > { %8720 = vmatpush3.bf16.msra.mxu0 %v10672_v52  ;;  %v9421_v52 = vld [vmem:[#allocation8 + $0x70c] ss:$16 sps:$4 sm:$0xff]  }
 0xc64   : > { %8721 = vmatprep.subr.bf16.mxu0 %v9931_v17  ;;  %5791 = vmatpush1.bf16.msra.mxu1 %v9434_v43 }
 0xc65   : > { %5792 = vmatprep.subr.bf16.mxu1 %v9442_v37 }
 0xc67   : > { %8722 = vmatpush3.bf16.msra.mxu0 %v10676_v55  ;;  %v9419_v55 = vld [vmem:[#allocation8 + $0x708] ss:$16 sps:$4 sm:$0xff]  }
 0xc68   : > { %8723 = vmatprep.subr.bf16.mxu0 %v9931_v17  ;;  %5793 = vmatpush1.bf16.msra.mxu1 %v9440_v46 }
 0xc69   : > { %5794 = vmatprep.subr.bf16.mxu1 %v9448_v38 }
 0xc6b   : > { %8724 = vmatpush3.bf16.msra.mxu0 %v10680_v57  ;;  %v9433_v57 = vld [vmem:[#allocation8 + $0x74c] ss:$16 sps:$4 sm:$0xff]  }
 0xc6c   : > { %8725 = vmatprep.subr.bf16.mxu0 %v9931_v17  ;;  %5795 = vmatpush1.bf16.msra.mxu1 %v9446_v49 }
 0xc6d   : > { %5796 = vmatprep.subr.bf16.mxu1 %v9454_v51 }
 0xc6f   : > { %8726 = vmatpush3.bf16.msra.mxu0 %v10684_v58  ;;  %v9431_v58 = vld [vmem:[#allocation8 + $0x748] ss:$16 sps:$4 sm:$0xff]  }
 0xc70   : > { %8727 = vmatprep.subr.bf16.mxu0 %v9931_v17  ;;  %5797 = vmatpush1.bf16.msra.mxu1 %v9452_v54 }
 0xc71   : > { %5798 = vmatprep.subr.bf16.mxu1 %v9460_v59 }
 0xc73   : > { %8728 = vmatpush3.bf16.msra.mxu0 %v10688_v60  ;;  %v9445_v60 = vld [vmem:[#allocation8 + $0x78c] ss:$16 sps:$4 sm:$0xff]  }
 0xc74   : > { %5827 = vmatprep.subr.bf16.mxu0 %v9421_v52  ;;  %5799 = vmatpush1.bf16.msra.mxu1 %v9458_v28 }
 0xc76   : > { %8730 = vmatmul.mubr.bf16.vlgmr.msra.gmra.mrb[48].mxu0 %v5547_v40 }
 0xc77   : > { %5828 = vmatpush1.bf16.msra.mxu0 %v9419_v55  ;;  %5859 = vmatprep.mubr.bf16.mxu0 %v9933_v0 }
 0xc78   : > { %5829 = vmatprep.subr.bf16.mxu0 %v9427_v41 }
 0xc7b   : > { %5830 = vmatpush1.bf16.msra.mxu0 %v9425_v42 }
 0xc7c   : > { %5831 = vmatprep.subr.bf16.mxu0 %v9433_v57 }
 0xc7f   : > { %5832 = vmatpush1.bf16.msra.mxu0 %v9431_v58 }
 0xc80   : > { %5833 = vmatprep.subr.bf16.mxu0 %v9439_v44 }
 0xc83   : > { %5834 = vmatpush1.bf16.msra.mxu0 %v9437_v45 }
 0xc84   : > { %5835 = vmatprep.subr.bf16.mxu0 %v9445_v60 }
 0xc87   : > { %5836 = vmatpush1.bf16.msra.mxu0 %v9443_v47 }
 0xc88   : > { %5837 = vmatprep.subr.bf16.mxu0 %v9451_v48 }
 0xc8b   : > { %5838 = vmatpush1.bf16.msra.mxu0 %v9449_v50 }
 0xc8c   : > { %5839 = vmatprep.subr.bf16.mxu0 %v9457_v53 }
 0xc8f   : > { %5840 = vmatpush1.bf16.msra.mxu0 %v9455_v56 }
 0xc90   : > { %5841 = vmatprep.subr.bf16.mxu0 %v9463_v27 }
 0xc93   : > { %5842 = vmatpush1.bf16.msra.mxu0 %v9461_v61 }
 0xd49   : > { %v5582_v29 = vpop.f32.mrb[48].mxu0 }
 0xd4a   : > { %v5583_v30 = vadd.f32 %v10718_v9, %v5582_v29  ;;  %v8731_v62 = vpop.f32.mrb[49].mxu0 }
 0xd4b   : > { %v5585_v63 = vpop.f32.mrb[50].mxu0  ;;  %v10823_v62 = vld [vmem:[#allocation11 + $0x20] sm:$0xff]  }
 0xd4c   : > { %v5586_v31 = vadd.f32 %v10718_v9, %v5585_v63  ;;  %v8732_v2 = vpop.f32.mrb[51].mxu0  ;;  %v5589_v3 = vmax.f32 %v5583_v30, 0.0  ;;  %v5894_v9 = vsub.s32 3, %v10745_v5  ;;  %v10817_v30 = vld [vmem:[#allocation11 + $0x18] sm:$0xff]   ;;  %v10829_v63 = vld [vmem:[#allocation11 + $0x28] sm:$0xff]  }
 0xd4d   : > { %v10839_v2 = vld [vmem:[#allocation11 + $0x38] sm:$0xff]  }
 0xd4e   : > { %v5590_v4 = vmax.f32 %v5586_v31, 0.0  ;;  %v5895_v13 = vrot.slane %v5878_v7, %v5894_v9  ;;  %v10833_v31 = vld [vmem:[#allocation11 + $0x30] sm:$0xff]   ;;  %v7435_v5 = vld [vmem:[%s11081_s23] sm:$0xf]  ;;  %s11083_s23 = sld [smem:[#allocation27_spill]] }
 0xd50   : > { %v5591_v32 = vpack.c.bf16 %v5590_v4, %v5589_v3  ;;  %v9474_v3 = vld [vmem:[#allocation14 + $0x84] ss:$8 sps:$4 sm:$0xff]  }
 0xd52   : > { %5817 = vmatmul.mubr.bf16.vlgmr.msra.gmra.mrb[16].mxu1 %v5591_v32  ;;  %5860 = vmatmul.mubr.bf16.vlgmr.msra.gmra.mrb[36].mxu0 %v5591_v32 }
 0xd53   : > { %5996 = vmatprep.mubr.f32.mxu1 %v9931_v17  ;;  %6067 = vmatprep.mubr.f32.mxu0 %v9931_v17 }
 0xd54   : > { %s605_s15 = sand.u32 1, %s11083_s23   ;;  %s9837_s23 = sshll.u32 %s9935_s22, 4  ;;  %s9838_s23 = int_to_ptr.vmem [resolvable:$false] %s9837_s23 }
 0xd55   : > { %s7982_s25 = sshll.u32 %s605_s15, 2  ;;  %s7782_s19 = scalar_lea.sflag [#allocation7], %s605_s15 }
 0xd56   : > { %s607_s20 = scalar_lea.vmem [#allocation19], %s7982_s25  ;;  %s9839_s16 = scalar_lea.vmem %s9838_s23, 128 }
 0xd57   : > { %s7799_s29 = sshll.u32 %s607_s20, 4  ;;  %s10975_s29 = int_to_ptr.vmem [resolvable:$true] %s7799_s29 }
 0xd58   : > { %s9833_s30 = scalar_lea.vmem %s10975_s29, 64  ;;  %p9840_p0 = scmp.lt.s32.totalorder %s10975_s29, %s9838_s23 }
 0xd59   : > { %p9834_p8 = scmp.ne.s32.totalorder %s10975_s29, %s9833_s30  ;;  %p9841_p9 = scmp.lt.s32.totalorder %s9839_s16, %s9833_s30 }
 0xd5b   : > { %p9835_p5 = pnand %p9834_p8, %p11086_p11  ;;  %p9842_p10 = por %p9841_p9, %p9840_p0 }
 0xd5d   : > { %p9836_p6 = pneg %p9835_p5 }
 0xd5f   : > { %p9843_p13 = pnand %p9842_p10, %p9836_p6 }
 0xe25   : > { %v5818_v14 = vpop.f32.mrb[16].mxu1  ;;  %v5861_v15 = vpop.f32.mrb[36].mxu0 }
 0xe26   : > { %v5900_v16 = vadd.f32 %v5883_v10, %v5818_v14  ;;  %v5902_v18 = vadd.f32 %v5891_v11, %v5861_v15  ;;  %v5820_v20 = vpop.f32.mrb[17].mxu1  ;;  %v5863_v22 = vpop.f32.mrb[37].mxu0 }
 0xe27   : > { %v5901_v24 = vadd.f32 %v5887_v12, %v5820_v20  ;;  %v5903_v25 = vadd.f32 %v5895_v13, %v5863_v22  ;;  %v5822_v35 = vpop.f32.mrb[18].mxu1  ;;  %v5865_v36 = vpop.f32.mrb[38].mxu0 }
 0xe28   : > { %5908 = vst [vmem:[#allocation3] sm:$0xff] %v5900_v16  ;;  %5910 = vst [vmem:[#allocation3 + $0x10] sm:$0xff] %v5902_v18  ;;  %v5904_v43 = vadd.f32 %v5883_v10, %v5822_v35  ;;  %v5906_v37 = vadd.f32 %v5891_v11, %v5865_v36  ;;  %v5824_v46 = vpop.f32.mrb[19].mxu1  ;;  %v5867_v38 = vpop.f32.mrb[39].mxu0 }
 0xe29   : > { %5909 = vst [vmem:[#allocation3 + $0x8] sm:$0xff] %v5901_v24  ;;  %5911 = vst [vmem:[#allocation3 + $0x18] sm:$0xff] %v5903_v25  ;;  %v5905_v49 = vadd.f32 %v5887_v12, %v5824_v46  ;;  %v5907_v52 = vadd.f32 %v5895_v13, %v5867_v38 }
 0xe2a   : > { %5912 = vst [vmem:[#allocation3 + $0x20] sm:$0xff] %v5904_v43  ;;  %5914 = vst [vmem:[#allocation3 + $0x30] sm:$0xff] %v5906_v37 }
 0xe2b   : > { %5913 = vst [vmem:[#allocation3 + $0x28] sm:$0xff] %v5905_v49  ;;  %5915 = vst [vmem:[#allocation3 + $0x38] sm:$0xff] %v5907_v52 }
 0xe2f   : > { %v5916_v39 = vld [vmem:[#allocation3] sm:$0xf]  ;;  %v5918_v1 = vld [vmem:[#allocation3 + $0x10] sm:$0xf]  ;;  %v6078_v55 = vld [vmem:[#allocation3] sm:$0xf0] }
 0xe30   : > { %v5917_v40 = vld [vmem:[#allocation3 + $0x8] sm:$0xf]  ;;  %v5919_v41 = vld [vmem:[#allocation3 + $0x18] sm:$0xf]  ;;  %v6079_v42 = vld [vmem:[#allocation3 + $0x8] sm:$0xf0] }
 0xe31   : > { %8316 = vmatprep.subr.msk.mxu1 %vm936_vm1, %v5917_v40  ;;  %8319 = vmatprep.subr.msk.mxu0 %vm936_vm1, %v5919_v41  ;;  %v6087_v57 = vrot.slane %v6079_v42, 4  ;;  %v6081_v58 = vld [vmem:[#allocation3 + $0x18] sm:$0xf0]  ;;  %v6080_v44 = vld [vmem:[#allocation3 + $0x10] sm:$0xf0]  ;;  %v6086_v60 = vrot.slane %v6078_v55, 4 }
 0xe32   : > { %8317 = vmatpush1.msk.msra.mxu1 %vm936_vm1, %v5916_v39  ;;  %8320 = vmatpush1.msk.msra.mxu0 %vm936_vm1, %v5918_v1  ;;  %v6089_v45 = vrot.slane %v6081_v58, 4  ;;  %v6088_v47 = vrot.slane %v6080_v44, 4  ;;  %v6257_v48 = vld [vmem:[#allocation3 + $0x28] sm:$0xf]  ;;  %v6259_v50 = vld [vmem:[#allocation3 + $0x38] sm:$0xf] }
 0xe33   : > { %8318 = vmatmul.mubr.msk.f32.vlgmr.msra.gmra.mrb[10].mxu1 %vm932_vm2, %v10285_v21  ;;  %8321 = vmatmul.mubr.msk.f32.vlgmr.msra.gmra.mrb[30].mxu0 %vm932_vm2, %v10285_v21  ;;  %v6419_v51 = vld [vmem:[#allocation3 + $0x28] sm:$0xf0]  ;;  %v6421_v53 = vld [vmem:[#allocation3 + $0x38] sm:$0xf0]  ;;  %v6256_v21 = vld [vmem:[#allocation3 + $0x20] sm:$0xf] }
 0xe34   : > { %8322 = vmatprep.subr.msk.mxu1 %vm936_vm1, %v6087_v57  ;;  %8325 = vmatprep.subr.msk.mxu0 %vm936_vm1, %v6089_v45  ;;  %v6258_v54 = vld [vmem:[#allocation3 + $0x30] sm:$0xf]  ;;  %v6427_v56 = vrot.slane %v6419_v51, 4  ;;  %v6429_v59 = vrot.slane %v6421_v53, 4  ;;  %v6418_v27 = vld [vmem:[#allocation3 + $0x20] sm:$0xf0] }
 0xe35   : > { %8323 = vmatpush1.msk.msra.mxu1 %vm936_vm1, %v6086_v60  ;;  %8326 = vmatpush1.msk.msra.mxu0 %vm936_vm1, %v6088_v47  ;;  %v6420_v28 = vld [vmem:[#allocation3 + $0x30] sm:$0xf0]  ;;  %v6426_v61 = vrot.slane %v6418_v27, 4  ;;  %v9472_v39 = vld [vmem:[#allocation14 + $0x80] ss:$8 sps:$4 sm:$0xff]  }
 0xe36   : > { %8328 = vmatprep.subr.msk.mxu1 %vm936_vm1, %v6257_v48  ;;  %8331 = vmatprep.subr.msk.mxu0 %vm936_vm1, %v6259_v50  ;;  %v6428_v29 = vrot.slane %v6420_v28, 4  ;;  %v9477_v42 = vld [vmem:[#allocation14 + $0x94] ss:$8 sps:$4 sm:$0xff]   ;;  %v9475_v57 = vld [vmem:[#allocation14 + $0x90] ss:$8 sps:$4 sm:$0xff]  }
 0xe37   : > { %6162 = vmatprep.mubr.f32.mxu1 %v9931_v17  ;;  %6233 = vmatprep.mubr.f32.mxu0 %v9931_v17  ;;  %v9480_v58 = vld [vmem:[#allocation14 + $0xa4] ss:$8 sps:$4 sm:$0xff]   ;;  %v9478_v44 = vld [vmem:[#allocation14 + $0xa0] ss:$8 sps:$4 sm:$0xff]   ;;  %v9483_v45 = vld [vmem:[#allocation14 + $0xb4] ss:$8 sps:$4 sm:$0xff]  }
 0xe38   : > { %8324 = vmatmul.mubr.msk.f32.vlgmr.msra.gmra.mrb[32].mxu1 %vm932_vm2, %v10430_v19  ;;  %8327 = vmatmul.mubr.msk.f32.vlgmr.msra.gmra.mrb[52].mxu0 %vm932_vm2, %v10430_v19  ;;  %v10787_v19 = vld [vmem:[#allocation11] sm:$0xff]   ;;  %v9481_v60 = vld [vmem:[#allocation14 + $0xb0] ss:$8 sps:$4 sm:$0xff]  }
 0xe39   : > { %8329 = vmatpush1.msk.msra.mxu1 %vm936_vm1, %v6256_v21  ;;  %8332 = vmatpush1.msk.msra.mxu0 %vm936_vm1, %v6258_v54  ;;  %v9486_v47 = vld [vmem:[#allocation14 + $0xc4] ss:$8 sps:$4 sm:$0xff]   ;;  %v9484_v48 = vld [vmem:[#allocation14 + $0xc0] ss:$8 sps:$4 sm:$0xff]   ;;  %v9489_v50 = vld [vmem:[#allocation14 + $0xd4] ss:$8 sps:$4 sm:$0xff]  }
 0xe3a   : > { %8334 = vmatprep.subr.msk.mxu1 %vm936_vm1, %v6427_v56  ;;  %8337 = vmatprep.subr.msk.mxu0 %vm936_vm1, %v6429_v59  ;;  %v9487_v51 = vld [vmem:[#allocation14 + $0xd0] ss:$8 sps:$4 sm:$0xff]   ;;  %v9492_v28 = vld [vmem:[#allocation14 + $0xe4] ss:$8 sps:$4 sm:$0xff]  }
 0xe3b   : > { %6336 = vmatprep.mubr.f32.mxu1 %v9931_v17  ;;  %6407 = vmatprep.mubr.f32.mxu0 %v9931_v17 }
 0xe3c   : > { %8330 = vmatmul.mubr.msk.f32.vlgmr.msra.gmra.mrb[34].mxu1 %vm932_vm2, %v10463_v23  ;;  %8333 = vmatmul.mubr.msk.f32.vlgmr.msra.gmra.mrb[54].mxu0 %vm932_vm2, %v10463_v23  ;;  %v10799_v23 = vld [vmem:[#allocation11 + $0x8] sm:$0xff]  }
 0xe3d   : > { %8335 = vmatpush1.msk.msra.mxu1 %vm936_vm1, %v6426_v61  ;;  %8338 = vmatpush1.msk.msra.mxu0 %vm936_vm1, %v6428_v29  ;;  %v9490_v61 = vld [vmem:[#allocation14 + $0xe0] ss:$8 sps:$4 sm:$0xff]   ;;  %v9495_v29 = vld [vmem:[#allocation14 + $0xf4] ss:$8 sps:$4 sm:$0xff]  }
 0xe3e   : > { %6502 = vmatprep.mubr.f32.mxu1 %v9931_v17  ;;  %6573 = vmatprep.mubr.f32.mxu0 %v9931_v17 }
 0xe3f   : > { %8733 = vmatprep.subr.bf16.mxu1 %v9931_v17  ;;  %8753 = vmatprep.subr.bf16.mxu0 %v9931_v17 }
 0xe40   : > { %8336 = vmatmul.mubr.msk.f32.vlgmr.msra.gmra.mrb[36].mxu1 %vm932_vm2, %v10496_v26  ;;  %8339 = vmatmul.mubr.msk.f32.vlgmr.msra.gmra.mrb[56].mxu0 %vm932_vm2, %v10496_v26  ;;  %v10811_v26 = vld [vmem:[#allocation11 + $0x10] sm:$0xff]  }
 0xe41   : > { %8734 = vmatpush3.bf16.msra.mxu1 %v10787_v19  ;;  %8754 = vmatpush3.bf16.msra.mxu0 %v10787_v19 }
 0xe42   : > { %8735 = vmatprep.subr.bf16.mxu1 %v9931_v17  ;;  %8755 = vmatprep.subr.bf16.mxu0 %v9931_v17 }
 0xe43   : > { %8749 = vmatprep.mubr.msk.bf16.mxu1 %vm9932_vm3, %v9931_v17  ;;  %8769 = vmatprep.mubr.msk.bf16.mxu0 %vm9932_vm3, %v9931_v17 }
 0xe45   : > { %8736 = vmatpush3.bf16.msra.mxu1 %v10799_v23  ;;  %8756 = vmatpush3.bf16.msra.mxu0 %v10799_v23 }
 0xe46   : > { %8737 = vmatprep.subr.bf16.mxu1 %v9931_v17  ;;  %8757 = vmatprep.subr.bf16.mxu0 %v9931_v17 }
 0xe49   : > { %8738 = vmatpush3.bf16.msra.mxu1 %v10811_v26  ;;  %8758 = vmatpush3.bf16.msra.mxu0 %v10811_v26 }
 0xe4a   : > { %8739 = vmatprep.subr.bf16.mxu1 %v9931_v17  ;;  %8759 = vmatprep.subr.bf16.mxu0 %v9931_v17 }
 0xe4d   : > { %8740 = vmatpush3.bf16.msra.mxu1 %v10817_v30  ;;  %8760 = vmatpush3.bf16.msra.mxu0 %v10817_v30 }
 0xe4e   : > { %8741 = vmatprep.subr.bf16.mxu1 %v9931_v17  ;;  %8761 = vmatprep.subr.bf16.mxu0 %v9931_v17 }
 0xe51   : > { %8742 = vmatpush3.bf16.msra.mxu1 %v10823_v62  ;;  %8762 = vmatpush3.bf16.msra.mxu0 %v10823_v62 }
 0xe52   : > { %8743 = vmatprep.subr.bf16.mxu1 %v9931_v17  ;;  %8763 = vmatprep.subr.bf16.mxu0 %v9931_v17 }
 0xe55   : > { %8744 = vmatpush3.bf16.msra.mxu1 %v10829_v63  ;;  %8764 = vmatpush3.bf16.msra.mxu0 %v10829_v63 }
 0xe56   : > { %8745 = vmatprep.subr.bf16.mxu1 %v9931_v17  ;;  %8765 = vmatprep.subr.bf16.mxu0 %v9931_v17 }
 0xe59   : > { %8746 = vmatpush3.bf16.msra.mxu1 %v10833_v31  ;;  %8766 = vmatpush3.bf16.msra.mxu0 %v10833_v31 }
 0xe5a   : > { %8747 = vmatprep.subr.bf16.mxu1 %v9931_v17  ;;  %8767 = vmatprep.subr.bf16.mxu0 %v9931_v17 }
 0xe5d   : > { %8748 = vmatpush3.bf16.msra.mxu1 %v10839_v2  ;;  %8768 = vmatpush3.bf16.msra.mxu0 %v10839_v2 }
 0xe5e   : > { %8773 = vmatprep.subr.bf16.mxu0 %v9931_v17  ;;  %6873 = vmatprep.subr.bf16.mxu1 %v9474_v3 }
 0xf06   : > { %v5998_v4 = vpop.f32.mrb[10].mxu1  ;;  %v6069_v32 = vpop.f32.mrb[30].mxu0 }
 0xf07   : > { %6074 = vst [vmem:[#allocation4] sm:$0xf] %v5998_v4  ;;  %6076 = vst [vmem:[#allocation4 + $0x10] sm:$0xf] %v6069_v32  ;;  %v6000_v33 = vpop.f32.mrb[11].mxu1  ;;  %v6071_v34 = vpop.f32.mrb[31].mxu0 }
 0xf08   : > { %6075 = vst [vmem:[#allocation4 + $0x8] sm:$0xf] %v6000_v33  ;;  %6077 = vst [vmem:[#allocation4 + $0x18] sm:$0xf] %v6071_v34 }
 0xf0b   : > { %v6164_v7 = vpop.f32.mrb[32].mxu1  ;;  %v6235_v9 = vpop.f32.mrb[52].mxu0 }
 0xf0c   : > { %v6244_v10 = vrot.slane %v6164_v7, 4  ;;  %v6246_v11 = vrot.slane %v6235_v9, 4  ;;  %v6166_v12 = vpop.f32.mrb[33].mxu1  ;;  %v6237_v13 = vpop.f32.mrb[53].mxu0 }
 0xf0d   : > { %v6245_v14 = vrot.slane %v6166_v12, 4  ;;  %v6247_v15 = vrot.slane %v6237_v13, 4 }
 0xf0e   : > { %6252 = vst [vmem:[#allocation4] sm:$0xf0] %v6244_v10  ;;  %6254 = vst [vmem:[#allocation4 + $0x10] sm:$0xf0] %v6246_v11 }
 0xf0f   : > { %6253 = vst [vmem:[#allocation4 + $0x8] sm:$0xf0] %v6245_v14  ;;  %6255 = vst [vmem:[#allocation4 + $0x18] sm:$0xf0] %v6247_v15  ;;  %v6338_v16 = vpop.f32.mrb[34].mxu1  ;;  %v6409_v18 = vpop.f32.mrb[54].mxu0 }
 0xf10   : > { %6414 = vst [vmem:[#allocation4 + $0x20] sm:$0xf] %v6338_v16  ;;  %6416 = vst [vmem:[#allocation4 + $0x30] sm:$0xf] %v6409_v18  ;;  %v6340_v20 = vpop.f32.mrb[35].mxu1  ;;  %v6411_v22 = vpop.f32.mrb[55].mxu0 }
 0xf11   : > { %6415 = vst [vmem:[#allocation4 + $0x28] sm:$0xf] %v6340_v20  ;;  %6417 = vst [vmem:[#allocation4 + $0x38] sm:$0xf] %v6411_v22  ;;  %v9496_v15 = vld [vmem:[#allocation14] ss:$8 sps:$4 sm:$0xff]  }
 0xf12   : > { %v9501_v18 = vld [vmem:[#allocation14 + $0x14] ss:$8 sps:$4 sm:$0xff]   ;;  %v9499_v20 = vld [vmem:[#allocation14 + $0x10] ss:$8 sps:$4 sm:$0xff]   ;;  %v9504_v22 = vld [vmem:[#allocation14 + $0x24] ss:$8 sps:$4 sm:$0xff]  }
 0xf13   : > { %v6504_v24 = vpop.f32.mrb[36].mxu1  ;;  %v6575_v25 = vpop.f32.mrb[56].mxu0 }
 0xf14   : > { %v6584_v35 = vrot.slane %v6504_v24, 4  ;;  %v6586_v36 = vrot.slane %v6575_v25, 4  ;;  %v6506_v43 = vpop.f32.mrb[37].mxu1  ;;  %v6577_v37 = vpop.f32.mrb[57].mxu0  ;;  %v9502_v24 = vld [vmem:[#allocation14 + $0x20] ss:$8 sps:$4 sm:$0xff]  }
 0xf15   : > { %v6585_v46 = vrot.slane %v6506_v43, 4  ;;  %v6587_v38 = vrot.slane %v6577_v37, 4  ;;  %v6596_v49 = vld [vmem:[#allocation4] sm:$0xff]  ;;  %v7039_v21 = vld [vmem:[#allocation4 + $0x10] sm:$0xff] }
 0xf16   : > { %6592 = vst [vmem:[#allocation4 + $0x20] sm:$0xf0] %v6584_v35  ;;  %6594 = vst [vmem:[#allocation4 + $0x30] sm:$0xf0] %v6586_v36  ;;  %v6730_v55 = vld [vmem:[#allocation4 + $0x8] sm:$0xff]  ;;  %v7229_v59 = vld [vmem:[#allocation4 + $0x18] sm:$0xff] }
 0xf17   : > { %6593 = vst [vmem:[#allocation4 + $0x28] sm:$0xf0] %v6585_v46  ;;  %6595 = vst [vmem:[#allocation4 + $0x38] sm:$0xf0] %v6587_v38  ;;  %v9507_v25 = vld [vmem:[#allocation14 + $0x34] ss:$8 sps:$4 sm:$0xff]  }
 0xf18   : > { %v9505_v35 = vld [vmem:[#allocation14 + $0x30] ss:$8 sps:$4 sm:$0xff]   ;;  %v9510_v36 = vld [vmem:[#allocation14 + $0x44] ss:$8 sps:$4 sm:$0xff]   ;;  %v9508_v43 = vld [vmem:[#allocation14 + $0x40] ss:$8 sps:$4 sm:$0xff]  }
 0xf19   : > { %v9513_v37 = vld [vmem:[#allocation14 + $0x54] ss:$8 sps:$4 sm:$0xff]   ;;  %v9511_v46 = vld [vmem:[#allocation14 + $0x50] ss:$8 sps:$4 sm:$0xff]   ;;  %v9516_v38 = vld [vmem:[#allocation14 + $0x64] ss:$8 sps:$4 sm:$0xff]  }
 0xf1d   : > { %v6597_v52 = vld [vmem:[#allocation4 + $0x20] sm:$0xff]  ;;  %v7040_v53 = vld [vmem:[#allocation4 + $0x30] sm:$0xff] }
 0xf1e   : > { %v6598_v1 = vpack.c.bf16 %v6597_v52, %v6596_v49  ;;  %v6731_v40 = vld [vmem:[#allocation4 + $0x28] sm:$0xff]  ;;  %v7041_v54 = vpack.c.bf16 %v7040_v53, %v7039_v21  ;;  %v7230_v56 = vld [vmem:[#allocation4 + $0x38] sm:$0xff] }
 0xf1f   : > { %v6732_v41 = vpack.c.bf16 %v6731_v40, %v6730_v55  ;;  %v7231_v27 = vpack.c.bf16 %v7230_v56, %v7229_v59  ;;  %v9514_v49 = vld [vmem:[#allocation14 + $0x60] ss:$8 sps:$4 sm:$0xff]   ;;  %v9519_v52 = vld [vmem:[#allocation14 + $0x74] ss:$8 sps:$4 sm:$0xff]   ;;  %v9534_v56 = vld [vmem:[#allocation14 + $0x144] ss:$8 sps:$4 sm:$0xff]  }
 0xf20   : > { %8750 = vmatmul.mubr.bf16.vlgmr.msra.gmra.mrb[40].mxu1 %v6598_v1  ;;  %v9526_v53 = vld [vmem:[#allocation14 + $0x120] ss:$8 sps:$4 sm:$0xff]   ;;  %v9531_v21 = vld [vmem:[#allocation14 + $0x134] ss:$8 sps:$4 sm:$0xff]  }
 0xf21   : > { %8770 = vmatmul.mubr.bf16.vlgmr.msra.gmra.mrb[60].mxu0 %v6732_v41  ;;  %6874 = vmatpush1.bf16.msra.mxu1 %v9472_v39  ;;  %v9517_v41 = vld [vmem:[#allocation14 + $0x70] ss:$8 sps:$4 sm:$0xff]   ;;  %v9532_v59 = vld [vmem:[#allocation14 + $0x140] ss:$8 sps:$4 sm:$0xff]  }
 0xf22   : > { %8774 = vmatpush3.bf16.msra.mxu0 %v10787_v19  ;;  %8789 = vmatprep.mubr.msk.bf16.mxu0 %vm9932_vm3, %v9931_v17 }
 0xf23   : > { %8775 = vmatprep.subr.bf16.mxu0 %v9931_v17  ;;  %6875 = vmatprep.subr.bf16.mxu1 %v9477_v42 }
 0xf24   : > { %6905 = vmatprep.mubr.bf16.mxu1 %v9933_v0 }
 0xf25   : > { %6876 = vmatpush1.bf16.msra.mxu1 %v9475_v57 }
 0xf26   : > { %8776 = vmatpush3.bf16.msra.mxu0 %v10799_v23  ;;  %6877 = vmatprep.subr.bf16.mxu1 %v9480_v58  ;;  %v9522_v58 = vld [vmem:[#allocation14 + $0x104] ss:$8 sps:$4 sm:$0xff]  }
 0xf27   : > { %8777 = vmatprep.subr.bf16.mxu0 %v9931_v17 }
 0xf29   : > { %6878 = vmatpush1.bf16.msra.mxu1 %v9478_v44 }
 0xf2a   : > { %8778 = vmatpush3.bf16.msra.mxu0 %v10811_v26  ;;  %6879 = vmatprep.subr.bf16.mxu1 %v9483_v45 }
 0xf2b   : > { %8779 = vmatprep.subr.bf16.mxu0 %v9931_v17 }
 0xf2d   : > { %6880 = vmatpush1.bf16.msra.mxu1 %v9481_v60  ;;  %v9520_v60 = vld [vmem:[#allocation14 + $0x100] ss:$8 sps:$4 sm:$0xff]  }
 0xf2e   : > { %8780 = vmatpush3.bf16.msra.mxu0 %v10817_v30  ;;  %6881 = vmatprep.subr.bf16.mxu1 %v9486_v47 }
 0xf2f   : > { %8781 = vmatprep.subr.bf16.mxu0 %v9931_v17 }
 0xf31   : > { %6882 = vmatpush1.bf16.msra.mxu1 %v9484_v48  ;;  %v9525_v48 = vld [vmem:[#allocation14 + $0x114] ss:$8 sps:$4 sm:$0xff]  }
 0xf32   : > { %8782 = vmatpush3.bf16.msra.mxu0 %v10823_v62  ;;  %6883 = vmatprep.subr.bf16.mxu1 %v9489_v50  ;;  %v9523_v50 = vld [vmem:[#allocation14 + $0x110] ss:$8 sps:$4 sm:$0xff]  }
 0xf33   : > { %8783 = vmatprep.subr.bf16.mxu0 %v9931_v17 }
 0xf35   : > { %6884 = vmatpush1.bf16.msra.mxu1 %v9487_v51  ;;  %v9528_v51 = vld [vmem:[#allocation14 + $0x124] ss:$8 sps:$4 sm:$0xff]  }
 0xf36   : > { %8784 = vmatpush3.bf16.msra.mxu0 %v10829_v63  ;;  %6885 = vmatprep.subr.bf16.mxu1 %v9492_v28  ;;  %v9535_v28 = vld [vmem:[#allocation14 + $0x150] ss:$8 sps:$4 sm:$0xff]  }
 0xf37   : > { %8785 = vmatprep.subr.bf16.mxu0 %v9931_v17 }
 0xf39   : > { %6886 = vmatpush1.bf16.msra.mxu1 %v9490_v61  ;;  %v9540_v61 = vld [vmem:[#allocation14 + $0x164] ss:$8 sps:$4 sm:$0xff]  }
 0xf3a   : > { %8786 = vmatpush3.bf16.msra.mxu0 %v10833_v31  ;;  %6887 = vmatprep.subr.bf16.mxu1 %v9495_v29  ;;  %v9538_v29 = vld [vmem:[#allocation14 + $0x160] ss:$8 sps:$4 sm:$0xff]  }
 0xf3b   : > { %8787 = vmatprep.subr.bf16.mxu0 %v9931_v17 }
 0xf3e   : > { %8788 = vmatpush3.bf16.msra.mxu0 %v10839_v2 }
 0xf3f   : > { %8793 = vmatprep.subr.bf16.mxu0 %v9931_v17 }
 0xf41   : > { %8790 = vmatmul.mubr.bf16.vlgmr.msra.gmra.mrb[64].mxu0 %v7041_v54  ;;  %v9529_v54 = vld [vmem:[#allocation14 + $0x130] ss:$8 sps:$4 sm:$0xff]  }
 0xf42   : > { %8794 = vmatpush3.bf16.msra.mxu0 %v10787_v19  ;;  %8809 = vmatprep.mubr.msk.bf16.mxu0 %vm9932_vm3, %v9931_v17  ;;  %v9493_v19 = vld [vmem:[#allocation14 + $0xf0] ss:$8 sps:$4 sm:$0xff]  }
 0xf43   : > { %8795 = vmatprep.subr.bf16.mxu0 %v9931_v17  ;;  %6888 = vmatpush1.bf16.msra.mxu1 %v9493_v19  ;;  %v9543_v19 = vld [vmem:[#allocation14 + $0x174] ss:$8 sps:$4 sm:$0xff]  }
 0xf46   : > { %8796 = vmatpush3.bf16.msra.mxu0 %v10799_v23  ;;  %v9498_v23 = vld [vmem:[#allocation14 + $0x4] ss:$8 sps:$4 sm:$0xff]  }
 0xf47   : > { %8797 = vmatprep.subr.bf16.mxu0 %v9931_v17  ;;  %6996 = vmatprep.subr.bf16.mxu1 %v9498_v23 }
 0xf4a   : > { %8798 = vmatpush3.bf16.msra.mxu0 %v10811_v26  ;;  %v10883_v26 = vld [vmem:[#allocation13] ss:$0 sm:$0xff] }
 0xf4b   : > { %8799 = vmatprep.subr.bf16.mxu0 %v9931_v17 }
 0xf4e   : > { %8800 = vmatpush3.bf16.msra.mxu0 %v10817_v30 }
 0xf4f   : > { %8801 = vmatprep.subr.bf16.mxu0 %v9931_v17 }
 0xf52   : > { %8802 = vmatpush3.bf16.msra.mxu0 %v10823_v62 }
 0xf53   : > { %8803 = vmatprep.subr.bf16.mxu0 %v9931_v17 }
 0xf56   : > { %8804 = vmatpush3.bf16.msra.mxu0 %v10829_v63 }
 0xf57   : > { %8805 = vmatprep.subr.bf16.mxu0 %v9931_v17 }
 0xf5a   : > { %8806 = vmatpush3.bf16.msra.mxu0 %v10833_v31 }
 0xf5b   : > { %8807 = vmatprep.subr.bf16.mxu0 %v9931_v17 }
 0xf5e   : > { %8808 = vmatpush3.bf16.msra.mxu0 %v10839_v2 }
 0xf61   : > { %8810 = vmatmul.mubr.bf16.vlgmr.msra.gmra.mrb[68].mxu0 %v7231_v27  ;;  %v9537_v27 = vld [vmem:[#allocation14 + $0x154] ss:$8 sps:$4 sm:$0xff]  }
 0xf62   : > { %7504 = vmatprep.mubr.f32.mxu0 %v9931_v17 }
 0xff3   : > { %v6704_v30 = vpop.f32.mrb[40].mxu1 }
 0xff4   : > { %v6705_v62 = vadd.f32 %v10883_v26, %v6704_v30  ;;  %v8751_v63 = vpop.f32.mrb[41].mxu1  ;;  %v6767_v31 = vpop.f32.mrb[60].mxu0 }
 0xff5   : > { %v6768_v2 = vadd.f32 %v10883_v26, %v6767_v31  ;;  %v6707_v3 = vpop.f32.mrb[42].mxu1  ;;  %v8771_v4 = vpop.f32.mrb[61].mxu0  ;;  %v9541_v31 = vld [vmem:[#allocation14 + $0x170] ss:$8 sps:$4 sm:$0xff]  }
 0xff6   : > { %v6708_v32 = vadd.f32 %v10883_v26, %v6707_v3  ;;  %v8752_v33 = vpop.f32.mrb[43].mxu1  ;;  %v6770_v34 = vpop.f32.mrb[62].mxu0  ;;  %v6711_v10 = vmax.f32 %v6705_v62, 0.0  ;;  %v9546_v4 = vld [vmem:[#allocation14 + $0x184] ss:$8 sps:$4 sm:$0xff]  }
 0xff7   : > { %v6771_v7 = vadd.f32 %v10883_v26, %v6770_v34  ;;  %v8772_v9 = vpop.f32.mrb[63].mxu0  ;;  %v6774_v12 = vmax.f32 %v6768_v2, 0.0  ;;  %v9544_v34 = vld [vmem:[#allocation14 + $0x180] ss:$8 sps:$4 sm:$0xff]  }
 0xff8   : > { %v6712_v11 = vmax.f32 %v6708_v32, 0.0  ;;  %v9549_v9 = vld [vmem:[#allocation14 + $0x194] ss:$8 sps:$4 sm:$0xff]  }
 0xff9   : > { %v6775_v13 = vmax.f32 %v6771_v7, 0.0 }
 0xffa   : > { %v6713_v14 = vpack.c.bf16 %v6712_v11, %v6711_v10  ;;  %v9547_v10 = vld [vmem:[#allocation14 + $0x190] ss:$8 sps:$4 sm:$0xff]   ;;  %v9552_v11 = vld [vmem:[#allocation14 + $0x1a4] ss:$8 sps:$4 sm:$0xff]  }
 0xffb   : > { %v6776_v16 = vpack.c.bf16 %v6775_v13, %v6774_v12  ;;  %v9550_v12 = vld [vmem:[#allocation14 + $0x1a0] ss:$8 sps:$4 sm:$0xff]   ;;  %v9553_v13 = vld [vmem:[#allocation14 + $0x1b0] ss:$8 sps:$4 sm:$0xff]  }
 0xffd   : > { %6906 = vmatmul.mubr.bf16.vlgmr.msra.gmra.mrb[44].mxu1 %v6776_v16  ;;  %v9561_v16 = vld [vmem:[#allocation14 + $0x1d4] ss:$8 sps:$4 sm:$0xff]  }
 0xffe   : > { %6997 = vmatpush1.bf16.msra.mxu1 %v9496_v15  ;;  %7028 = vmatprep.mubr.bf16.mxu1 %v9933_v0  ;;  %v9556_v15 = vld [vmem:[#allocation14 + $0x1c0] ss:$8 sps:$4 sm:$0xff]  }
 0xfff   : > { %6998 = vmatprep.subr.bf16.mxu1 %v9501_v18  ;;  %v9559_v18 = vld [vmem:[#allocation14 + $0x1d0] ss:$8 sps:$4 sm:$0xff]  }
0x1002   : > { %6999 = vmatpush1.bf16.msra.mxu1 %v9499_v20  ;;  %v9564_v20 = vld [vmem:[#allocation14 + $0x1e4] ss:$8 sps:$4 sm:$0xff]  }
0x1003   : > { %7000 = vmatprep.subr.bf16.mxu1 %v9504_v22  ;;  %v9567_v22 = vld [vmem:[#allocation14 + $0x1f4] ss:$8 sps:$4 sm:$0xff]  }
0x1006   : > { %7001 = vmatpush1.bf16.msra.mxu1 %v9502_v24  ;;  %v9565_v24 = vld [vmem:[#allocation14 + $0x1f0] ss:$8 sps:$4 sm:$0xff]  }
0x1007   : > { %7002 = vmatprep.subr.bf16.mxu1 %v9507_v25  ;;  %v7419_v25 = vld [vmem:[%s11023_s8] sm:$0x3] }
0x100a   : > { %7003 = vmatpush1.bf16.msra.mxu1 %v9505_v35  ;;  %v7424_v35 = vrot.slane %v7419_v25, %v5882_v6  ;;  %v9569_v6 = vld [vmem:[%s11080_s10] sm:$0xff]  }
0x100b   : > { %7004 = vmatprep.subr.bf16.mxu1 %v9510_v36 }
0x100e   : > { %7005 = vmatpush1.bf16.msra.mxu1 %v9508_v43  ;;  %v7428_v43 = vrot.slane %v7419_v25, %v5886_v8  ;;  %v9570_v8 = vld [vmem:[%s11080_s10 + $0x48] sm:$0xff]  }
0x100f   : > { %7006 = vmatprep.subr.bf16.mxu1 %v9513_v37 }
0x1012   : > { %7007 = vmatpush1.bf16.msra.mxu1 %v9511_v46 }
0x1013   : > { %7008 = vmatprep.subr.bf16.mxu1 %v9516_v38 }
0x1014   : > { %v7076_v39 = vpop.f32.mrb[64].mxu0 }
0x1015   : > { %v7077_v1 = vadd.f32 %v10883_v26, %v7076_v39  ;;  %v8791_v55 = vpop.f32.mrb[65].mxu0 }
0x1016   : > { %7009 = vmatpush1.bf16.msra.mxu1 %v9514_v49  ;;  %v7079_v40 = vpop.f32.mrb[66].mxu0 }
0x1017   : > { %v7080_v42 = vadd.f32 %v10883_v26, %v7079_v40  ;;  %v8792_v57 = vpop.f32.mrb[67].mxu0  ;;  %7010 = vmatprep.subr.bf16.mxu1 %v9519_v52  ;;  %v7083_v44 = vmax.f32 %v7077_v1, 0.0 }
0x1018   : > { %v9572_v57 = vld [vmem:[%s11080_s10 + $0x50] sm:$0xff]  }
0x1019   : > { %v7084_v45 = vmax.f32 %v7080_v42, 0.0  ;;  %v9571_v42 = vld [vmem:[%s11080_s10 + $0x8] sm:$0xff]  }
0x101a   : > { %7011 = vmatpush1.bf16.msra.mxu1 %v9517_v41  ;;  %v9568_v41 = vld [vmem:[%s11080_s10 + $0x40] sm:$0xff]  }
0x101b   : > { %v7085_v47 = vpack.c.bf16 %v7084_v45, %v7083_v44  ;;  %7182 = vmatprep.subr.bf16.mxu1 %v9522_v58  ;;  %v9573_v58 = vld [vmem:[%s11080_s10 + $0x10] sm:$0xff]   ;;  %v9574_v44 = vld [vmem:[%s11080_s10 + $0x58] sm:$0xff]  }
0x101c   : > { %v9575_v45 = vld [vmem:[%s11080_s10 + $0x18] sm:$0xff]  }
0x101d   : > { %7029 = vmatmul.mubr.bf16.vlgmr.msra.gmra.mrb[44].mxu1 %v6713_v14  ;;  %v9558_v14 = vld [vmem:[#allocation14 + $0x1c4] ss:$8 sps:$4 sm:$0xff]  }
0x101e   : > { %7183 = vmatpush1.bf16.msra.mxu1 %v9520_v60  ;;  %7214 = vmatprep.mubr.bf16.mxu1 %v9933_v0  ;;  %v9576_v60 = vld [vmem:[%s11080_s10 + $0x60] sm:$0xff]  }
0x101f   : > { %7184 = vmatprep.subr.bf16.mxu1 %v9525_v48  ;;  %v9578_v48 = vld [vmem:[%s11080_s10 + $0x68] sm:$0xff]  }
0x1022   : > { %7185 = vmatpush1.bf16.msra.mxu1 %v9523_v50  ;;  %v9579_v50 = vld [vmem:[%s11080_s10 + $0x28] sm:$0xff]  }
0x1023   : > { %7186 = vmatprep.subr.bf16.mxu1 %v9528_v51  ;;  %v9580_v51 = vld [vmem:[%s11080_s10 + $0x70] sm:$0xff]  }
0x1026   : > { %7187 = vmatpush1.bf16.msra.mxu1 %v9526_v53  ;;  %v9581_v53 = vld [vmem:[%s11080_s10 + $0x30] sm:$0xff]  }
0x1027   : > { %7188 = vmatprep.subr.bf16.mxu1 %v9531_v21  ;;  %v9582_v21 = vld [vmem:[%s11080_s10 + $0x78] sm:$0xff]  }
0x102a   : > { %7189 = vmatpush1.bf16.msra.mxu1 %v9529_v54  ;;  %v9583_v54 = vld [vmem:[%s11080_s10 + $0x38] sm:$0xff]  }
0x102b   : > { %7190 = vmatprep.subr.bf16.mxu1 %v9534_v56 }
0x102e   : > { %7191 = vmatpush1.bf16.msra.mxu1 %v9532_v59 }
0x102f   : > { %7192 = vmatprep.subr.bf16.mxu1 %v9537_v27 }
0x1032   : > { %7193 = vmatpush1.bf16.msra.mxu1 %v9535_v28 }
0x1033   : > { %7194 = vmatprep.subr.bf16.mxu1 %v9540_v61  ;;  %v7689_v61 = vld [vmem:[%s11082_s9] sm:$0xff] }
0x1034   : > { %v7266_v23 = vpop.f32.mrb[68].mxu0 }
0x1035   : > { %v7267_v30 = vadd.f32 %v10883_v26, %v7266_v23  ;;  %v8811_v62 = vpop.f32.mrb[69].mxu0  ;;  %v9934_v23 = vmov 0.0|0.0  }
0x1036   : > { %7195 = vmatpush1.bf16.msra.mxu1 %v9538_v29  ;;  %v7269_v63 = vpop.f32.mrb[70].mxu0  ;;  %v7690_v29 = vld [vmem:[%s11082_s9 + $0x8] sm:$0xff] }
0x1037   : > { %v7270_v2 = vadd.f32 %v10883_v26, %v7269_v63  ;;  %v8812_v3 = vpop.f32.mrb[71].mxu0  ;;  %7196 = vmatprep.subr.bf16.mxu1 %v9543_v19  ;;  %v7273_v32 = vmax.f32 %v7267_v30, 0.0  ;;  %v9555_v26 = vld [vmem:[#allocation14 + $0x1b4] ss:$8 sps:$4 sm:$0xff]   ;;  %v8829_v19 = vpack.c.bf16 %v7690_v29, %v7689_v61  ;;  %v7691_v30 = vld [vmem:[%s11082_s9 + $0x10] sm:$0xff] }
0x1039   : > { %v7274_v33 = vmax.f32 %v7270_v2, 0.0 }
0x103a   : > { %7197 = vmatpush1.bf16.msra.mxu1 %v9541_v31  ;;  %v8414_v31 = vld [vmem:[#allocation16] ss:$0 sm:$0xff] }
0x103b   : > { %v7275_v7 = vpack.c.bf16 %v7274_v33, %v7273_v32  ;;  %7372 = vmatprep.subr.bf16.mxu1 %v9546_v4 }
0x103d   : > { %7215 = vmatmul.mubr.bf16.vlgmr.msra.gmra.mrb[44].mxu1 %v7085_v47  ;;  %v9577_v47 = vld [vmem:[%s11080_s10 + $0x20] sm:$0xff]  }
0x103e   : > { %7373 = vmatpush1.bf16.msra.mxu1 %v9544_v34  ;;  %7404 = vmatprep.mubr.bf16.mxu1 %v9933_v0  ;;  %v9562_v0 = vld [vmem:[#allocation14 + $0x1e0] ss:$8 sps:$4 sm:$0xff]  }
0x103f   : > { %7374 = vmatprep.subr.bf16.mxu1 %v9549_v9 }
0x1042   : > { %7375 = vmatpush1.bf16.msra.mxu1 %v9547_v10 }
0x1043   : > { %7376 = vmatprep.subr.bf16.mxu1 %v9552_v11 }
0x1046   : > { %7377 = vmatpush1.bf16.msra.mxu1 %v9550_v12 }
0x1047   : > { %7378 = vmatprep.subr.bf16.mxu1 %v9555_v26 }
0x104a   : > { %7379 = vmatpush1.bf16.msra.mxu1 %v9553_v13 }
0x104b   : > { %7380 = vmatprep.subr.bf16.mxu1 %v9558_v14 }
0x104e   : > { %7381 = vmatpush1.bf16.msra.mxu1 %v9556_v15 }
0x104f   : > { %7382 = vmatprep.subr.bf16.mxu1 %v9561_v16 }
0x1052   : > { %7383 = vmatpush1.bf16.msra.mxu1 %v9559_v18 }
0x1053   : > { %7384 = vmatprep.subr.bf16.mxu1 %v9564_v20 }
0x1056   : > { %7385 = vmatpush1.bf16.msra.mxu1 %v9562_v0 }
0x1057   : > { %7386 = vmatprep.subr.bf16.mxu1 %v9567_v22 }
0x105a   : > { %7387 = vmatpush1.bf16.msra.mxu1 %v9565_v24 }
0x105d   : > { %7405 = vmatmul.mubr.bf16.vlgmr.msra.gmra.mrb[44].mxu1 %v7275_v7  ;;  %v8431_v7 = vld [vmem:[#allocation17] ss:$0 sm:$0xff] }
0x1130   : > { %v7406_v36 = vpop.f32.mrb[44].mxu1 }
0x1131   : > { %v7408_v37 = vpop.f32.mrb[45].mxu1  ;;  %v7431_v38 = vadd.f32 %v7424_v35, %v7406_v36 }
0x1132   : > { %v7410_v46 = vpop.f32.mrb[46].mxu1  ;;  %v7432_v39 = vadd.f32 %v7428_v43, %v7408_v37 }
0x1133   : > { %v7433_v49 = vadd.f32 %v7424_v35, %v7410_v46  ;;  %v7412_v52 = vpop.f32.mrb[47].mxu1 }
0x1134   : > { %v7434_v1 = vadd.f32 %v7428_v43, %v7412_v52 }
0x1135   : > { %v8826_v55 = vpack.c.bf16 %v7433_v49, %v7431_v38 }
0x1136   : > { %v8824_v40 = vpack.c.bf16 %v7434_v1, %v7432_v39 }
0x1138   : > { %8825 = vmatprep.subr.bf16.mxu0 %v8824_v40 }
0x1139   : > { %8827 = vmatpush1.bf16.msra.mxu0 %v8826_v55 }
0x113a   : > { %8546 = vmatprep.subr.bf16.mxu0 %v9568_v41 }
0x113c   : > { %8413 = vmatmul.mubr.msk.f32.vlgmr.msra.gmra.mrb[58].mxu0 %vm7436_vm4, %v7435_v5 }
0x113d   : > { %8547 = vmatpush3.bf16.msra.mxu0 %v9569_v6 }
0x113e   : > { %8548 = vmatprep.subr.bf16.mxu0 %v9570_v8 }
0x1141   : > { %8549 = vmatpush3.bf16.msra.mxu0 %v9571_v42 }
0x1142   : > { %8550 = vmatprep.subr.bf16.mxu0 %v9572_v57 }
0x1145   : > { %8551 = vmatpush3.bf16.msra.mxu0 %v9573_v58 }
0x1146   : > { %8552 = vmatprep.subr.bf16.mxu0 %v9574_v44 }
0x1149   : > { %8553 = vmatpush3.bf16.msra.mxu0 %v9575_v45 }
0x114a   : > { %8554 = vmatprep.subr.bf16.mxu0 %v9576_v60 }
0x114d   : > { %8555 = vmatpush3.bf16.msra.mxu0 %v9577_v47 }
0x114e   : > { %8556 = vmatprep.subr.bf16.mxu0 %v9578_v48 }
0x1151   : > { %8557 = vmatpush3.bf16.msra.mxu0 %v9579_v50 }
0x1152   : > { %8558 = vmatprep.subr.bf16.mxu0 %v9580_v51 }
0x1155   : > { %8559 = vmatpush3.bf16.msra.mxu0 %v9581_v53 }
0x1156   : > { %8560 = vmatprep.subr.bf16.mxu0 %v9582_v21 }
0x1159   : > { %8561 = vmatpush3.bf16.msra.mxu0 %v9583_v54 }
0x115a   : > { %8828 = vmatprep.subr.bf16.mxu0 %v9934_v23 }
0x120f   : > { %v7506_v56 = vpop.f32.mrb[58].mxu0 }
0x1210   : > { %v7508_v59 = vpop.f32.mrb[59].mxu0  ;;  %v7511_v28 = vpack.c.bf16 %v7506_v56, %v7506_v56 }
0x1211   : > { %v7512_v27 = vpack.c.bf16 %v7508_v59, %v7508_v59 }
0x1213   : > { %7680 = vmatprep.mubr.bf16.mxu0 %v7512_v27 }
0x1214   : > { %7681 = vmatmul.mubr.bf16.vlgmr.msra.gmra.mrb[72].mxu0 %v7511_v28 }
0x1215   : > { %8821 = vmatprep.mubr.msk.f32.mxu0 %vm9932_vm3, %v9931_v17  ;;  %8830 = vmatpush3.bf16.msra.mxu0 %v8829_v19  ;;  %v7692_v17 = vld [vmem:[%s11082_s9 + $0x18] sm:$0xff] }
0x1216   : > { %8831 = vmatprep.subr.bf16.mxu0 %v9934_v23  ;;  %v8832_v62 = vpack.c.bf16 %v7692_v17, %v7691_v30 }
0x1219   : > { %8833 = vmatpush3.bf16.msra.mxu0 %v8832_v62 }
0x12e7   : > { %v8562_v63 = vpop.f32.mrb[72].mxu0 }
0x12e8   : > { %v8563_v2 = vpop.f32.mrb[73].mxu0 }
0x12e9   : > { %v8564_v3 = vadd.f32 %v8563_v2, %v8562_v63  ;;  %v8565_v4 = vpop.f32.mrb[74].mxu0 }
0x12ea   : > { %v8566_v32 = vpop.f32.mrb[75].mxu0 }
0x12eb   : > { %v7683_v33 = vadd.f32 %v8564_v3, %v8414_v31 }
0x12ed   : > { %v7688_v34 = vmax.f32 %v7683_v33, 0.0 }
0x12ef   : > { %8822 = vmatmul.mubr.msk.f32.vlgmr.msra.gmra.mrb[76].mxu0 %vm7700_vm5, %v7688_v34 }
0x13c2   : > { %v7770_v9 = vpop.f32.mrb[76].mxu0 }
0x13c3   : > { %v7771_v10 = vadd.f32 %v8431_v7, %v7770_v9  ;;  %v8823_v11 = vpop.f32.mrb[77].mxu0 }
0x13c5   : > { %7775 = vst.msk [vmem:[%s607_s20] sm:$0xf] %vm7774_vm6, %v7771_v10 }
0x13c6   : > { %9846 = shalt.err (!%p9843_p13)
}
0x13c7   : > { %s9847_s12 = scalar_lea.hbm %s10973_s3, 64  ;;  %s9851_s15 = scalar_lea.hbm %s11085_s17, 128 }
0x13c8   : > { %p9848_p12 = scmp.ne.s32.totalorder %s10973_s3, %s9847_s12  ;;  %p9852_p3 = scmp.lt.u32.totalorder %s10973_s3, %s11085_s17 }
0x13c9   : > { %p9853_p4 = scmp.lt.u32.totalorder %s9851_s15, %s9847_s12  ;;  %p9855_p8 = scmp.lt.u32.totalorder %s9847_s12, %s10973_s3 }
0x13ca   : > { %p9849_p1 = pnand %p9848_p12, %p11086_p11 }
0x13cb   : > { %p9854_p7 = por %p9853_p4, %p9852_p3 }
0x13cc   : > { %p9850_p2 = pneg %p9849_p1 }
0x13cd   : > { %p9856_p5 = por %p9855_p8, %p9854_p7 }
0x13cf   : > { %p9857_p6 = pnand %p9856_p5, %p9850_p2 }
0x13d1   : > { %9860 = shalt.err (!%p9857_p6)
}
0x13d2   : > { %8958 = dma.vmem_to_hbm [thread:$0]  (%p11086_p11), %s10975_s29, 64, %s10973_s3, %s7782_s19  }
0x13d3 PF: > { %s11087_s20 = sld [smem:[#allocation29_spill]]  ;;  %s11088_s26 = sld [smem:[#allocation26_spill]] }
0x13d4   : > { %s11089_s28 = sld [smem:[#allocation33_spill]] }
0x13d9   : > { %p9005_p0 = scmp.ge.s32.totalorder %s11087_s20, 2  ;;  %s7819_s30 = sand.u32 1, %s11088_s26  }
0x13da   : > { %p11090_p9 = scmp.ne.s32.totalorder %s11089_s28, 0  ;;  %s7820_s22 = scalar_lea.sflag [#allocation7], %s7819_s30 }
0x13dc   : > { %p8986_p10 = pnand %p9005_p0, %p11090_p9 }
0x13de   : > { %9898 = dma.done.wait (!%p8986_p10), %s7820_s22, 64  }
0x13df   : > { %9900 = vsyncadd (!%p8986_p10), %s7820_s22, 4294967232  ;;  %s11091_s21 = sld [smem:[#allocation30_spill]]  ;;  %s11092_s18 = sld [smem:[#allocation27_spill]] }
0x13e0   : > { %s11093_s19 = sld [smem:[#allocation28_spill]]  ;;  %s11094_s20 = sld [smem:[#allocation31_spill]] }
0x13e5   : > { %p31_p13 = scmp.ge.s32.totalorder %s11091_s21, 4  }
0x13e7   :  { %33 = sbr.rel (!%p31_p13) target bundleno = 14 (0xe), region = 162 }
0x13ee   :  { %7825 = vsyncpa [#allocation6], 1 }
0x13ef   :  { %7827 = vsyncpa [#allocation6 + $0x1], 1 }
0x13f0   :  { %7828 = vsyncpa [#allocation9], 1 }
0x13f1   :  { %7829 = vsyncpa [#allocation12], 1 }
0x13f2   :  { %7830 = vsyncpa [#allocation15], 1 }
0x13f3   :  { %7831 = vsyncpa [#allocation18], 1 }
0x13f4   :  { %7832 = vsyncpa [#allocation7], 1 }
0x13f5   :  { %7834 = vsyncpa [#allocation7 + $0x1], 1 }

</bundles_post_ra>
